<compile_context>
chip_gen: v5e
topology: v5e:2x2
jax: 0.10.0
libtpu: 0.0.40
codegen_flags: <defaults>
</compile_context>

<pallas_src>
import functools
import math

import jax
import jax.numpy as jnp
from jax.experimental import pallas as pl
from jax.experimental.pallas import tpu as pltpu

SQRT2 = math.sqrt(2.0)


# ----------------------------------------------------------------------------
# Fused StyleConv Pallas kernel
# ----------------------------------------------------------------------------

def _styleconv_kernel(xp_ref, w_ref, d_ref, bias_ref, noise_ref, out_ref,
                      taps_ref, *, H, W, kh, kw, neg_slope):
    """One grid step = (one batch sample b) x (one tile j of output channels).

    xp_ref    : (1, Hp, Wp, Cin)     bf16  padded, style-scaled NHWC activation
    w_ref     : (kh*kw*Cin, tn)      bf16  shared conv weight (scale * W), K-major taps
    d_ref     : (1, 1, tn)           f32   per-sample demod coeff * sqrt(2)
    bias_ref  : (1, tn)              f32   FusedLeakyReLU bias * sqrt(2)
    noise_ref : (1, H*W, 1)          f32   noise * noise_weight * sqrt(2)
    out_ref   : (1, H*W, tn)         f32
    taps_ref  : (H*W, kh*kw*Cin)     bf16  VMEM scratch (im2col, built once per b)
    """
    cin = xp_ref.shape[3]
    tn = w_ref.shape[1]

    # --- (1) im2col into VMEM once per batch sample, reused across Cout tiles.
    #     (Cout-tile grid axis is "arbitrary" so j==0 always runs first per b.)
    @pl.when(pl.program_id(1) == 0)
    def _build_taps():
        for i in range(kh):
            for j in range(kw):
                t = i * kw + j
                taps_ref[:, t * cin:(t + 1) * cin] = (
                    xp_ref[:, i:i + H, j:j + W, :].reshape(H * W, cin))

    # --- (2) 3x3 conv as ONE wide-K bf16 MXU matmul, value-level accumulation.
    r = jnp.dot(taps_ref[...], w_ref[...], preferred_element_type=jnp.float32)

    # --- (3) fused epilogue: demod output scale + noise + bias + leaky_relu.
    #     (sqrt(2) gain and the NoiseInjection weight are pre-folded.)
    r = r * d_ref[...].reshape(1, tn)            # per-sample, per-channel demod
    r = r + noise_ref[...].reshape(H * W, 1)     # noise, broadcast over channels
    r = r + bias_ref[...]                        # per-channel activation bias
    out_ref[...] = jnp.where(r >= 0.0, r, neg_slope * r).reshape(1, H * W, tn)


def _pick_cout_tile(c_out):
    if c_out % 256 == 0:
        return 256
    if c_out % 128 == 0:
        return 128
    return c_out


def style_conv_forward(x, style, params, noise, *, demodulate=True):
    """StyleConv forward (upsample=False), NHWC activations.

    x      : (B, H, W, Cin)  float32
    style  : (B, style_dim)  float32
    noise  : (B, H, W, 1)    float32
    params : conv_weight (1, Cout, Cin, kh, kw), mod_weight (Cin, style_dim),
             mod_bias (Cin,), noise_weight (1,), act_bias (Cout,)
    returns (B, H, W, Cout) float32
    """
    B, H, W, C_in = x.shape
    weight = params["conv_weight"]
    _, C_out, C_in_w, kh, kw = weight.shape
    assert C_in_w == C_in
    style_dim = style.shape[1]
    pad = kh // 2
    scale = 1.0 / math.sqrt(C_in * kh * kw)

    # ---- tiny per-sample math hoisted to XLA (no M=1 matmuls in the kernel) --
    # EqualLinear style modulation  s : (B, Cin)
    wmod = params["mod_weight"].astype(jnp.float32) * (1.0 / math.sqrt(style_dim))
    s = jnp.dot(style.astype(jnp.float32), wmod.T) + params["mod_bias"].astype(jnp.float32)

    # Shared (batch-invariant) conv weight, scale folded in, bf16 in HBM.
    w0 = weight[0].astype(jnp.float32) * scale                     # (Cout, Cin, kh, kw)
    w_k = jnp.transpose(w0, (2, 3, 1, 0)).reshape(kh * kw * C_in, C_out)
    w_k = w_k.astype(jnp.bfloat16)                                 # (K, Cout)

    # Demod coefficient without materializing per-sample weights:
    #   d[b,o] = rsqrt( sum_i s[b,i]^2 * sum_{kh,kw} (scale*W[o,i])^2 + eps )
    if demodulate:
        w_sq = jnp.sum(w0 * w0, axis=(2, 3))                       # (Cout, Cin)
        d = jax.lax.rsqrt(jnp.dot(s * s, w_sq.T) + 1e-8)           # (B, Cout)
    else:
        d = jnp.ones((B, C_out), jnp.float32)
    d = (d * SQRT2).reshape(B, 1, C_out).astype(jnp.float32)       # fold act gain

    # Activation bias and noise, with the sqrt(2) gain / noise weight folded in.
    fl_bias = (params["act_bias"].astype(jnp.float32) * SQRT2).reshape(1, C_out)
    noise_s = (noise.astype(jnp.float32).reshape(B, H * W, 1)
               * (params["noise_weight"].astype(jnp.float32)[0] * SQRT2))

    # Input-scale formulation: x * s (per sample), halo pad, bf16 MXU feed.
    # (Single fused XLA pass: multiply + pad + cast.)
    xs = x.astype(jnp.float32) * s[:, None, None, :]
    xp = jnp.pad(xs, ((0, 0), (pad, pad), (pad, pad), (0, 0))).astype(jnp.bfloat16)
    Hp, Wp = xp.shape[1], xp.shape[2]

    tn = _pick_cout_tile(C_out)
    grid = (B, C_out // tn)
    K = kh * kw * C_in

    kernel = functools.partial(_styleconv_kernel, H=H, W=W, kh=kh, kw=kw,
                               neg_slope=0.2)

    out_flat = pl.pallas_call(
        kernel,
        out_shape=jax.ShapeDtypeStruct((B, H * W, C_out), jnp.float32),
        grid_spec=pltpu.PrefetchScalarGridSpec(
            num_scalar_prefetch=0,
            grid=grid,
            in_specs=[
                pl.BlockSpec((1, Hp, Wp, C_in), lambda b, j: (b, 0, 0, 0)),
                pl.BlockSpec((K, tn), lambda b, j: (0, j)),
                pl.BlockSpec((1, 1, tn), lambda b, j: (b, 0, j)),
                pl.BlockSpec((1, tn), lambda b, j: (0, j)),
                pl.BlockSpec((1, H * W, 1), lambda b, j: (b, 0, 0)),
            ],
            out_specs=pl.BlockSpec((1, H * W, tn), lambda b, j: (b, 0, j)),
            scratch_shapes=[
                pltpu.VMEM((H * W, K), jnp.bfloat16),   # im2col taps
            ],
        ),
        compiler_params=pltpu.CompilerParams(
            # batch is parallel (2-TC / megacore sharding); the Cout-tile axis
            # must be "arbitrary" because the im2col scratch is built at j==0
            # and reused by the following tiles of the same sample.
            dimension_semantics=("parallel", "arbitrary"),
            vmem_limit_bytes=64 * 1024 * 1024),
    )(xp, w_k, d, fl_bias, noise_s)

    return out_flat.reshape(B, H, W, C_out)


# ----------------------------------------------------------------------------
# Pure-JAX reference (f32) for correctness checking
# ----------------------------------------------------------------------------

def style_conv_reference(x, style, params, noise, *, demodulate=True):
    B, H, W, C_in = x.shape
    weight = params["conv_weight"][0]                     # (Cout, Cin, kh, kw)
    C_out, _, kh, kw = weight.shape
    style_dim = style.shape[1]
    hi = jax.lax.Precision.HIGHEST

    s = jnp.dot(style, (params["mod_weight"] * (1.0 / math.sqrt(style_dim))).T,
                precision=hi) + params["mod_bias"]                       # (B, Cin)
    scale = 1.0 / math.sqrt(C_in * kh * kw)
    w = scale * weight[None] * s[:, None, :, None, None]                 # (B,Cout,Cin,kh,kw)
    if demodulate:
        d = jax.lax.rsqrt(jnp.sum(w * w, axis=(2, 3, 4)) + 1e-8)
        w = w * d[:, :, None, None, None]

    pad = kh // 2
    xp = jnp.pad(x, ((0, 0), (pad, pad), (pad, pad), (0, 0)))
    out = jnp.zeros((B, H, W, C_out), jnp.float32)
    for i in range(kh):
        for j in range(kw):
            out = out + jnp.einsum("bhwc,boc->bhwo",
                                   xp[:, i:i + H, j:j + W, :],
                                   w[:, :, :, i, j], precision=hi)
    out = out + params["noise_weight"][0] * noise
    out = out + params["act_bias"][None, None, None, :]
    return jnp.where(out >= 0.0, out, 0.2 * out) * SQRT2


# ----------------------------------------------------------------------------
# Demo / smoke test
# ----------------------------------------------------------------------------

if __name__ == "__main__":
    key = jax.random.PRNGKey(0)
    k = jax.random.split(key, 5)

    # Small but lane-dense shapes (channels multiple of 128 avoids any padding).
    B, H, W = 2, 16, 16
    C_in, C_out, style_dim = 128, 128, 128
    kh = kw = 3

    params = {
        "conv_weight": jax.random.normal(k[0], (1, C_out, C_in, kh, kw), jnp.float32),
        "mod_weight": jax.random.normal(k[1], (C_in, style_dim), jnp.float32),
        "mod_bias": jnp.ones((C_in,), jnp.float32),            # EqualLinear bias_init=1
        "noise_weight": jnp.full((1,), 0.1, jnp.float32),      # NoiseInjection weight
        "act_bias": jnp.zeros((C_out,), jnp.float32),          # FusedLeakyReLU bias
    }
    x = jax.random.normal(k[2], (B, H, W, C_in), jnp.float32)
    style = jax.random.normal(k[3], (B, style_dim), jnp.float32)
    noise = jax.random.normal(k[4], (B, H, W, 1), jnp.float32)

    out = style_conv_forward(x, style, params, noise)
    out = jax.block_until_ready(out)
    assert out.shape == (B, H, W, C_out), out.shape

    ref = style_conv_reference(x, style, params, noise)
    rel_err = float(jnp.max(jnp.abs(out - ref)) / (jnp.max(jnp.abs(ref)) + 1e-6))
    assert rel_err < 5e-2, f"mismatch vs reference: rel err {rel_err}"

    print("KERNEL_OK")
</pallas_src>

<mosaic_0001>
module attributes {stable_mosaic.version = 11 : i64} {
  func.func @_styleconv_kernel(%arg0: i32, %arg1: i32, %arg2: memref<1x18x18x128xbf16, #tpu.memory_space<vmem>>, %arg3: memref<1152x128xbf16, #tpu.memory_space<vmem>>, %arg4: memref<1x1x128xf32, #tpu.memory_space<vmem>>, %arg5: memref<1x128xf32, #tpu.memory_space<vmem>>, %arg6: memref<1x256x1xf32, #tpu.memory_space<vmem>>, %arg7: memref<1x256x128xf32, #tpu.memory_space<vmem>>, %arg8: memref<256x1152xbf16, #tpu.memory_space<vmem>>) attributes {dimension_semantics = [#tpu.dimension_semantics<parallel>, #tpu.dimension_semantics<arbitrary>], iteration_bounds = array<i64: 2, 1>, scalar_prefetch = 0 : i64, scratch_operands = 1 : i64, tpu.core_type = #tpu.core_type<tc>, window_params = [{transform_indices = @transform_0, window_bounds = array<i64: 1, 18, 18, 128>}, {transform_indices = @transform_1, window_bounds = array<i64: 1152, 128>}, {transform_indices = @transform_2, window_bounds = array<i64: 1, 1, 128>}, {transform_indices = @transform_3, window_bounds = array<i64: 1, 128>}, {transform_indices = @transform_4, window_bounds = array<i64: 1, 256, 1>}, {transform_indices = @transform_5, window_bounds = array<i64: 1, 256, 128>}]} {
    %c0_i32 = arith.constant 0 : i32
    %0 = arith.cmpi eq, %arg1, %c0_i32 : i32
    %1 = arith.extui %0 : i1 to i32
    %c0_i32_0 = arith.constant 0 : i32
    %2 = arith.cmpi ne, %1, %c0_i32_0 : i32
    scf.if %2 {
      %c0_17 = arith.constant 0 : index
      %c0_18 = arith.constant 0 : index
      %c0_19 = arith.constant 0 : index
      %c0_20 = arith.constant 0 : index
      %24 = vector.load %arg2[%c0_17, %c0_18, %c0_19, %c0_20] : memref<1x18x18x128xbf16, #tpu.memory_space<vmem>>, vector<1x16x16x128xbf16>
      %25 = vector.shape_cast %24 : vector<1x16x16x128xbf16> to vector<256x128xbf16>
      %c0_21 = arith.constant 0 : index
      %c0_22 = arith.constant 0 : index
      %26 = vector.load %arg8[%c0_21, %c0_22] : memref<256x1152xbf16, #tpu.memory_space<vmem>>, vector<256x128xbf16>
      tpu.vector_store %arg8[%c0_21, %c0_22], %25 {strides = array<i32>} : memref<256x1152xbf16, #tpu.memory_space<vmem>>, vector<256x128xbf16>,
      %c0_23 = arith.constant 0 : index
      %c0_24 = arith.constant 0 : index
      %c1 = arith.constant 1 : index
      %c0_25 = arith.constant 0 : index
      %27 = vector.load %arg2[%c0_23, %c0_24, %c1, %c0_25] : memref<1x18x18x128xbf16, #tpu.memory_space<vmem>>, vector<1x16x16x128xbf16>
      %28 = vector.shape_cast %27 : vector<1x16x16x128xbf16> to vector<256x128xbf16>
      %c0_26 = arith.constant 0 : index
      %c128 = arith.constant 128 : index
      %29 = vector.load %arg8[%c0_26, %c128] : memref<256x1152xbf16, #tpu.memory_space<vmem>>, vector<256x128xbf16>
      tpu.vector_store %arg8[%c0_26, %c128], %28 {strides = array<i32>} : memref<256x1152xbf16, #tpu.memory_space<vmem>>, vector<256x128xbf16>,
      %c0_27 = arith.constant 0 : index
      %c0_28 = arith.constant 0 : index
      %c2 = arith.constant 2 : index
      %c0_29 = arith.constant 0 : index
      %30 = vector.load %arg2[%c0_27, %c0_28, %c2, %c0_29] : memref<1x18x18x128xbf16, #tpu.memory_space<vmem>>, vector<1x16x16x128xbf16>
      %31 = vector.shape_cast %30 : vector<1x16x16x128xbf16> to vector<256x128xbf16>
      %c0_30 = arith.constant 0 : index
      %c256 = arith.constant 256 : index
      %32 = vector.load %arg8[%c0_30, %c256] : memref<256x1152xbf16, #tpu.memory_space<vmem>>, vector<256x128xbf16>
      tpu.vector_store %arg8[%c0_30, %c256], %31 {strides = array<i32>} : memref<256x1152xbf16, #tpu.memory_space<vmem>>, vector<256x128xbf16>,
      %c0_31 = arith.constant 0 : index
      %c1_32 = arith.constant 1 : index
      %c0_33 = arith.constant 0 : index
      %c0_34 = arith.constant 0 : index
      %33 = vector.load %arg2[%c0_31, %c1_32, %c0_33, %c0_34] : memref<1x18x18x128xbf16, #tpu.memory_space<vmem>>, vector<1x16x16x128xbf16>
      %34 = vector.shape_cast %33 : vector<1x16x16x128xbf16> to vector<256x128xbf16>
      %c0_35 = arith.constant 0 : index
      %c384 = arith.constant 384 : index
      %35 = vector.load %arg8[%c0_35, %c384] : memref<256x1152xbf16, #tpu.memory_space<vmem>>, vector<256x128xbf16>
      tpu.vector_store %arg8[%c0_35, %c384], %34 {strides = array<i32>} : memref<256x1152xbf16, #tpu.memory_space<vmem>>, vector<256x128xbf16>,
      %c0_36 = arith.constant 0 : index
      %c1_37 = arith.constant 1 : index
      %c1_38 = arith.constant 1 : index
      %c0_39 = arith.constant 0 : index
      %36 = vector.load %arg2[%c0_36, %c1_37, %c1_38, %c0_39] : memref<1x18x18x128xbf16, #tpu.memory_space<vmem>>, vector<1x16x16x128xbf16>
      %37 = vector.shape_cast %36 : vector<1x16x16x128xbf16> to vector<256x128xbf16>
      %c0_40 = arith.constant 0 : index
      %c512 = arith.constant 512 : index
      %38 = vector.load %arg8[%c0_40, %c512] : memref<256x1152xbf16, #tpu.memory_space<vmem>>, vector<256x128xbf16>
      tpu.vector_store %arg8[%c0_40, %c512], %37 {strides = array<i32>} : memref<256x1152xbf16, #tpu.memory_space<vmem>>, vector<256x128xbf16>,
      %c0_41 = arith.constant 0 : index
      %c1_42 = arith.constant 1 : index
      %c2_43 = arith.constant 2 : index
      %c0_44 = arith.constant 0 : index
      %39 = vector.load %arg2[%c0_41, %c1_42, %c2_43, %c0_44] : memref<1x18x18x128xbf16, #tpu.memory_space<vmem>>, vector<1x16x16x128xbf16>
      %40 = vector.shape_cast %39 : vector<1x16x16x128xbf16> to vector<256x128xbf16>
      %c0_45 = arith.constant 0 : index
      %c640 = arith.constant 640 : index
      %41 = vector.load %arg8[%c0_45, %c640] : memref<256x1152xbf16, #tpu.memory_space<vmem>>, vector<256x128xbf16>
      tpu.vector_store %arg8[%c0_45, %c640], %40 {strides = array<i32>} : memref<256x1152xbf16, #tpu.memory_space<vmem>>, vector<256x128xbf16>,
      %c0_46 = arith.constant 0 : index
      %c2_47 = arith.constant 2 : index
      %c0_48 = arith.constant 0 : index
      %c0_49 = arith.constant 0 : index
      %42 = vector.load %arg2[%c0_46, %c2_47, %c0_48, %c0_49] : memref<1x18x18x128xbf16, #tpu.memory_space<vmem>>, vector<1x16x16x128xbf16>
      %43 = vector.shape_cast %42 : vector<1x16x16x128xbf16> to vector<256x128xbf16>
      %c0_50 = arith.constant 0 : index
      %c768 = arith.constant 768 : index
      %44 = vector.load %arg8[%c0_50, %c768] : memref<256x1152xbf16, #tpu.memory_space<vmem>>, vector<256x128xbf16>
      tpu.vector_store %arg8[%c0_50, %c768], %43 {strides = array<i32>} : memref<256x1152xbf16, #tpu.memory_space<vmem>>, vector<256x128xbf16>,
      %c0_51 = arith.constant 0 : index
      %c2_52 = arith.constant 2 : index
      %c1_53 = arith.constant 1 : index
      %c0_54 = arith.constant 0 : index
      %45 = vector.load %arg2[%c0_51, %c2_52, %c1_53, %c0_54] : memref<1x18x18x128xbf16, #tpu.memory_space<vmem>>, vector<1x16x16x128xbf16>
      %46 = vector.shape_cast %45 : vector<1x16x16x128xbf16> to vector<256x128xbf16>
      %c0_55 = arith.constant 0 : index
      %c896 = arith.constant 896 : index
      %47 = vector.load %arg8[%c0_55, %c896] : memref<256x1152xbf16, #tpu.memory_space<vmem>>, vector<256x128xbf16>
      tpu.vector_store %arg8[%c0_55, %c896], %46 {strides = array<i32>} : memref<256x1152xbf16, #tpu.memory_space<vmem>>, vector<256x128xbf16>,
      %c0_56 = arith.constant 0 : index
      %c2_57 = arith.constant 2 : index
      %c2_58 = arith.constant 2 : index
      %c0_59 = arith.constant 0 : index
      %48 = vector.load %arg2[%c0_56, %c2_57, %c2_58, %c0_59] : memref<1x18x18x128xbf16, #tpu.memory_space<vmem>>, vector<1x16x16x128xbf16>
      %49 = vector.shape_cast %48 : vector<1x16x16x128xbf16> to vector<256x128xbf16>
      %c0_60 = arith.constant 0 : index
      %c1024 = arith.constant 1024 : index
      %50 = vector.load %arg8[%c0_60, %c1024] : memref<256x1152xbf16, #tpu.memory_space<vmem>>, vector<256x128xbf16>
      tpu.vector_store %arg8[%c0_60, %c1024], %49 {strides = array<i32>} : memref<256x1152xbf16, #tpu.memory_space<vmem>>, vector<256x128xbf16>,
    } else {
    }
    %c0 = arith.constant 0 : index
    %c0_1 = arith.constant 0 : index
    %3 = vector.load %arg8[%c0, %c0_1] : memref<256x1152xbf16, #tpu.memory_space<vmem>>, vector<256x1152xbf16>
    %c0_2 = arith.constant 0 : index
    %c0_3 = arith.constant 0 : index
    %4 = vector.load %arg3[%c0_2, %c0_3] : memref<1152x128xbf16, #tpu.memory_space<vmem>>, vector<1152x128xbf16>
    %cst = arith.constant dense<0.000000e+00> : vector<256x128xf32>
    %5 = tpu.matmul %3, %4, %cst {dimension_numbers = #tpu.dot_dimension_numbers<[1], [0], [0], [1], [0, 0, 1, 1], [], []>} : vector<256x1152xbf16>, vector<1152x128xbf16>, vector<256x128xf32> -> vector<256x128xf32>
    %c0_4 = arith.constant 0 : index
    %c0_5 = arith.constant 0 : index
    %c0_6 = arith.constant 0 : index
    %6 = vector.load %arg4[%c0_4, %c0_5, %c0_6] : memref<1x1x128xf32, #tpu.memory_space<vmem>>, vector<1x1x128xf32>
    %7 = vector.shape_cast %6 : vector<1x1x128xf32> to vector<1x128xf32>
    %8 = vector.broadcast %7 : vector<1x128xf32> to vector<256x128xf32>
    %9 = arith.mulf %5, %8 : vector<256x128xf32>
    %c0_7 = arith.constant 0 : index
    %c0_8 = arith.constant 0 : index
    %c0_9 = arith.constant 0 : index
    %10 = vector.load %arg6[%c0_7, %c0_8, %c0_9] : memref<1x256x1xf32, #tpu.memory_space<vmem>>, vector<1x256x1xf32>
    %11 = vector.shape_cast %10 : vector<1x256x1xf32> to vector<256x1xf32>
    %12 = vector.broadcast %11 : vector<256x1xf32> to vector<256x128xf32>
    %13 = arith.addf %9, %12 : vector<256x128xf32>
    %c0_10 = arith.constant 0 : index
    %c0_11 = arith.constant 0 : index
    %14 = vector.load %arg5[%c0_10, %c0_11] : memref<1x128xf32, #tpu.memory_space<vmem>>, vector<1x128xf32>
    %15 = vector.broadcast %14 : vector<1x128xf32> to vector<256x128xf32>
    %16 = arith.addf %13, %15 : vector<256x128xf32>
    %cst_12 = arith.constant 0.000000e+00 : f32
    %17 = vector.broadcast %cst_12 : f32 to vector<256x128xf32>
    %18 = arith.cmpf oge, %16, %17 : vector<256x128xf32>
    %cst_13 = arith.constant 2.000000e-01 : f32
    %19 = vector.broadcast %cst_13 : f32 to vector<256x128xf32>
    %20 = arith.mulf %19, %16 : vector<256x128xf32>
    %21 = arith.select %18, %16, %20 : vector<256x128xi1>, vector<256x128xf32>
    %22 = vector.shape_cast %21 : vector<256x128xf32> to vector<1x256x128xf32>
    %c0_14 = arith.constant 0 : index
    %c0_15 = arith.constant 0 : index
    %c0_16 = arith.constant 0 : index
    %23 = vector.load %arg7[%c0_14, %c0_15, %c0_16] : memref<1x256x128xf32, #tpu.memory_space<vmem>>, vector<1x256x128xf32>
    tpu.vector_store %arg7[%c0_14, %c0_15, %c0_16], %22 {strides = array<i32>} : memref<1x256x128xf32, #tpu.memory_space<vmem>>, vector<1x256x128xf32>,
    return
  }
  func.func @transform_0(%arg0: i32, %arg1: i32) -> (i32, i32, i32, i32) {
    %c0_i32 = arith.constant 0 : i32
    %c0_i32_0 = arith.constant 0 : i32
    %c0_i32_1 = arith.constant 0 : i32
    %c0_i32_2 = arith.constant 0 : i32
    return %arg0, %c0_i32, %c0_i32_0, %c0_i32_1 : i32, i32, i32, i32
  }
  func.func @transform_1(%arg0: i32, %arg1: i32) -> (i32, i32) {
    %c0_i32 = arith.constant 0 : i32
    %c0_i32_0 = arith.constant 0 : i32
    return %c0_i32, %arg1 : i32, i32
  }
  func.func @transform_2(%arg0: i32, %arg1: i32) -> (i32, i32, i32) {
    %c0_i32 = arith.constant 0 : i32
    %c0_i32_0 = arith.constant 0 : i32
    return %arg0, %c0_i32, %arg1 : i32, i32, i32
  }
  func.func @transform_3(%arg0: i32, %arg1: i32) -> (i32, i32) {
    %c0_i32 = arith.constant 0 : i32
    %c0_i32_0 = arith.constant 0 : i32
    return %c0_i32, %arg1 : i32, i32
  }
  func.func @transform_4(%arg0: i32, %arg1: i32) -> (i32, i32, i32) {
    %c0_i32 = arith.constant 0 : i32
    %c0_i32_0 = arith.constant 0 : i32
    %c0_i32_1 = arith.constant 0 : i32
    return %arg0, %c0_i32, %c0_i32_0 : i32, i32, i32
  }
  func.func @transform_5(%arg0: i32, %arg1: i32) -> (i32, i32, i32) {
    %c0_i32 = arith.constant 0 : i32
    %c0_i32_0 = arith.constant 0 : i32
    return %arg0, %c0_i32, %arg1 : i32, i32, i32
  }
}

</mosaic_0001>

<bundles_post_ra>
// kernel: tpu_custom_call.1
= control target key start
LH: loop header
LB: loop body
LE: loop exit
PB: predicated region body
PF: predicated region fallthrough
CT: control target
= control target key end

     0   :  { %10 = vsyncpa [#allocation4], 0  ;;  %s8817_s0 = inlined_call_operand.vmem [shape: bf16[2,18,18,128], index: 0, kind: input, shape index: {}]   ;;  %s8818_s1 = inlined_call_operand.vmem [shape: bf16[1152,128], index: 1, kind: input, shape index: {}]   ;;  %s8819_s2 = inlined_call_operand.vmem [shape: f32[2,1,128], index: 2, kind: input, shape index: {}]   ;;  %s8820_s3 = inlined_call_operand.vmem [shape: f32[1,128], index: 3, kind: input, shape index: {}]   ;;  %s8821_s4 = inlined_call_operand.vmem [shape: f32[2,256,1], index: 4, kind: input, shape index: {}]   ;;  %s8822_s5 = inlined_call_operand.hbm [shape: f32[2,256,128], index: 5, kind: output, shape index: {}]  }
   0x1   :  { %12 = vsyncpa [#allocation4 + $0x1], 0  ;;  %s7263_s18 = smov 0   ;;  %s7265_s19 = smov 0  }
   0x2   :  { %s7267_s20 = smov 0   ;;  %s7269_s21 = smov 0  }
   0x3   :  { %s7271_s22 = smov 0   ;;  %s7273_s23 = smov 0  }
   0x4 LB: > { %s5658_s24 = sadd.s32 4294967295, %s7228_s23   ;;  %s5659_s25 = sadd.s32 4294967294, %s7228_s23   ;;  %s7228_s23 = sphi %s7273_s23, %s18_s23   ;;  %s7224_s22 = sphi %s7271_s22, %s8849_s22   ;;  %s7220_s21 = sphi %s7269_s21, %s8848_s21   ;;  %s7216_s20 = sphi %s7267_s20, %s8847_s20   ;;  %s7212_s19 = sphi %s7265_s19, %s8846_s19   ;;  %s7208_s18 = sphi %s7263_s18, %s8845_s18  }
   0x5   : > { %s30_s26 = sadd.s32 1, %s7224_s22  ;;  %s171_s27 = sadd.s32 1, %s7216_s20 }
   0x6   : > { %p32_p0 = scmp.ge.s32.totalorder %s30_s26, 2  ;;  %p181_p1 = scmp.ne.s32.totalorder %s7216_s20, %s7212_s19 }
   0x7   : > { %p182_p2 = scmp.eq.s32.totalorder %s5658_s24, 1  ;;  %p187_p3 = scmp.ne.s32.totalorder %s7212_s19, %s7208_s18 }
   0x8   : > { %s8851_s26 = smov (%p32_p0, %s30_s26), 0  ;;  %p188_p5 = scmp.eq.s32.totalorder %s5659_s25, 1 }
   0x9   : > { %p7303_p4 = por %p182_p2, %p181_p1  ;;  %s166_s29 = ssub.s32 %s7224_s22, %s8851_s26 }
   0xa   : > { %p5664_p6 = scmp.ge.s32.totalorder %s7228_s23, 1  ;;  %p169_p7 = scmp.eq.s32.totalorder %s166_s29, 0 }
   0xb   : > { %p7310_p8 = por %p188_p5, %p187_p3  ;;  %p244_p9 = scmp.lt.s32.totalorder %s7228_s23, 3 }
   0xc   : > { %s7316_s6 = scalar_select %p169_p7, %s7216_s20, %s171_s27  }
   0xd   : > { %p245_p10 = pnand %p5664_p6, %p244_p9 }
   0xf   : > { %248 = sbr.rel (%p245_p10) target bundleno = 771 (0x303), region = 40 }
  0x14   : > { %v6994_v0 = vld [vmem:[%s8818_s1 + $0x38] sm:$0xff]  ;;  %p290_p11 = scmp.lt.s32.totalorder %s7220_s21, 1  ;;  %v6993_v1 = vld [vmem:[%s8818_s1 + $0x30] sm:$0xff]  ;;  %v6992_v2 = vld [vmem:[%s8818_s1 + $0x28] sm:$0xff]  ;;  %vm429_vm0 = vsmask.f32 3328 }
  0x15   : > { %7060 = vmatpush.bf16.msra.mxu1 %v6994_v0  ;;  %7061 = vmatpush.bf16.msra.mxu2 %v6994_v0  ;;  %v6991_v8 = vld [vmem:[%s8818_s1 + $0x20] sm:$0xff]  ;;  %v6990_v13 = vld [vmem:[%s8818_s1 + $0x18] sm:$0xff]  ;;  %v6989_v18 = vld [vmem:[%s8818_s1 + $0x10] sm:$0xff]  ;;  %vm430_vm1 = vsmask.f32 7440  ;;  %vm976_vm2 = vcmask 1042432  }
  0x16   : > { %s7326_s11 = scalar_select %p290_p11, %s7220_s21, 1  ;;  %7062 = vmatpush.bf16.msra.mxu3 %v6994_v0  ;;  %4293 = vmatpush.bf16.msra.mxu0 %v6994_v0  ;;  %v6988_v22 = vld [vmem:[%s8818_s1 + $0x8] sm:$0xff]  ;;  %v6987_v25 = vld [vmem:[%s8818_s1] sm:$0xff]  ;;  %v7010_v38 = vld [vmem:[%s8818_s1 + $0xb8] sm:$0xff]  ;;  %vm977_vm4 = vcmask 1046532  }
  0x17   : > { %v7018_v39 = vld [vmem:[%s8818_s1 + $0xf8] sm:$0xff]  ;;  %v7009_v48 = vld [vmem:[%s8818_s1 + $0xb0] sm:$0xff]  ;;  %v7008_v52 = vld [vmem:[%s8818_s1 + $0xa8] sm:$0xff]  ;;  %s7059_s10 = sshll.u32 %s7220_s21, 8 }
  0x18   : > { %s7084_s12 = smul.u32 216, %s7326_s11  ;;  %v7002_v46 = vld [vmem:[%s8818_s1 + $0x78] sm:$0xff]  ;;  %v7017_v49 = vld [vmem:[%s8818_s1 + $0xf0] sm:$0xff]  ;;  %v7016_v53 = vld [vmem:[%s8818_s1 + $0xe8] sm:$0xff]  ;;  %s8204_s25 = scalar_lea.vmem %s8819_s2, %s7326_s11 }
  0x19   : > { %7063 = vmatpush.bf16.msra.mxu1 %v6993_v1  ;;  %7064 = vmatpush.bf16.msra.mxu2 %v6993_v1  ;;  %v7026_v47 = vld [vmem:[%s8818_s1 + $0x138] sm:$0xff]  ;;  %v7001_v50 = vld [vmem:[%s8818_s1 + $0x70] sm:$0xff]  ;;  %v7000_v54 = vld [vmem:[%s8818_s1 + $0x68] sm:$0xff]  ;;  %s5531_s14 = scalar_lea.hbm %s8822_s5, %s7059_s10 }
  0x1a   : > { %s7335_s17 = scalar_lea.vmem %s8817_s0, %s7084_s12  ;;  %7065 = vmatpush.bf16.msra.mxu3 %v6993_v1  ;;  %4294 = vmatpush.bf16.msra.mxu0 %v6993_v1  ;;  %v7025_v51 = vld [vmem:[%s8818_s1 + $0x130] sm:$0xff]  ;;  %v7007_v55 = vld [vmem:[%s8818_s1 + $0xa0] sm:$0xff]  ;;  %v7024_v57 = vld [vmem:[%s8818_s1 + $0x128] sm:$0xff]  ;;  %s6842_s12 = sshll.u32 %s7326_s11, 8 }
  0x1b   : > { %v325_v3 = vld [vmem:[%s7335_s17 + $0x30] sm:$0xf]  ;;  %v326_v4 = vld [vmem:[%s7335_s17 + $0x34] sm:$0xf]  ;;  %v333_v5 = vld [vmem:[%s7335_s17 + $0x60] sm:$0xf]  ;;  %s8153_s15 = scalar_lea.vmem %s8821_s4, %s6842_s12 }
  0x1c   : > { %357 = vst [vmem:[#allocation2 + $0x120] sm:$0xf] %v325_v3  ;;  %v334_v6 = vld [vmem:[%s7335_s17 + $0x64] sm:$0xf]  ;;  %v341_v7 = vld [vmem:[%s7335_s17 + $0x90] sm:$0xf]  ;;  %vm7482_vm3 = vmor %vm429_vm0, %vm430_vm1 }
  0x1d   : > { %358 = vst [vmem:[#allocation2 + $0x144] sm:$0xf] %v326_v4  ;;  %7066 = vmatpush.bf16.msra.mxu1 %v6992_v2  ;;  %7067 = vmatpush.bf16.msra.mxu2 %v6992_v2  ;;  %v342_v9 = vld [vmem:[%s7335_s17 + $0x94] sm:$0xf]  ;;  %v317_v10 = vld [vmem:[%s7335_s17] sm:$0xf]  ;;  %vm7496_vm5 = vmor %vm976_vm2, %vm977_vm4 }
  0x1e   : > { %365 = vst [vmem:[#allocation2 + $0x240] sm:$0xf] %v333_v5  ;;  %7068 = vmatpush.bf16.msra.mxu3 %v6992_v2  ;;  %4295 = vmatpush.bf16.msra.mxu0 %v6992_v2  ;;  %v318_v11 = vld [vmem:[%s7335_s17 + $0x4] sm:$0xf]  ;;  %v327_v12 = vld [vmem:[%s7335_s17 + $0x3c] sm:$0xf] }
  0x1f   : > { %366 = vst [vmem:[#allocation2 + $0x264] sm:$0xf] %v334_v6  ;;  %v328_v14 = vld [vmem:[%s7335_s17 + $0x40] sm:$0xf]  ;;  %v335_v15 = vld [vmem:[%s7335_s17 + $0x6c] sm:$0xf] }
  0x20   : > { %373 = vst [vmem:[#allocation2 + $0x360] sm:$0xf] %v341_v7  ;;  %v336_v16 = vld [vmem:[%s7335_s17 + $0x70] sm:$0xf]  ;;  %v343_v17 = vld [vmem:[%s7335_s17 + $0x9c] sm:$0xf] }
  0x21   : > { %374 = vst [vmem:[#allocation2 + $0x384] sm:$0xf] %v342_v9  ;;  %7069 = vmatpush.bf16.msra.mxu1 %v6991_v8  ;;  %7070 = vmatpush.bf16.msra.mxu2 %v6991_v8  ;;  %v344_v19 = vld [vmem:[%s7335_s17 + $0xa0] sm:$0xf]  ;;  %v319_v20 = vld [vmem:[%s7335_s17 + $0xc] sm:$0xf] }
  0x22   : > { %349 = vst [vmem:[#allocation2] sm:$0xf] %v317_v10  ;;  %7071 = vmatpush.bf16.msra.mxu3 %v6991_v8  ;;  %4296 = vmatpush.bf16.msra.mxu0 %v6991_v8  ;;  %v320_v21 = vld [vmem:[%s7335_s17 + $0x10] sm:$0xf]  ;;  %v329_v23 = vld [vmem:[%s7335_s17 + $0x48] sm:$0xf] }
  0x23   : > { %350 = vst [vmem:[#allocation2 + $0x24] sm:$0xf] %v318_v11  ;;  %v330_v24 = vld [vmem:[%s7335_s17 + $0x4c] sm:$0xf]  ;;  %v6119_v26 = vld [vmem:[#allocation2 + $0x120] sm:$0xf] }
  0x24   : > { %359 = vst [vmem:[#allocation2 + $0x168] sm:$0xf] %v327_v12  ;;  %v6883_v27 = vld [vmem:[#allocation2 + $0x140] sm:$0xf0]  ;;  %v337_v30 = vld [vmem:[%s7335_s17 + $0x78] sm:$0xf] }
  0x25   : > { %360 = vst [vmem:[#allocation2 + $0x18c] sm:$0xf] %v328_v14  ;;  %7072 = vmatpush.bf16.msra.mxu1 %v6990_v13  ;;  %7073 = vmatpush.bf16.msra.mxu2 %v6990_v13  ;;  %v6263_v28 = vld [vmem:[#allocation2 + $0x240] sm:$0xf]  ;;  %v338_v33 = vld [vmem:[%s7335_s17 + $0x7c] sm:$0xf]  ;;  %v6120_v41 = vor.u32 %v6883_v27, %v6119_v26 }
  0x26   : > { %367 = vst [vmem:[#allocation2 + $0x288] sm:$0xf] %v335_v15  ;;  %7074 = vmatpush.bf16.msra.mxu3 %v6990_v13  ;;  %4297 = vmatpush.bf16.msra.mxu0 %v6990_v13  ;;  %v6919_v29 = vld [vmem:[#allocation2 + $0x260] sm:$0xf0]  ;;  %v345_v35 = vld [vmem:[%s7335_s17 + $0xa8] sm:$0xf] }
  0x27   : > { %368 = vst [vmem:[#allocation2 + $0x2ac] sm:$0xf] %v336_v16  ;;  %v6407_v31 = vld [vmem:[#allocation2 + $0x360] sm:$0xf]  ;;  %v346_v37 = vld [vmem:[%s7335_s17 + $0xac] sm:$0xf]  ;;  %v6264_v42 = vor.u32 %v6919_v29, %v6263_v28 }
  0x28   : > { %375 = vst [vmem:[#allocation2 + $0x3a8] sm:$0xf] %v343_v17  ;;  %v6955_v32 = vld [vmem:[#allocation2 + $0x380] sm:$0xf0]  ;;  %v321_v40 = vld [vmem:[%s7335_s17 + $0x18] sm:$0xf] }
  0x29   : > { %376 = vst [vmem:[#allocation2 + $0x3cc] sm:$0xf] %v344_v19  ;;  %7075 = vmatpush.bf16.msra.mxu1 %v6989_v18  ;;  %7076 = vmatpush.bf16.msra.mxu2 %v6989_v18  ;;  %v5975_v34 = vld [vmem:[#allocation2] sm:$0xf]  ;;  %v322_v43 = vld [vmem:[%s7335_s17 + $0x1c] sm:$0xf]  ;;  %v6408_v44 = vor.u32 %v6955_v32, %v6407_v31 }
  0x2a   : > { %351 = vst [vmem:[#allocation2 + $0x48] sm:$0xf] %v319_v20  ;;  %7077 = vmatpush.bf16.msra.mxu3 %v6989_v18  ;;  %4298 = vmatpush.bf16.msra.mxu0 %v6989_v18  ;;  %v6847_v36 = vld [vmem:[#allocation2 + $0x20] sm:$0xf0]  ;;  %v331_v58 = vld [vmem:[%s7335_s17 + $0x54] sm:$0xf] }
  0x2b   : > { %352 = vst [vmem:[#allocation2 + $0x6c] sm:$0xf] %v320_v21  ;;  %v5976_v45 = vor.u32 %v6847_v36, %v5975_v34  ;;  %v7015_v56 = vld [vmem:[%s8818_s1 + $0xe0] sm:$0xff]  ;;  %v332_v59 = vld [vmem:[%s7335_s17 + $0x58] sm:$0xf]  ;;  %v6997_v31 = vld [vmem:[%s8818_s1 + $0x50] sm:$0xff] }
  0x2c   : > { %361 = vst [vmem:[#allocation2 + $0x1b0] sm:$0xf] %v329_v23  ;;  %v339_v60 = vld [vmem:[%s7335_s17 + $0x84] sm:$0xf]  ;;  %v340_v61 = vld [vmem:[%s7335_s17 + $0x88] sm:$0xf] }
  0x2d   : > { %362 = vst [vmem:[#allocation2 + $0x1d4] sm:$0xf] %v330_v24  ;;  %7078 = vmatpush.bf16.msra.mxu1 %v6988_v22  ;;  %7079 = vmatpush.bf16.msra.mxu2 %v6988_v22  ;;  %v6155_v62 = vld [vmem:[#allocation2 + $0x168] sm:$0xf]  ;;  %v6892_v63 = vld [vmem:[#allocation2 + $0x188] sm:$0xf0] }
  0x2e   : > { %369 = vst [vmem:[#allocation2 + $0x2d0] sm:$0xf] %v337_v30  ;;  %7080 = vmatpush.bf16.msra.mxu3 %v6988_v22  ;;  %4299 = vmatpush.bf16.msra.mxu0 %v6988_v22  ;;  %v6299_v0 = vld [vmem:[#allocation2 + $0x288] sm:$0xf]  ;;  %v6928_v1 = vld [vmem:[#allocation2 + $0x2a8] sm:$0xf0]  ;;  %v6156_v14 = vor.u32 %v6892_v63, %v6155_v62 }
  0x2f   : > { %370 = vst [vmem:[#allocation2 + $0x2f4] sm:$0xf] %v338_v33  ;;  %v347_v2 = vld [vmem:[%s7335_s17 + $0xb4] sm:$0xf]  ;;  %v6443_v3 = vld [vmem:[#allocation2 + $0x3a8] sm:$0xf]  ;;  %v6300_v15 = vor.u32 %v6928_v1, %v6299_v0 }
  0x30   : > { %377 = vst [vmem:[#allocation2 + $0x3f0] sm:$0xf] %v345_v35  ;;  %v6964_v4 = vld [vmem:[#allocation2 + $0x3c8] sm:$0xf0]  ;;  %v348_v6 = vld [vmem:[%s7335_s17 + $0xb8] sm:$0xf] }
  0x31   : > { %378 = vst [vmem:[#allocation2 + $0x414] sm:$0xf] %v346_v37  ;;  %7081 = vmatpush.bf16.msra.mxu1 %v6987_v25  ;;  %7082 = vmatpush.bf16.msra.mxu2 %v6987_v25  ;;  %v6011_v5 = vld [vmem:[#allocation2 + $0x48] sm:$0xf]  ;;  %v323_v8 = vld [vmem:[%s7335_s17 + $0x24] sm:$0xf]  ;;  %v6444_v16 = vor.u32 %v6964_v4, %v6443_v3 }
  0x32   : > { %353 = vst [vmem:[#allocation2 + $0x90] sm:$0xf] %v321_v40  ;;  %7083 = vmatpush.bf16.msra.mxu3 %v6987_v25  ;;  %4300 = vmatpush.bf16.msra.mxu0 %v6987_v25  ;;  %v6856_v7 = vld [vmem:[#allocation2 + $0x68] sm:$0xf0]  ;;  %v6999_v9 = vld [vmem:[%s8818_s1 + $0x60] sm:$0xff]  ;;  %v7006_v12 = vld [vmem:[%s8818_s1 + $0x98] sm:$0xff] }
  0x33   : > { %354 = vst [vmem:[#allocation2 + $0xb4] sm:$0xf] %v322_v43  ;;  %v7023_v10 = vld [vmem:[%s8818_s1 + $0x120] sm:$0xff]  ;;  %v324_v11 = vld [vmem:[%s7335_s17 + $0x28] sm:$0xf]  ;;  %v7014_v13 = vld [vmem:[%s8818_s1 + $0xd8] sm:$0xff]  ;;  %v6012_v17 = vor.u32 %v6856_v7, %v6011_v5 }
  0x34   : > { %4321 = vmatmul.bf16.vlgmr.msra.gmra.mxu1 %v6120_v41  ;;  %4341 = vmatmul.bf16.vlgmr.msra.gmra.mxu2 %v6264_v42  ;;  %363 = vst [vmem:[#allocation2 + $0x1f8] sm:$0xf] %v331_v58  ;;  %v381_v18 = vld [vmem:[%s7335_s17] sm:$0xf]  ;;  %v6998_v19 = vld [vmem:[%s8818_s1 + $0x58] sm:$0xff]  ;;  %v7005_v24 = vld [vmem:[%s8818_s1 + $0x90] sm:$0xff] }
  0x35   : > { %4471 = vmatpush.bf16.msrb.mxu2 %v7010_v38  ;;  %4361 = vmatmul.bf16.vlgmr.msra.gmra.mxu3 %v6408_v44  ;;  %364 = vst [vmem:[#allocation2 + $0x21c] sm:$0xf] %v332_v59  ;;  %v7022_v20 = vld [vmem:[%s8818_s1 + $0x118] sm:$0xff]  ;;  %v382_v21 = vld [vmem:[%s7335_s17 + $0x4] sm:$0xf]  ;;  %v433_v22 = vshrl.u32 %v381_v18, 16 }
  0x36   : > { %4560 = vmatpush.bf16.msrb.mxu3 %v7018_v39  ;;  %4301 = vmatmul.bf16.vlgmr.msra.gmra.mxu0 %v5976_v45  ;;  %371 = vst [vmem:[#allocation2 + $0x318] sm:$0xf] %v339_v60  ;;  %v436_v23 = vshll.u32 %v381_v18, 16  ;;  %v7013_v25 = vld [vmem:[%s8818_s1 + $0xd0] sm:$0xff]  ;;  %v442_v26 = vshll.u32 %v382_v21, 16  ;;  %v446_v27 = vshrl.u32 %v382_v21, 16 }
  0x37   : > { %4382 = vmatpush.bf16.msrb.mxu1 %v7002_v46  ;;  %4649 = vmatpush.bf16.msrb.mxu0 %v7026_v47  ;;  %372 = vst [vmem:[#allocation2 + $0x33c] sm:$0xf] %v340_v61  ;;  %v435_v28 = vrot.slane %v433_v22, 4  ;;  %v7453_v30 = vld [vmem:[%s7335_s17 + $0xc] sm:$0xf]  ;;  %v7021_v32 = vld [vmem:[%s8818_s1 + $0x110] sm:$0xff] }
  0x38   : > { %379 = vst [vmem:[#allocation2 + $0x438] sm:$0xf] %v347_v2  ;;  %v438_v29 = vrot.slane %v436_v23, 5  ;;  %v7004_v34 = vld [vmem:[%s8818_s1 + $0x88] sm:$0xff]  ;;  %v444_v36 = vrot.slane %v442_v26, 5  ;;  %v448_v37 = vrot.slane %v446_v27, 4 }
  0x39   : > { %4472 = vmatpush.bf16.msrb.mxu2 %v7009_v48  ;;  %380 = vst [vmem:[#allocation2 + $0x45c] sm:$0xf] %v348_v6  ;;  %v7012_v35 = vld [vmem:[%s8818_s1 + $0xc8] sm:$0xff]  ;;  %v7003_v40 = vld [vmem:[%s8818_s1 + $0x80] sm:$0xff]  ;;  %v1269_v46 = vshrl.u32 %v7453_v30, 16  ;;  %s287_s11 = sand.u32 1, %s7212_s19  }
  0x3a   : > { %4561 = vmatpush.bf16.msrb.mxu3 %v7017_v49  ;;  %355 = vst [vmem:[#allocation2 + $0xd8] sm:$0xf] %v323_v8  ;;  %v439_v33 = vor.u32 %v438_v29, %v435_v28  ;;  %v6996_v38 = vld [vmem:[%s8818_s1 + $0x48] sm:$0xff]  ;;  %v7011_v41 = vld [vmem:[%s8818_s1 + $0xc0] sm:$0xff]  ;;  %v449_v45 = vor.u32 %v448_v37, %v444_v36  ;;  %v6479_v61 = vld [vmem:[#allocation2 + $0x3f0] sm:$0xf] }
  0x3b   : > { %4383 = vmatpush.bf16.msrb.mxu1 %v7001_v50  ;;  %4650 = vmatpush.bf16.msrb.mxu0 %v7025_v51  ;;  %356 = vst [vmem:[#allocation2 + $0xfc] sm:$0xf] %v324_v11  ;;  %v7020_v42 = vld [vmem:[%s8818_s1 + $0x108] sm:$0xff]  ;;  %v880_v49 = vld [vmem:[%s7335_s17] sm:$0xe]  ;;  %v1271_v5 = vrot.slane %v1269_v46, 4 }
  0x3c   : > { %v440_v39 = vrot.slane %v439_v33, 4  ;;  %v383_v43 = vld [vmem:[%s7335_s17 + $0x8] sm:$0x1]  ;;  %v881_v50 = vld [vmem:[%s7335_s17 + $0x4] sm:$0xf]  ;;  %v5669_v60 = vrot.slane %v880_v49, 9 }
  0x3d   : > { %4473 = vmatpush.bf16.msrb.mxu2 %v7008_v52  ;;  %v452_v48 = vshll.u32 %v383_v43, 16  ;;  %v5718_v51 = vld [vmem:[%s7335_s17 + $0x10] sm:$0xf]  ;;  %v1272_v52 = vshll.u32 %v7453_v30, 16  ;;  %v882_v58 = vld [vmem:[%s7335_s17 + $0x8] sm:$0x1] }
  0x3e   : > { %4562 = vmatpush.bf16.msrb.mxu3 %v7016_v53  ;;  %v445_v47 = vsel %vm7482_vm3, %v440_v39, %v444_v36  ;;  %v6191_v53 = vld [vmem:[#allocation2 + $0x1b0] sm:$0xf]  ;;  %v6973_v62 = vld [vmem:[#allocation2 + $0x410] sm:$0xf0]  ;;  %v981_v2 = vrot.slane %v881_v50, 5  ;;  %v984_v3 = vrot.slane %v882_v58, 5 }
  0x3f   : > { %4384 = vmatpush.bf16.msrb.mxu1 %v7000_v54  ;;  %4651 = vmatpush.bf16.msrb.mxu0 %v7024_v57  ;;  %v6901_v54 = vld [vmem:[#allocation2 + $0x1d0] sm:$0xf0]  ;;  %v450_v57 = vrot.slane %v449_v45, 4  ;;  %848 = vst [vmem:[#allocation2 + $0x4] sm:$0xf] %v445_v47  ;;  %v454_v1 = vrot.slane %v452_v48, 5  ;;  %v6480_v21 = vor.u32 %v6973_v62, %v6479_v61 }
  0x40   : > { %v6047_v63 = vld [vmem:[#allocation2 + $0x90] sm:$0xf]  ;;  %v6865_v0 = vld [vmem:[#allocation2 + $0xb0] sm:$0xf0]  ;;  %v5685_v4 = vld [vmem:[%s7335_s17 + $0xc] sm:$0xf]  ;;  %v982_v11 = vsel %vm7496_vm5, %v5669_v60, %v981_v2 }
  0x41   : > { %4474 = vmatpush.bf16.msrb.mxu2 %v7007_v55  ;;  %v6335_v55 = vld [vmem:[#allocation2 + $0x2d0] sm:$0xf]  ;;  %1188 = vst [vmem:[#allocation2 + $0xc] sm:$0xf] %v5685_v4  ;;  %v5719_v7 = vld [vmem:[%s7335_s17 + $0x14] sm:$0x1]  ;;  %v6048_v22 = vor.u32 %v6865_v0, %v6047_v63 }
  0x42   : > { %4563 = vmatpush.bf16.msrb.mxu3 %v7015_v56  ;;  %v6937_v56 = vld [vmem:[#allocation2 + $0x2f0] sm:$0xf0]  ;;  %v5686_v6 = vld [vmem:[%s7335_s17 + $0x10] sm:$0xf]  ;;  %v6995_v8 = vld [vmem:[%s8818_s1 + $0x40] sm:$0xff]  ;;  %s8491_s7 = sshll.u32 %s287_s11, 8 }
  0x43   : > { %4385 = vmatpush.bf16.msrb.mxu1 %v6999_v9  ;;  %4652 = vmatpush.bf16.msrb.mxu0 %v7023_v10  ;;  %v7019_v9 = vld [vmem:[%s8818_s1 + $0x100] sm:$0xff]  ;;  %v455_v10 = vsel %vm7482_vm3, %v450_v57, %v454_v1  ;;  %1189 = vst [vmem:[#allocation2 + $0x30] sm:$0xf] %v5686_v6  ;;  %v6336_v18 = vor.u32 %v6937_v56, %v6335_v55  ;;  %v384_v26 = vld [vmem:[%s7335_s17 + $0xc] sm:$0xf]  ;;  %v7050_v37 = vld [vmem:[%s8818_s1 + $0x1f8] sm:$0xff] }
  0x44   : > { %4326 = vmatmul.bf16.gmra.mxu1 %v6156_v14  ;;  %4346 = vmatmul.bf16.gmra.mxu2 %v6300_v15  ;;  %849 = vst [vmem:[#allocation2 + $0x28] sm:$0xf] %v455_v10  ;;  %v1278_v14 = vshll.u32 %v5718_v51, 16  ;;  %v1282_v15 = vshrl.u32 %v5718_v51, 16  ;;  %v385_v29 = vld [vmem:[%s7335_s17 + $0x10] sm:$0xf] }
  0x45   : > { %4475 = vmatpush.bf16.msrb.mxu2 %v7006_v12  ;;  %4366 = vmatmul.bf16.gmra.mxu3 %v6444_v16  ;;  %v983_v12 = vrot.slane %v981_v2, 4  ;;  %v1288_v16 = vshll.u32 %v5719_v7, 16  ;;  %1123 = vst [vmem:[#allocation2 + $0x8] sm:$0xf] %v982_v11  ;;  %v457_v30 = vshrl.u32 %v384_v26, 16  ;;  %v466_v33 = vshll.u32 %v385_v29, 16 }
  0x46   : > { %4564 = vmatpush.bf16.msrb.mxu3 %v7014_v13  ;;  %4306 = vmatmul.bf16.gmra.mxu0 %v6012_v17  ;;  %v1274_v13 = vrot.slane %v1272_v52, 5  ;;  %v6192_v17 = vor.u32 %v6901_v54, %v6191_v53  ;;  %v1280_v23 = vrot.slane %v1278_v14, 5  ;;  %v386_v43 = vld [vmem:[%s7335_s17 + $0x14] sm:$0x1]  ;;  %v5720_v49 = vld [vmem:[%s7335_s17 + $0x18] sm:$0xf] }
  0x47   : > { %4386 = vmatpush.bf16.msrb.mxu1 %v6998_v19  ;;  %4653 = vmatpush.bf16.msrb.mxu0 %v7022_v20  ;;  %v985_v19 = vsel %vm7496_vm5, %v983_v12, %v984_v3  ;;  %v1290_v28 = vrot.slane %v1288_v16, 5  ;;  %v459_v39 = vrot.slane %v457_v30, 4  ;;  %v468_v45 = vrot.slane %v466_v33, 5  ;;  %v883_v50 = vld [vmem:[%s7335_s17 + $0xc] sm:$0xe]  ;;  %s8504_s8 = scalar_lea.vmem [#allocation3], %s8491_s7 }
  0x48   : > { %v1275_v20 = vor.u32 %v1274_v13, %v1271_v5  ;;  %1124 = vst [vmem:[#allocation2 + $0x2c] sm:$0xf] %v985_v19  ;;  %v476_v48 = vshll.u32 %v386_v43, 16  ;;  %v884_v51 = vld [vmem:[%s7335_s17 + $0x10] sm:$0xf]  ;;  %v5670_v57 = vrot.slane %v883_v50, 9 }
  0x49   : > { %4476 = vmatpush.bf16.msrb.mxu2 %v7005_v24  ;;  %v1284_v24 = vrot.slane %v1282_v15, 4  ;;  %v885_v52 = vld [vmem:[%s7335_s17 + $0x14] sm:$0x1]  ;;  %v5721_v53 = vld [vmem:[%s7335_s17 + $0x1c] sm:$0xf]  ;;  %v988_v0 = vrot.slane %v884_v51, 5 }
  0x4a   : > { %4565 = vmatpush.bf16.msrb.mxu3 %v7013_v25  ;;  %v1276_v25 = vrot.slane %v1275_v20, 4  ;;  %v478_v56 = vrot.slane %v476_v48, 5  ;;  %v5687_v58 = vld [vmem:[%s7335_s17 + $0x18] sm:$0xf]  ;;  %v6910_v61 = vld [vmem:[#allocation2 + $0x218] sm:$0xf0] }
  0x4b   : > { %4387 = vmatpush.bf16.msrb.mxu1 %v6997_v31  ;;  %4654 = vmatpush.bf16.msrb.mxu0 %v7021_v32  ;;  %v1285_v27 = vor.u32 %v1284_v24, %v1280_v23  ;;  %v460_v31 = vshll.u32 %v384_v26, 16  ;;  %v6227_v60 = vld [vmem:[#allocation2 + $0x1f8] sm:$0xf]  ;;  %v6946_v63 = vld [vmem:[#allocation2 + $0x338] sm:$0xf0]  ;;  %v991_v1 = vrot.slane %v885_v52, 5  ;;  %v989_v10 = vsel %vm7496_vm5, %v5670_v57, %v988_v0 }
  0x4c   : > { %v1281_v32 = vsel %vm7482_vm3, %v1276_v25, %v1280_v23  ;;  %v6371_v62 = vld [vmem:[#allocation2 + $0x318] sm:$0xf]  ;;  %v5688_v2 = vld [vmem:[%s7335_s17 + $0x1c] sm:$0xf]  ;;  %1190 = vst [vmem:[#allocation2 + $0x54] sm:$0xf] %v5687_v58 }
  0x4d   : > { %4477 = vmatpush.bf16.msrb.mxu2 %v7004_v34  ;;  %v470_v34 = vshrl.u32 %v385_v29, 16  ;;  %v1286_v36 = vrot.slane %v1285_v27, 4  ;;  %1684 = vst [vmem:[#allocation2 + $0x10] sm:$0xf] %v1281_v32  ;;  %v6515_v3 = vld [vmem:[#allocation2 + $0x438] sm:$0xf] }
  0x4e   : > { %4566 = vmatpush.bf16.msrb.mxu3 %v7012_v35  ;;  %v7042_v35 = vld [vmem:[%s8818_s1 + $0x1b8] sm:$0xff]  ;;  %1191 = vst [vmem:[#allocation2 + $0x78] sm:$0xf] %v5688_v2  ;;  %v990_v11 = vrot.slane %v988_v0, 4  ;;  %v5722_v12 = vld [vmem:[%s7335_s17 + $0x20] sm:$0x1] }
  0x4f   : > { %4388 = vmatpush.bf16.msrb.mxu1 %v6996_v38  ;;  %4655 = vmatpush.bf16.msrb.mxu0 %v7020_v42  ;;  %v7034_v38 = vld [vmem:[%s8818_s1 + $0x178] sm:$0xff]  ;;  %v472_v47 = vrot.slane %v470_v34, 4  ;;  %v1296_v13 = vshll.u32 %v5720_v49, 16  ;;  %1125 = vst [vmem:[#allocation2 + $0x50] sm:$0xf] %v989_v10  ;;  %v1302_v16 = vshll.u32 %v5721_v53, 16 }
  0x50   : > { %v7058_v42 = vld [vmem:[%s8818_s1 + $0x238] sm:$0xff]  ;;  %v1312_v20 = vshll.u32 %v5722_v12, 16  ;;  %v6843_v0 = vld [vmem:[#allocation2 + $0x4] sm:$0xf]  ;;  %v5983_v2 = vld [vmem:[#allocation2 + $0x8] sm:$0xf] }
  0x51   : > { %4478 = vmatpush.bf16.msrb.mxu2 %v7003_v40  ;;  %v462_v40 = vrot.slane %v460_v31, 5  ;;  %v473_v55 = vor.u32 %v472_v47, %v468_v45  ;;  %v6982_v4 = vld [vmem:[#allocation2 + $0x458] sm:$0xf0]  ;;  %v6083_v5 = vld [vmem:[#allocation2 + $0xd8] sm:$0xf]  ;;  %v1298_v19 = vrot.slane %v1296_v13, 5 }
  0x52   : > { %4567 = vmatpush.bf16.msrb.mxu3 %v7011_v41  ;;  %v1291_v41 = vsel %vm7482_vm3, %v1286_v36, %v1290_v28  ;;  %v6874_v6 = vld [vmem:[#allocation2 + $0xf8] sm:$0xf0]  ;;  %v1304_v23 = vrot.slane %v1302_v16, 5  ;;  %v6516_v25 = vor.u32 %v6982_v4, %v6515_v3  ;;  %v1314_v28 = vrot.slane %v1312_v20, 5  ;;  %v387_v29 = vld [vmem:[%s7335_s17 + $0x18] sm:$0xf] }
  0x53   : > { %4389 = vmatpush.bf16.msrb.mxu1 %v6995_v8  ;;  %4656 = vmatpush.bf16.msrb.mxu0 %v7019_v9  ;;  %1685 = vst [vmem:[#allocation2 + $0x34] sm:$0xf] %v1291_v41  ;;  %v463_v46 = vor.u32 %v462_v40, %v459_v39  ;;  %v474_v8 = vrot.slane %v473_v55, 4  ;;  %v1293_v9 = vshrl.u32 %v5720_v49, 16  ;;  %v6084_v26 = vor.u32 %v6874_v6, %v6083_v5  ;;  %v388_v30 = vld [vmem:[%s7335_s17 + $0x1c] sm:$0xf] }
  0x54   : > { %4331 = vmatmul.bf16.gmra.mxu1 %v6192_v17  ;;  %4351 = vmatmul.bf16.gmra.mxu2 %v6336_v18  ;;  %v1306_v17 = vshrl.u32 %v5721_v53, 16  ;;  %v992_v18 = vsel %vm7496_vm5, %v990_v11, %v991_v1  ;;  %v481_v32 = vshrl.u32 %v387_v29, 16  ;;  %v484_v33 = vshll.u32 %v387_v29, 16  ;;  %v5723_v40 = vld [vmem:[%s7335_s17 + $0x24] sm:$0xf]  ;;  %s5534_s16 = sshll.u32 %s5531_s14, 4  ;;  %s5535_s16 = int_to_ptr.hbm [resolvable:$true] %s5534_s16 }
  0x55   : > { %4371 = vmatmul.bf16.gmra.mxu3 %v6480_v21  ;;  %4827 = vmatpush.bf16.msra.mxu2 %v7042_v35  ;;  %v464_v54 = vrot.slane %v463_v46, 4  ;;  %v479_v14 = vsel %vm7482_vm3, %v474_v8, %v478_v56  ;;  %v1295_v15 = vrot.slane %v1293_v9, 4  ;;  %v6228_v21 = vor.u32 %v6910_v61, %v6227_v60  ;;  %1126 = vst [vmem:[#allocation2 + $0x74] sm:$0xf] %v992_v18  ;;  %v886_v50 = vld [vmem:[%s7335_s17 + $0x18] sm:$0xe] }
  0x56   : > { %4311 = vmatmul.bf16.gmra.mxu0 %v6048_v22  ;;  %4916 = vmatpush.bf16.msra.mxu3 %v7050_v37  ;;  %851 = vst [vmem:[#allocation2 + $0x70] sm:$0xf] %v479_v14  ;;  %v6372_v22 = vor.u32 %v6946_v63, %v6371_v62  ;;  %v1308_v24 = vrot.slane %v1306_v17, 4  ;;  %v490_v34 = vshll.u32 %v388_v30, 16  ;;  %v494_v36 = vshrl.u32 %v388_v30, 16  ;;  %s5519_s21 = scalar_lea.sflag [#allocation4], %s287_s11 }
  0x57   : > { %4738 = vmatpush.bf16.msra.mxu1 %v7034_v38  ;;  %5005 = vmatpush.bf16.msra.mxu0 %v7058_v42  ;;  %v469_v7 = vsel %vm7482_vm3, %v464_v54, %v468_v45  ;;  %v1299_v27 = vor.u32 %v1298_v19, %v1295_v15  ;;  %v483_v38 = vrot.slane %v481_v32, 4  ;;  %v486_v39 = vrot.slane %v484_v33, 5  ;;  %v389_v42 = vld [vmem:[%s7335_s17 + $0x20] sm:$0x1]  ;;  %v887_v54 = vld [vmem:[%s7335_s17 + $0x1c] sm:$0xf] }
  0x58   : > { %850 = vst [vmem:[#allocation2 + $0x4c] sm:$0xf] %v469_v7  ;;  %v1309_v31 = vor.u32 %v1308_v24, %v1304_v23  ;;  %v492_v43 = vrot.slane %v490_v34, 5  ;;  %v496_v45 = vrot.slane %v494_v36, 4  ;;  %v500_v48 = vshll.u32 %v389_v42, 16  ;;  %v7049_v42 = vld [vmem:[%s8818_s1 + $0x1f0] sm:$0xff] }
  0x59   : > { %v1300_v35 = vrot.slane %v1299_v27, 4  ;;  %v487_v47 = vor.u32 %v486_v39, %v483_v38  ;;  %v1317_v51 = vshrl.u32 %v5723_v40, 16  ;;  %v888_v55 = vld [vmem:[%s7335_s17 + $0x20] sm:$0x1]  ;;  %v5671_v57 = vrot.slane %v886_v50, 9  ;;  %s7164_s24 = sshra.s32 %s5535_s16, 4  ;;  %s7165_s24 = int_to_ptr.hbm [resolvable:$true] %s7164_s24 }
  0x5a   : > { %v1310_v37 = vrot.slane %v1309_v31, 4  ;;  %v497_v49 = vor.u32 %v496_v45, %v492_v43  ;;  %v502_v53 = vrot.slane %v500_v48, 5  ;;  %v995_v58 = vrot.slane %v887_v54, 5  ;;  %v5724_v61 = vld [vmem:[%s7335_s17 + $0x28] sm:$0xf]  ;;  %v7057_v45 = vld [vmem:[%s8818_s1 + $0x230] sm:$0xff]  ;;  %4917 = vmatpush.bf16.msra.mxu3 %v7049_v42  ;;  %p7171_p1 = scmp.lt.s32.totalorder %s7165_s24, %s8822_s5 }
  0x5b   : > { %v1305_v41 = vsel %vm7482_vm3, %v1300_v35, %v1304_v23  ;;  %v488_v52 = vrot.slane %v487_v47, 4  ;;  %v998_v60 = vrot.slane %v888_v55, 5  ;;  %v5725_v63 = vld [vmem:[%s7335_s17 + $0x2c] sm:$0x1]  ;;  %v5977_v1 = vld [vmem:[#allocation2 + $0x24] sm:$0xf0]  ;;  %5006 = vmatpush.bf16.msra.mxu0 %v7057_v45 }
  0x5c   : > { %v1315_v46 = vsel %vm7482_vm3, %v1310_v37, %v1314_v28  ;;  %1686 = vst [vmem:[#allocation2 + $0x58] sm:$0xf] %v1305_v41  ;;  %v498_v56 = vrot.slane %v497_v49, 4  ;;  %v6848_v3 = vld [vmem:[#allocation2 + $0x28] sm:$0xf0]  ;;  %v996_v5 = vsel %vm7496_vm5, %v5671_v57, %v995_v58  ;;  %v997_v6 = vrot.slane %v995_v58, 4 }
  0x5d   : > { %1687 = vst [vmem:[#allocation2 + $0x7c] sm:$0xf] %v1315_v46  ;;  %v493_v62 = vsel %vm7482_vm3, %v488_v52, %v492_v43  ;;  %v5689_v7 = vld [vmem:[%s7335_s17 + $0x24] sm:$0xf]  ;;  %v6844_v8 = vld [vmem:[#allocation2 + $0xc] sm:$0xf]  ;;  %v5984_v23 = vor.u32 %v6848_v3, %v5983_v2 }
  0x5e   : > { %v503_v4 = vsel %vm7482_vm3, %v498_v56, %v502_v53  ;;  %852 = vst [vmem:[#allocation2 + $0x94] sm:$0xf] %v493_v62  ;;  %v5985_v9 = vld [vmem:[#allocation2 + $0x2c] sm:$0xf0]  ;;  %v1319_v11 = vrot.slane %v1317_v51, 4  ;;  %v1320_v12 = vshll.u32 %v5723_v40, 16  ;;  %v999_v15 = vsel %vm7496_vm5, %v997_v6, %v998_v60 }
  0x5f   : > { %v5991_v10 = vld [vmem:[#allocation2 + $0x10] sm:$0xf]  ;;  %853 = vst [vmem:[#allocation2 + $0xb8] sm:$0xf] %v503_v4  ;;  %v1326_v13 = vshll.u32 %v5724_v61, 16  ;;  %v1330_v14 = vshrl.u32 %v5724_v61, 16 }
  0x60   : > { %1127 = vst [vmem:[#allocation2 + $0x98] sm:$0xf] %v996_v5  ;;  %v5690_v16 = vld [vmem:[%s7335_s17 + $0x28] sm:$0xf]  ;;  %v1336_v17 = vshll.u32 %v5725_v63, 16  ;;  %v1322_v19 = vrot.slane %v1320_v12, 5 }
  0x61   : > { %v6849_v18 = vld [vmem:[#allocation2 + $0x30] sm:$0xf0]  ;;  %1128 = vst [vmem:[#allocation2 + $0xbc] sm:$0xf] %v999_v15  ;;  %v1328_v20 = vrot.slane %v1326_v13, 5  ;;  %s7170_s7 = scalar_lea.hbm %s8822_s5, 512 }
  0x62   : > { %1192 = vst [vmem:[#allocation2 + $0x9c] sm:$0xf] %v5689_v7  ;;  %v1323_v24 = vor.u32 %v1322_v19, %v1319_v11  ;;  %v1338_v28 = vrot.slane %v1336_v17, 5  ;;  %v390_v29 = vld [vmem:[%s7335_s17 + $0x24] sm:$0xf]  ;;  %v7041_v40 = vld [vmem:[%s8818_s1 + $0x1b0] sm:$0xff] }
  0x63   : > { %1193 = vst [vmem:[#allocation2 + $0xc0] sm:$0xf] %v5690_v16  ;;  %v391_v30 = vld [vmem:[%s7335_s17 + $0x28] sm:$0xf]  ;;  %v505_v32 = vshrl.u32 %v390_v29, 16  ;;  %v508_v33 = vshll.u32 %v390_v29, 16  ;;  %4828 = vmatpush.bf16.msra.mxu2 %v7041_v40 }
  0x64   : > { %4336 = vmatmul.bf16.gmra.mxu1 %v6228_v21  ;;  %4356 = vmatmul.bf16.gmra.mxu2 %v6372_v22  ;;  %v1332_v21 = vrot.slane %v1330_v14, 4  ;;  %v5980_v22 = vor.u32 %v6843_v0, %v5977_v1  ;;  %v1324_v31 = vrot.slane %v1323_v24, 4  ;;  %v514_v35 = vshll.u32 %v391_v30, 16  ;;  %v7033_v43 = vld [vmem:[%s8818_s1 + $0x170] sm:$0xff]  ;;  %v392_v47 = vld [vmem:[%s7335_s17 + $0x2c] sm:$0x1] }
  0x65   : > { %4376 = vmatmul.bf16.gmra.mxu3 %v6516_v25  ;;  %v5988_v25 = vor.u32 %v6844_v8, %v5985_v9  ;;  %v518_v36 = vshrl.u32 %v391_v30, 16  ;;  %v507_v38 = vrot.slane %v505_v32, 4  ;;  %v510_v39 = vrot.slane %v508_v33, 5  ;;  %v5726_v50 = vld [vmem:[%s7335_s17 + $0x30] sm:$0xf]  ;;  %4739 = vmatpush.bf16.msra.mxu1 %v7033_v43 }
  0x66   : > { %4316 = vmatmul.bf16.gmra.mxu0 %v6084_v26  ;;  %v5992_v26 = vor.u32 %v6849_v18, %v5991_v10  ;;  %v1333_v27 = vor.u32 %v1332_v21, %v1328_v20  ;;  %v1329_v37 = vsel %vm7482_vm3, %v1324_v31, %v1328_v20  ;;  %v516_v48 = vrot.slane %v514_v35, 5  ;;  %v889_v53 = vld [vmem:[%s7335_s17 + $0x24] sm:$0xe]  ;;  %v890_v54 = vld [vmem:[%s7335_s17 + $0x28] sm:$0xf] }
  0x67   : > { %1688 = vst [vmem:[#allocation2 + $0xa0] sm:$0xf] %v1329_v37  ;;  %v511_v46 = vor.u32 %v510_v39, %v507_v38  ;;  %v520_v49 = vrot.slane %v518_v36, 4  ;;  %v524_v52 = vshll.u32 %v392_v47, 16  ;;  %v891_v56 = vld [vmem:[%s7335_s17 + $0x2c] sm:$0x1] }
  0x68   : > { %v1334_v34 = vrot.slane %v1333_v27, 4  ;;  %v5672_v57 = vrot.slane %v889_v53, 9  ;;  %v1002_v58 = vrot.slane %v890_v54, 5  ;;  %v5727_v60 = vld [vmem:[%s7335_s17 + $0x34] sm:$0xf]  ;;  %v1005_v63 = vrot.slane %v891_v56, 5 }
  0x69   : > { %v512_v51 = vrot.slane %v511_v46, 4  ;;  %v521_v55 = vor.u32 %v520_v49, %v516_v48  ;;  %v526_v62 = vrot.slane %v524_v52, 5  ;;  %v5691_v0 = vld [vmem:[%s7335_s17 + $0x30] sm:$0xf]  ;;  %v5728_v1 = vld [vmem:[%s7335_s17 + $0x38] sm:$0x1] }
  0x6a   : > { %v1339_v41 = vsel %vm7482_vm3, %v1334_v34, %v1338_v28  ;;  %v6852_v2 = vld [vmem:[#allocation2 + $0x4c] sm:$0xf]  ;;  %v6013_v3 = vld [vmem:[#allocation2 + $0x6c] sm:$0xf0]  ;;  %v6857_v5 = vld [vmem:[#allocation2 + $0x70] sm:$0xf0]  ;;  %v1003_v7 = vsel %vm7496_vm5, %v5672_v57, %v1002_v58 }
  0x6b   : > { %1689 = vst [vmem:[#allocation2 + $0xc4] sm:$0xf] %v1339_v41  ;;  %v517_v61 = vsel %vm7482_vm3, %v512_v51, %v516_v48  ;;  %v6019_v4 = vld [vmem:[#allocation2 + $0x50] sm:$0xf]  ;;  %v522_v6 = vrot.slane %v521_v55, 4  ;;  %v1004_v8 = vrot.slane %v1002_v58, 4 }
  0x6c   : > { %854 = vst [vmem:[#allocation2 + $0xdc] sm:$0xf] %v517_v61  ;;  %v1341_v9 = vshrl.u32 %v5726_v50, 16  ;;  %v6853_v10 = vld [vmem:[#allocation2 + $0x54] sm:$0xf]  ;;  %v1344_v14 = vshll.u32 %v5726_v50, 16 }
  0x6d   : > { %v6021_v11 = vld [vmem:[#allocation2 + $0x74] sm:$0xf0]  ;;  %v6858_v13 = vld [vmem:[#allocation2 + $0x78] sm:$0xf0]  ;;  %1129 = vst [vmem:[#allocation2 + $0xe0] sm:$0xf] %v1003_v7  ;;  %v527_v16 = vsel %vm7482_vm3, %v522_v6, %v526_v62  ;;  %v1006_v17 = vsel %vm7496_vm5, %v1004_v8, %v1005_v63 }
  0x6e   : > { %v6027_v12 = vld [vmem:[#allocation2 + $0x58] sm:$0xf]  ;;  %v1350_v15 = vshll.u32 %v5727_v60, 16  ;;  %v5692_v18 = vld [vmem:[%s7335_s17 + $0x34] sm:$0xf]  ;;  %v1343_v19 = vrot.slane %v1341_v9, 4  ;;  %v6024_v28 = vor.u32 %v6853_v10, %v6021_v11 }
  0x6f   : > { %1194 = vst [vmem:[#allocation2 + $0xe4] sm:$0xf] %v5691_v0  ;;  %v1354_v20 = vshrl.u32 %v5727_v60, 16  ;;  %v1346_v21 = vrot.slane %v1344_v14, 5  ;;  %v6028_v29 = vor.u32 %v6858_v13, %v6027_v12  ;;  %v393_v32 = vld [vmem:[%s7335_s17 + $0x30] sm:$0xf] }
  0x70   : > { %855 = vst [vmem:[#allocation2 + $0x100] sm:$0xf] %v527_v16  ;;  %v394_v33 = vld [vmem:[%s7335_s17 + $0x34] sm:$0xf]  ;;  %v529_v35 = vshrl.u32 %v393_v32, 16  ;;  %v532_v36 = vshll.u32 %v393_v32, 16 }
  0x71   : > { %1130 = vst [vmem:[#allocation2 + $0x104] sm:$0xf] %v1006_v17  ;;  %v1356_v24 = vrot.slane %v1354_v20, 4  ;;  %v1347_v27 = vor.u32 %v1346_v21, %v1343_v19  ;;  %v538_v37 = vshll.u32 %v394_v33, 16  ;;  %v542_v39 = vshrl.u32 %v394_v33, 16 }
  0x72   : > { %1195 = vst [vmem:[#allocation2 + $0x108] sm:$0xf] %v5692_v18  ;;  %v531_v41 = vrot.slane %v529_v35, 4  ;;  %v534_v42 = vrot.slane %v532_v36, 5  ;;  %v395_v46 = vld [vmem:[%s7335_s17 + $0x38] sm:$0x1] }
  0x73   : > { %v1348_v34 = vrot.slane %v1347_v27, 4  ;;  %v540_v43 = vrot.slane %v538_v37, 5  ;;  %v544_v48 = vrot.slane %v542_v39, 4  ;;  %v548_v49 = vshll.u32 %v395_v46, 16  ;;  %v5729_v50 = vld [vmem:[%s7335_s17 + $0x3c] sm:$0xf] }
  0x74   : > { %4390 = vmatmul.bf16.vlgmr.msrb.gmra.mxu1 %v5980_v22  ;;  %4479 = vmatmul.bf16.vlgmr.msrb.gmra.mxu2 %v5984_v23  ;;  %v1352_v22 = vrot.slane %v1350_v15, 5  ;;  %v1360_v23 = vshll.u32 %v5728_v1, 16  ;;  %v535_v47 = vor.u32 %v534_v42, %v531_v41  ;;  %v892_v51 = vld [vmem:[%s7335_s17 + $0x30] sm:$0xe]  ;;  %v893_v52 = vld [vmem:[%s7335_s17 + $0x34] sm:$0xf] }
  0x75   : > { %4568 = vmatmul.bf16.vlgmr.msrb.gmra.mxu3 %v5988_v25  ;;  %v6016_v25 = vor.u32 %v6852_v2, %v6013_v3  ;;  %v545_v54 = vor.u32 %v544_v48, %v540_v43  ;;  %v550_v55 = vrot.slane %v548_v49, 5  ;;  %v894_v56 = vld [vmem:[%s7335_s17 + $0x38] sm:$0x1]  ;;  %v5730_v57 = vld [vmem:[%s7335_s17 + $0x40] sm:$0xf]  ;;  %v5673_v58 = vrot.slane %v892_v51, 9 }
  0x76   : > { %4657 = vmatmul.bf16.vlgmr.msrb.gmra.mxu0 %v5992_v26  ;;  %v6020_v26 = vor.u32 %v6857_v5, %v6019_v4  ;;  %v1357_v30 = vor.u32 %v1356_v24, %v1352_v22  ;;  %v1362_v31 = vrot.slane %v1360_v23, 5  ;;  %v1353_v40 = vsel %vm7482_vm3, %v1348_v34, %v1352_v22  ;;  %v6861_v63 = vld [vmem:[#allocation2 + $0x94] sm:$0xf]  ;;  %v6049_v0 = vld [vmem:[#allocation2 + $0xb4] sm:$0xf0]  ;;  %v7048_v46 = vld [vmem:[%s8818_s1 + $0x1e8] sm:$0xff] }
  0x77   : > { %1690 = vst [vmem:[#allocation2 + $0xe8] sm:$0xf] %v1353_v40  ;;  %v536_v53 = vrot.slane %v535_v47, 4  ;;  %v1009_v60 = vrot.slane %v893_v52, 5  ;;  %v1012_v61 = vrot.slane %v894_v56, 5  ;;  %v1365_v62 = vshrl.u32 %v5729_v50, 16  ;;  %4918 = vmatpush.bf16.msra.mxu3 %v7048_v46 }
  0x78   : > { %v1358_v38 = vrot.slane %v1357_v30, 4  ;;  %v546_v2 = vrot.slane %v545_v54, 4  ;;  %v5731_v3 = vld [vmem:[%s7335_s17 + $0x44] sm:$0x1]  ;;  %v1368_v4 = vshll.u32 %v5729_v50, 16  ;;  %v1374_v10 = vshll.u32 %v5730_v57, 16 }
  0x79   : > { %v541_v1 = vsel %vm7482_vm3, %v536_v53, %v540_v43  ;;  %v6055_v5 = vld [vmem:[#allocation2 + $0x98] sm:$0xf]  ;;  %v6866_v6 = vld [vmem:[#allocation2 + $0xb8] sm:$0xf0]  ;;  %v1010_v7 = vsel %vm7496_vm5, %v5673_v58, %v1009_v60  ;;  %v1011_v8 = vrot.slane %v1009_v60, 4  ;;  %v1367_v9 = vrot.slane %v1365_v62, 4 }
  0x7a   : > { %v1363_v45 = vsel %vm7482_vm3, %v1358_v38, %v1362_v31  ;;  %856 = vst [vmem:[#allocation2 + $0x124] sm:$0xf] %v541_v1  ;;  %v6862_v11 = vld [vmem:[#allocation2 + $0x9c] sm:$0xf]  ;;  %v6057_v12 = vld [vmem:[#allocation2 + $0xbc] sm:$0xf0]  ;;  %v551_v14 = vsel %vm7482_vm3, %v546_v2, %v550_v55 }
  0x7b   : > { %1691 = vst [vmem:[#allocation2 + $0x10c] sm:$0xf] %v1363_v45  ;;  %v6063_v13 = vld [vmem:[#allocation2 + $0xa0] sm:$0xf]  ;;  %v5693_v15 = vld [vmem:[%s7335_s17 + $0x3c] sm:$0xf]  ;;  %v1013_v18 = vsel %vm7496_vm5, %v1011_v8, %v1012_v61  ;;  %v6060_v30 = vor.u32 %v6862_v11, %v6057_v12 }
  0x7c   : > { %1131 = vst [vmem:[#allocation2 + $0x128] sm:$0xf] %v1010_v7  ;;  %v1370_v16 = vrot.slane %v1368_v4, 5  ;;  %v1378_v17 = vshrl.u32 %v5730_v57, 16  ;;  %v5694_v19 = vld [vmem:[%s7335_s17 + $0x40] sm:$0xf] }
  0x7d   : > { %857 = vst [vmem:[#allocation2 + $0x148] sm:$0xf] %v551_v14  ;;  %v1376_v20 = vrot.slane %v1374_v10, 5  ;;  %v1384_v21 = vshll.u32 %v5731_v3, 16  ;;  %v6867_v22 = vld [vmem:[#allocation2 + $0xc0] sm:$0xf0] }
  0x7e   : > { %1132 = vst [vmem:[#allocation2 + $0x14c] sm:$0xf] %v1013_v18  ;;  %v1371_v23 = vor.u32 %v1370_v16, %v1367_v9  ;;  %v1380_v24 = vrot.slane %v1378_v17, 4  ;;  %v6064_v31 = vor.u32 %v6867_v22, %v6063_v13  ;;  %v396_v32 = vld [vmem:[%s7335_s17 + $0x3c] sm:$0xf]  ;;  %v7040_v45 = vld [vmem:[%s8818_s1 + $0x1a8] sm:$0xff] }
  0x7f   : > { %1196 = vst [vmem:[#allocation2 + $0x12c] sm:$0xf] %v5693_v15  ;;  %v397_v33 = vld [vmem:[%s7335_s17 + $0x40] sm:$0xf]  ;;  %v553_v36 = vshrl.u32 %v396_v32, 16  ;;  %v556_v37 = vshll.u32 %v396_v32, 16  ;;  %4829 = vmatpush.bf16.msra.mxu2 %v7040_v45 }
  0x80   : > { %1197 = vst [vmem:[#allocation2 + $0x150] sm:$0xf] %v5694_v19  ;;  %v1372_v27 = vrot.slane %v1371_v23, 4  ;;  %v562_v38 = vshll.u32 %v397_v33, 16  ;;  %v566_v39 = vshrl.u32 %v397_v33, 16  ;;  %v7032_v54 = vld [vmem:[%s8818_s1 + $0x168] sm:$0xff] }
  0x81   : > { %v555_v41 = vrot.slane %v553_v36, 4  ;;  %v558_v42 = vrot.slane %v556_v37, 5  ;;  %v5732_v43 = vld [vmem:[%s7335_s17 + $0x48] sm:$0xf]  ;;  %v398_v47 = vld [vmem:[%s7335_s17 + $0x44] sm:$0x1]  ;;  %4740 = vmatpush.bf16.msra.mxu1 %v7032_v54 }
  0x82   : > { %v1377_v34 = vsel %vm7482_vm3, %v1372_v27, %v1376_v20  ;;  %v564_v49 = vrot.slane %v562_v38, 5  ;;  %v568_v50 = vrot.slane %v566_v39, 4  ;;  %v572_v51 = vshll.u32 %v398_v47, 16  ;;  %v895_v52 = vld [vmem:[%s7335_s17 + $0x3c] sm:$0xe] }
  0x83   : > { %1692 = vst [vmem:[#allocation2 + $0x130] sm:$0xf] %v1377_v34  ;;  %v559_v48 = vor.u32 %v558_v42, %v555_v41  ;;  %v1389_v53 = vshrl.u32 %v5732_v43, 16  ;;  %v896_v57 = vld [vmem:[%s7335_s17 + $0x40] sm:$0xf]  ;;  %v5674_v61 = vrot.slane %v895_v52, 9 }
  0x84   : > { %4395 = vmatmul.bf16.gmra.mxu1 %v6016_v25  ;;  %4484 = vmatmul.bf16.gmra.mxu2 %v6020_v26  ;;  %v6052_v25 = vor.u32 %v6861_v63, %v6049_v0  ;;  %v6056_v26 = vor.u32 %v6866_v6, %v6055_v5  ;;  %v569_v56 = vor.u32 %v568_v50, %v564_v49  ;;  %v897_v58 = vld [vmem:[%s7335_s17 + $0x44] sm:$0x1]  ;;  %v574_v60 = vrot.slane %v572_v51, 5  ;;  %v7056_v0 = vld [vmem:[%s8818_s1 + $0x228] sm:$0xff]  ;;  %v6870_v4 = vld [vmem:[#allocation2 + $0xdc] sm:$0xf] }
  0x85   : > { %4573 = vmatmul.bf16.gmra.mxu3 %v6024_v28  ;;  %v1381_v28 = vor.u32 %v1380_v24, %v1376_v20  ;;  %v560_v55 = vrot.slane %v559_v48, 4  ;;  %v1016_v62 = vrot.slane %v896_v57, 5  ;;  %v1019_v63 = vrot.slane %v897_v58, 5  ;;  %v5733_v3 = vld [vmem:[%s7335_s17 + $0x4c] sm:$0xf]  ;;  %5007 = vmatpush.bf16.msra.mxu0 %v7056_v0 }
  0x86   : > { %4662 = vmatmul.bf16.gmra.mxu0 %v6028_v29  ;;  %v1386_v29 = vrot.slane %v1384_v21, 5  ;;  %v570_v2 = vrot.slane %v569_v56, 4  ;;  %v6085_v5 = vld [vmem:[#allocation2 + $0xfc] sm:$0xf0]  ;;  %v6875_v7 = vld [vmem:[#allocation2 + $0x100] sm:$0xf0] }
  0x87   : > { %v1382_v35 = vrot.slane %v1381_v28, 4  ;;  %v565_v1 = vsel %vm7482_vm3, %v560_v55, %v564_v49  ;;  %v6091_v6 = vld [vmem:[#allocation2 + $0xe0] sm:$0xf]  ;;  %v1017_v8 = vsel %vm7496_vm5, %v5674_v61, %v1016_v62  ;;  %v1018_v9 = vrot.slane %v1016_v62, 4  ;;  %v5695_v10 = vld [vmem:[%s7335_s17 + $0x48] sm:$0xf] }
  0x88   : > { %858 = vst [vmem:[#allocation2 + $0x16c] sm:$0xf] %v565_v1  ;;  %v6871_v11 = vld [vmem:[#allocation2 + $0xe4] sm:$0xf]  ;;  %v6093_v12 = vld [vmem:[#allocation2 + $0x104] sm:$0xf0]  ;;  %v575_v14 = vsel %vm7482_vm3, %v570_v2, %v574_v60  ;;  %v6092_v27 = vor.u32 %v6875_v7, %v6091_v6 }
  0x89   : > { %v1387_v40 = vsel %vm7482_vm3, %v1382_v35, %v1386_v29  ;;  %v6099_v13 = vld [vmem:[#allocation2 + $0xe8] sm:$0xf]  ;;  %1133 = vst [vmem:[#allocation2 + $0x170] sm:$0xf] %v1017_v8  ;;  %v5696_v15 = vld [vmem:[%s7335_s17 + $0x4c] sm:$0xf]  ;;  %v1020_v17 = vsel %vm7496_vm5, %v1018_v9, %v1019_v63  ;;  %v6096_v29 = vor.u32 %v6871_v11, %v6093_v12 }
  0x8a   : > { %1693 = vst [vmem:[#allocation2 + $0x154] sm:$0xf] %v1387_v40  ;;  %v5734_v16 = vld [vmem:[%s7335_s17 + $0x50] sm:$0x1]  ;;  %v1391_v18 = vrot.slane %v1389_v53, 4  ;;  %v1392_v19 = vshll.u32 %v5732_v43, 16 }
  0x8b   : > { %859 = vst [vmem:[#allocation2 + $0x190] sm:$0xf] %v575_v14  ;;  %v1398_v20 = vshll.u32 %v5733_v3, 16  ;;  %v6876_v21 = vld [vmem:[#allocation2 + $0x108] sm:$0xf0]  ;;  %v1402_v22 = vshrl.u32 %v5733_v3, 16 }
  0x8c   : > { %1134 = vst [vmem:[#allocation2 + $0x194] sm:$0xf] %v1020_v17  ;;  %v1408_v23 = vshll.u32 %v5734_v16, 16  ;;  %v1394_v24 = vrot.slane %v1392_v19, 5  ;;  %v399_v33 = vld [vmem:[%s7335_s17 + $0x48] sm:$0xf] }
  0x8d   : > { %1198 = vst [vmem:[#allocation2 + $0x174] sm:$0xf] %v5695_v10  ;;  %v1404_v28 = vrot.slane %v1402_v22, 4  ;;  %v400_v34 = vld [vmem:[%s7335_s17 + $0x4c] sm:$0xf]  ;;  %v577_v36 = vshrl.u32 %v399_v33, 16 }
  0x8e   : > { %1199 = vst [vmem:[#allocation2 + $0x198] sm:$0xf] %v5696_v15  ;;  %v1410_v32 = vrot.slane %v1408_v23, 5  ;;  %v580_v37 = vshll.u32 %v399_v33, 16  ;;  %v586_v38 = vshll.u32 %v400_v34, 16  ;;  %v590_v40 = vshrl.u32 %v400_v34, 16 }
  0x8f   : > { %v579_v42 = vrot.slane %v577_v36, 4  ;;  %v5735_v46 = vld [vmem:[%s7335_s17 + $0x54] sm:$0xf]  ;;  %v401_v48 = vld [vmem:[%s7335_s17 + $0x50] sm:$0x1] }
  0x90   : > { %v582_v43 = vrot.slane %v580_v37, 5  ;;  %v588_v45 = vrot.slane %v586_v38, 5  ;;  %v592_v49 = vrot.slane %v590_v40, 4  ;;  %v596_v52 = vshll.u32 %v401_v48, 16  ;;  %v898_v54 = vld [vmem:[%s7335_s17 + $0x48] sm:$0xe] }
  0x91   : > { %v1413_v55 = vshrl.u32 %v5735_v46, 16  ;;  %v899_v58 = vld [vmem:[%s7335_s17 + $0x4c] sm:$0xf]  ;;  %v900_v60 = vld [vmem:[%s7335_s17 + $0x50] sm:$0x1]  ;;  %v5675_v62 = vrot.slane %v898_v54, 9 }
  0x92   : > { %v583_v51 = vor.u32 %v582_v43, %v579_v42  ;;  %v593_v53 = vor.u32 %v592_v49, %v588_v45  ;;  %v598_v57 = vrot.slane %v596_v52, 5  ;;  %v1023_v63 = vrot.slane %v899_v58, 5  ;;  %v5736_v1 = vld [vmem:[%s7335_s17 + $0x58] sm:$0xf]  ;;  %v5737_v3 = vld [vmem:[%s7335_s17 + $0x5c] sm:$0x1] }
  0x93   : > { %v1026_v0 = vrot.slane %v900_v60, 5  ;;  %v6127_v6 = vld [vmem:[#allocation2 + $0x128] sm:$0xf]  ;;  %v6884_v7 = vld [vmem:[#allocation2 + $0x148] sm:$0xf0]  ;;  %v1415_v15 = vrot.slane %v1413_v55, 4 }
  0x94   : > { %4400 = vmatmul.bf16.gmra.mxu1 %v6052_v25  ;;  %4489 = vmatmul.bf16.gmra.mxu2 %v6056_v26  ;;  %v1400_v25 = vrot.slane %v1398_v20, 5  ;;  %v6088_v26 = vor.u32 %v6870_v4, %v6085_v5  ;;  %v584_v56 = vrot.slane %v583_v51, 4  ;;  %v594_v61 = vrot.slane %v593_v53, 4  ;;  %v6879_v4 = vld [vmem:[#allocation2 + $0x124] sm:$0xf] }
  0x95   : > { %4578 = vmatmul.bf16.gmra.mxu3 %v6060_v30  ;;  %v6100_v30 = vor.u32 %v6876_v21, %v6099_v13  ;;  %v6121_v5 = vld [vmem:[#allocation2 + $0x144] sm:$0xf0]  ;;  %v1024_v9 = vsel %vm7496_vm5, %v5675_v62, %v1023_v63  ;;  %v1025_v10 = vrot.slane %v1023_v63, 4  ;;  %v5697_v11 = vld [vmem:[%s7335_s17 + $0x54] sm:$0xf]  ;;  %v1416_v16 = vshll.u32 %v5735_v46, 16 }
  0x96   : > { %4667 = vmatmul.bf16.gmra.mxu0 %v6064_v31  ;;  %v1395_v31 = vor.u32 %v1394_v24, %v1391_v18  ;;  %v1405_v35 = vor.u32 %v1404_v28, %v1400_v25  ;;  %v589_v2 = vsel %vm7482_vm3, %v584_v56, %v588_v45  ;;  %v599_v8 = vsel %vm7482_vm3, %v594_v61, %v598_v57  ;;  %v6880_v12 = vld [vmem:[#allocation2 + $0x12c] sm:$0xf]  ;;  %v6129_v13 = vld [vmem:[#allocation2 + $0x14c] sm:$0xf0]  ;;  %v5698_v20 = vld [vmem:[%s7335_s17 + $0x58] sm:$0xf] }
  0x97   : > { %860 = vst [vmem:[#allocation2 + $0x1b4] sm:$0xf] %v589_v2  ;;  %v6135_v14 = vld [vmem:[#allocation2 + $0x130] sm:$0xf]  ;;  %v1422_v17 = vshll.u32 %v5736_v1, 16  ;;  %v1426_v18 = vshrl.u32 %v5736_v1, 16  ;;  %v1027_v19 = vsel %vm7496_vm5, %v1025_v10, %v1026_v0 }
  0x98   : > { %v1396_v39 = vrot.slane %v1395_v31, 4  ;;  %v1406_v41 = vrot.slane %v1405_v35, 4  ;;  %861 = vst [vmem:[#allocation2 + $0x1d8] sm:$0xf] %v599_v8  ;;  %v1432_v21 = vshll.u32 %v5737_v3, 16  ;;  %v1418_v23 = vrot.slane %v1416_v16, 5 }
  0x99   : > { %1135 = vst [vmem:[#allocation2 + $0x1b8] sm:$0xf] %v1024_v9  ;;  %v6885_v22 = vld [vmem:[#allocation2 + $0x150] sm:$0xf0]  ;;  %v1424_v24 = vrot.slane %v1422_v17, 5  ;;  %v7039_v48 = vld [vmem:[%s8818_s1 + $0x1a0] sm:$0xff] }
  0x9a   : > { %v1401_v47 = vsel %vm7482_vm3, %v1396_v39, %v1400_v25  ;;  %v1411_v50 = vsel %vm7482_vm3, %v1406_v41, %v1410_v32  ;;  %1136 = vst [vmem:[#allocation2 + $0x1dc] sm:$0xf] %v1027_v19  ;;  %v1428_v25 = vrot.slane %v1426_v18, 4  ;;  %v1419_v28 = vor.u32 %v1418_v23, %v1415_v15  ;;  %v402_v34 = vld [vmem:[%s7335_s17 + $0x54] sm:$0xf]  ;;  %4830 = vmatpush.bf16.msra.mxu2 %v7039_v48  ;;  %v7031_v60 = vld [vmem:[%s8818_s1 + $0x160] sm:$0xff] }
  0x9b   : > { %1694 = vst [vmem:[#allocation2 + $0x178] sm:$0xf] %v1401_v47  ;;  %v6136_v31 = vor.u32 %v6885_v22, %v6135_v14  ;;  %v1434_v33 = vrot.slane %v1432_v21, 5  ;;  %v403_v35 = vld [vmem:[%s7335_s17 + $0x58] sm:$0xf]  ;;  %v601_v38 = vshrl.u32 %v402_v34, 16  ;;  %4741 = vmatpush.bf16.msra.mxu1 %v7031_v60 }
  0x9c   : > { %1695 = vst [vmem:[#allocation2 + $0x19c] sm:$0xf] %v1411_v50  ;;  %v1429_v32 = vor.u32 %v1428_v25, %v1424_v24  ;;  %v1420_v37 = vrot.slane %v1419_v28, 4  ;;  %v604_v39 = vshll.u32 %v402_v34, 16  ;;  %v610_v41 = vshll.u32 %v403_v35, 16  ;;  %v7047_v50 = vld [vmem:[%s8818_s1 + $0x1e0] sm:$0xff] }
  0x9d   : > { %1200 = vst [vmem:[#allocation2 + $0x1bc] sm:$0xf] %v5697_v11  ;;  %v614_v42 = vshrl.u32 %v403_v35, 16  ;;  %v603_v45 = vrot.slane %v601_v38, 4  ;;  %v5738_v47 = vld [vmem:[%s7335_s17 + $0x60] sm:$0xf]  ;;  %4919 = vmatpush.bf16.msra.mxu3 %v7047_v50 }
  0x9e   : > { %1201 = vst [vmem:[#allocation2 + $0x1e0] sm:$0xf] %v5698_v20  ;;  %v1430_v40 = vrot.slane %v1429_v32, 4  ;;  %v1425_v43 = vsel %vm7482_vm3, %v1420_v37, %v1424_v24  ;;  %v606_v46 = vrot.slane %v604_v39, 5  ;;  %v404_v51 = vld [vmem:[%s7335_s17 + $0x5c] sm:$0x1] }
  0x9f   : > { %1696 = vst [vmem:[#allocation2 + $0x1c0] sm:$0xf] %v1425_v43  ;;  %v612_v54 = vrot.slane %v610_v41, 5  ;;  %v616_v55 = vrot.slane %v614_v42, 4  ;;  %v620_v56 = vshll.u32 %v404_v51, 16  ;;  %v1437_v57 = vshrl.u32 %v5738_v47, 16 }
  0xa0   : > { %v1435_v49 = vsel %vm7482_vm3, %v1430_v40, %v1434_v33  ;;  %v607_v52 = vor.u32 %v606_v46, %v603_v45  ;;  %v901_v62 = vld [vmem:[%s7335_s17 + $0x54] sm:$0xe]  ;;  %v902_v63 = vld [vmem:[%s7335_s17 + $0x58] sm:$0xf]  ;;  %v903_v3 = vld [vmem:[%s7335_s17 + $0x5c] sm:$0x1] }
  0xa1   : > { %1697 = vst [vmem:[#allocation2 + $0x1e4] sm:$0xf] %v1435_v49  ;;  %v617_v1 = vor.u32 %v616_v55, %v612_v54  ;;  %v622_v2 = vrot.slane %v620_v56, 5  ;;  %v1033_v9 = vrot.slane %v903_v3, 5  ;;  %v5699_v10 = vld [vmem:[%s7335_s17 + $0x60] sm:$0xf] }
  0xa2   : > { %v608_v61 = vrot.slane %v607_v52, 4  ;;  %v5739_v11 = vld [vmem:[%s7335_s17 + $0x64] sm:$0xf]  ;;  %v6163_v14 = vld [vmem:[#allocation2 + $0x170] sm:$0xf]  ;;  %v1439_v23 = vrot.slane %v1437_v57, 4 }
  0xa3   : > { %v6893_v15 = vld [vmem:[#allocation2 + $0x190] sm:$0xf0]  ;;  %v618_v16 = vrot.slane %v617_v1, 4  ;;  %v5740_v19 = vld [vmem:[%s7335_s17 + $0x68] sm:$0x1]  ;;  %v1440_v24 = vshll.u32 %v5738_v47, 16 }
  0xa4   : > { %4405 = vmatmul.bf16.gmra.mxu1 %v6088_v26  ;;  %4494 = vmatmul.bf16.gmra.mxu2 %v6092_v27  ;;  %v6124_v26 = vor.u32 %v6879_v4, %v6121_v5  ;;  %v6128_v27 = vor.u32 %v6884_v7, %v6127_v6  ;;  %v5676_v4 = vrot.slane %v901_v62, 9  ;;  %v1030_v5 = vrot.slane %v902_v63, 5  ;;  %v7055_v7 = vld [vmem:[%s8818_s1 + $0x220] sm:$0xff]  ;;  %v6889_v20 = vld [vmem:[#allocation2 + $0x174] sm:$0xf] }
  0xa5   : > { %4583 = vmatmul.bf16.gmra.mxu3 %v6096_v29  ;;  %v613_v8 = vsel %vm7482_vm3, %v608_v61, %v612_v54  ;;  %v6165_v21 = vld [vmem:[#allocation2 + $0x194] sm:$0xf0]  ;;  %5008 = vmatpush.bf16.msra.mxu0 %v7055_v7  ;;  %v623_v25 = vsel %vm7482_vm3, %v618_v16, %v622_v2  ;;  %1202 = vst [vmem:[#allocation2 + $0x204] sm:$0xf] %v5699_v10  ;;  %v1446_v28 = vshll.u32 %v5739_v11, 16  ;;  %v1442_v32 = vrot.slane %v1440_v24, 5 }
  0xa6   : > { %4672 = vmatmul.bf16.gmra.mxu0 %v6100_v30  ;;  %v6132_v30 = vor.u32 %v6880_v12, %v6129_v13  ;;  %v6888_v12 = vld [vmem:[#allocation2 + $0x16c] sm:$0xf]  ;;  %v6157_v13 = vld [vmem:[#allocation2 + $0x18c] sm:$0xf0]  ;;  %862 = vst [vmem:[#allocation2 + $0x1fc] sm:$0xf] %v613_v8  ;;  %v1031_v17 = vsel %vm7496_vm5, %v5676_v4, %v1030_v5  ;;  %v6164_v40 = vor.u32 %v6893_v15, %v6163_v14 }
  0xa7   : > { %v1032_v18 = vrot.slane %v1030_v5, 4  ;;  %v6171_v22 = vld [vmem:[#allocation2 + $0x178] sm:$0xf]  ;;  %1137 = vst [vmem:[#allocation2 + $0x200] sm:$0xf] %v1031_v17  ;;  %v1456_v33 = vshll.u32 %v5740_v19, 16  ;;  %v6160_v39 = vor.u32 %v6888_v12, %v6157_v13  ;;  %v1443_v41 = vor.u32 %v1442_v32, %v1439_v23 }
  0xa8   : > { %863 = vst [vmem:[#allocation2 + $0x220] sm:$0xf] %v623_v25  ;;  %v1448_v35 = vrot.slane %v1446_v28, 5  ;;  %v6168_v43 = vor.u32 %v6889_v20, %v6165_v21  ;;  %v405_v48 = vld [vmem:[%s7335_s17 + $0x60] sm:$0xf] }
  0xa9   : > { %v1458_v47 = vrot.slane %v1456_v33, 5  ;;  %v406_v49 = vld [vmem:[%s7335_s17 + $0x64] sm:$0xf]  ;;  %v1444_v51 = vrot.slane %v1443_v41, 4  ;;  %v625_v52 = vshrl.u32 %v405_v48, 16  ;;  %v628_v54 = vshll.u32 %v405_v48, 16 }
  0xaa   : > { %v634_v55 = vshll.u32 %v406_v49, 16  ;;  %v638_v57 = vshrl.u32 %v406_v49, 16  ;;  %v407_v2 = vld [vmem:[%s7335_s17 + $0x68] sm:$0x1]  ;;  %v5741_v7 = vld [vmem:[%s7335_s17 + $0x6c] sm:$0xf] }
  0xab   : > { %v1449_v60 = vsel %vm7482_vm3, %v1444_v51, %v1448_v35  ;;  %v627_v61 = vrot.slane %v625_v52, 4  ;;  %v630_v62 = vrot.slane %v628_v54, 5  ;;  %v644_v5 = vshll.u32 %v407_v2, 16  ;;  %v905_v10 = vld [vmem:[%s7335_s17 + $0x64] sm:$0xf] }
  0xac   : > { %v636_v63 = vrot.slane %v634_v55, 5  ;;  %1698 = vst [vmem:[#allocation2 + $0x208] sm:$0xf] %v1449_v60  ;;  %v640_v4 = vrot.slane %v638_v57, 4  ;;  %v906_v15 = vld [vmem:[%s7335_s17 + $0x68] sm:$0x1] }
  0xad   : > { %v631_v3 = vor.u32 %v630_v62, %v627_v61  ;;  %v646_v14 = vrot.slane %v644_v5, 5  ;;  %v5742_v16 = vld [vmem:[%s7335_s17 + $0x70] sm:$0xf]  ;;  %v1037_v19 = vrot.slane %v905_v10, 5  ;;  %v1040_v20 = vrot.slane %v906_v15, 5 }
  0xae   : > { %v641_v13 = vor.u32 %v640_v4, %v636_v63  ;;  %v1461_v21 = vshrl.u32 %v5741_v7, 16  ;;  %v6897_v23 = vld [vmem:[#allocation2 + $0x1b4] sm:$0xf]  ;;  %v6193_v24 = vld [vmem:[#allocation2 + $0x1d4] sm:$0xf0]  ;;  %v1464_v28 = vshll.u32 %v5741_v7, 16 }
  0xaf   : > { %v632_v12 = vrot.slane %v631_v3, 4  ;;  %v1039_v33 = vrot.slane %v1037_v19, 4  ;;  %v6207_v41 = vld [vmem:[#allocation2 + $0x1c0] sm:$0xf]  ;;  %v5702_v49 = vld [vmem:[%s7335_s17 + $0x70] sm:$0xf]  ;;  %v6196_v60 = vor.u32 %v6897_v23, %v6193_v24 }
  0xb0   : > { %v6903_v54 = vld [vmem:[#allocation2 + $0x1e0] sm:$0xf0]  ;;  %1205 = vst [vmem:[#allocation2 + $0x270] sm:$0xf] %v5702_v49  ;;  %v408_v7 = vld [vmem:[%s7335_s17 + $0x6c] sm:$0xf] }
  0xb1   : > { %v7689_v29 = vpop.f32.mrf.mxu1  ;;  %v637_v25 = vsel %vm7482_vm3, %v632_v12, %v636_v63  ;;  %v1041_v48 = vsel %vm7496_vm5, %v1039_v33, %v1040_v20  ;;  %v6208_v5 = vor.u32 %v6903_v54, %v6207_v41  ;;  %v652_v15 = vshll.u32 %v408_v7, 16  ;;  %v5744_v23 = vld [vmem:[%s7335_s17 + $0x78] sm:$0xf]  ;;  %v907_v33 = vld [vmem:[%s7335_s17 + $0x6c] sm:$0xe] }
  0xb2   : > { %864 = vst [vmem:[#allocation2 + $0x244] sm:$0xf] %v637_v25  ;;  %v7038_v24 = vld [vmem:[%s8818_s1 + $0x198] sm:$0xff]  ;;  %v908_v41 = vld [vmem:[%s7335_s17 + $0x70] sm:$0xf] }
  0xb3   : > { %v7693_v36 = vpop.f32.mrf.mxu0  ;;  %1140 = vst [vmem:[#allocation2 + $0x26c] sm:$0xf] %v1041_v48  ;;  %v7046_v25 = vld [vmem:[%s8818_s1 + $0x1d8] sm:$0xff]  ;;  %4831 = vmatpush.bf16.msra.mxu2 %v7038_v24  ;;  %v1044_v48 = vrot.slane %v908_v41, 5 }
  0xb4   : > { %4410 = vmatmul.bf16.gmra.mxu1 %v6124_v26  ;;  %4499 = vmatmul.bf16.gmra.mxu2 %v6128_v27  ;;  %v1034_v26 = vsel %vm7496_vm5, %v1032_v18, %v1033_v9  ;;  %v5700_v27 = vld [vmem:[%s7335_s17 + $0x64] sm:$0xf]  ;;  %v904_v9 = vld [vmem:[%s7335_s17 + $0x60] sm:$0xe]  ;;  %v7030_v54 = vld [vmem:[%s8818_s1 + $0x158] sm:$0xff] }
  0xb5   : > { %4588 = vmatmul.bf16.gmra.mxu3 %v6132_v30  ;;  %v1450_v30 = vshrl.u32 %v5739_v11, 16  ;;  %1138 = vst [vmem:[#allocation2 + $0x224] sm:$0xf] %v1034_v26  ;;  %v5677_v18 = vrot.slane %v904_v9, 9  ;;  %v642_v26 = vrot.slane %v641_v13, 4  ;;  %4742 = vmatpush.bf16.msra.mxu1 %v7030_v54 }
  0xb6   : > { %4677 = vmatmul.bf16.gmra.mxu0 %v6136_v31  ;;  %v6894_v31 = vld [vmem:[#allocation2 + $0x198] sm:$0xf0]  ;;  %1203 = vst [vmem:[#allocation2 + $0x228] sm:$0xf] %v5700_v27  ;;  %v5743_v27 = vld [vmem:[%s7335_s17 + $0x74] sm:$0x1]  ;;  %4920 = vmatpush.bf16.msra.mxu3 %v7046_v25 }
  0xb7   : > { %v7707_v53 = vpop.f32.mrf.mxu2  ;;  %v1452_v37 = vrot.slane %v1450_v30, 4  ;;  %v6172_v45 = vor.u32 %v6894_v31, %v6171_v22  ;;  %v6199_v30 = vld [vmem:[#allocation2 + $0x1b8] sm:$0xf]  ;;  %v6902_v31 = vld [vmem:[#allocation2 + $0x1d8] sm:$0xf0]  ;;  %v1038_v32 = vsel %vm7496_vm5, %v5677_v18, %v1037_v19  ;;  %v1480_v52 = vshll.u32 %v5743_v27, 16 }
  0xb8   : > { %v7709_v58 = vpop.f32.mrf.mxu3  ;;  %1139 = vst [vmem:[#allocation2 + $0x248] sm:$0xf] %v1038_v32  ;;  %v6200_v62 = vor.u32 %v6902_v31, %v6199_v30  ;;  %v409_v9 = vld [vmem:[%s7335_s17 + $0x70] sm:$0xf] }
  0xb9   : > { %v7716_v0 = vpop.f32.mrf.mxu1  ;;  %v1453_v46 = vor.u32 %v1452_v37, %v1448_v35  ;;  %v1463_v35 = vrot.slane %v1461_v21, 4  ;;  %v1470_v37 = vshll.u32 %v5742_v16, 16  ;;  %v1482_v2 = vrot.slane %v1480_v52, 5 }
  0xba   : > { %v662_v18 = vshrl.u32 %v409_v9, 16  ;;  %v654_v21 = vrot.slane %v652_v15, 5  ;;  %v6243_v15 = vld [vmem:[#allocation2 + $0x208] sm:$0xf] }
  0xbb   : > { %v7719_v6 = vpop.f32.mrf.mxu0  ;;  %v1454_v56 = vrot.slane %v1453_v46, 4  ;;  %v1466_v46 = vrot.slane %v1464_v28, 5  ;;  %v1472_v51 = vrot.slane %v1470_v37, 5 }
  0xbc   : > { %v664_v30 = vrot.slane %v662_v18, 4 }
  0xbd   : > { %v1459_v1 = vsel %vm7482_vm3, %v1454_v56, %v1458_v47  ;;  %v1474_v47 = vshrl.u32 %v5742_v16, 16  ;;  %v1467_v55 = vor.u32 %v1466_v46, %v1463_v35  ;;  %v658_v16 = vshll.u32 %v409_v9, 16 }
  0xbe   : > { %1699 = vst [vmem:[#allocation2 + $0x22c] sm:$0xf] %v1459_v1  ;;  %v1485_v35 = vshrl.u32 %v5744_v23, 16 }
  0xbf   : > { %v7736_v34 = vpop.f32.mrf.mxu2  ;;  %v1476_v56 = vrot.slane %v1474_v47, 4  ;;  %v1468_v63 = vrot.slane %v1467_v55, 4  ;;  %v660_v28 = vrot.slane %v658_v16, 5  ;;  %v7054_v55 = vld [vmem:[%s8818_s1 + $0x218] sm:$0xff] }
  0xc0   : > { %v7738_v38 = vpop.f32.mrf.mxu3  ;;  %v1487_v9 = vrot.slane %v1485_v35, 4  ;;  %5009 = vmatpush.bf16.msra.mxu0 %v7054_v55 }
  0xc1   : > { %v7740_v42 = vpop.f32.mrf.mxu1  ;;  %v1477_v1 = vor.u32 %v1476_v56, %v1472_v51  ;;  %v1473_v12 = vsel %vm7482_vm3, %v1468_v63, %v1472_v51  ;;  %v5745_v51 = vld [vmem:[%s7335_s17 + $0x7c] sm:$0xf] }
  0xc2   : > { %1700 = vst [vmem:[#allocation2 + $0x250] sm:$0xf] %v1473_v12  ;;  %v6906_v63 = vld [vmem:[#allocation2 + $0x1fc] sm:$0xf]  ;;  %v1494_v12 = vshll.u32 %v5745_v51, 16 }
  0xc3   : > { %v7744_v50 = vpop.f32.mrf.mxu0  ;;  %v1478_v13 = vrot.slane %v1477_v1, 4  ;;  %v6229_v1 = vld [vmem:[#allocation2 + $0x21c] sm:$0xf0] }
  0xc4   : > { %4415 = vmatmul.bf16.gmra.mxu1 %v6160_v39  ;;  %4504 = vmatmul.bf16.gmra.mxu2 %v6164_v40  ;;  %v6898_v39 = vld [vmem:[#allocation2 + $0x1bc] sm:$0xf]  ;;  %v6201_v40 = vld [vmem:[#allocation2 + $0x1dc] sm:$0xf0]  ;;  %v1496_v25 = vrot.slane %v1494_v12, 5 }
  0xc5   : > { %4593 = vmatmul.bf16.gmra.mxu3 %v6168_v43  ;;  %v647_v43 = vsel %vm7482_vm3, %v642_v26, %v646_v14  ;;  %v6204_v4 = vor.u32 %v6898_v39, %v6201_v40  ;;  %v649_v14 = vshrl.u32 %v408_v7, 16  ;;  %v1483_v19 = vsel %vm7482_vm3, %v1478_v13, %v1482_v2  ;;  %v410_v26 = vld [vmem:[%s7335_s17 + $0x74] sm:$0x1]  ;;  %v6235_v2 = vld [vmem:[#allocation2 + $0x200] sm:$0xf] }
  0xc6   : > { %4682 = vmatmul.bf16.gmra.mxu0 %v6172_v45  ;;  %v5701_v45 = vld [vmem:[%s7335_s17 + $0x6c] sm:$0xf]  ;;  %865 = vst [vmem:[#allocation2 + $0x268] sm:$0xf] %v647_v43  ;;  %v668_v32 = vshll.u32 %v410_v26, 16  ;;  %v665_v40 = vor.u32 %v664_v30, %v660_v28  ;;  %v1046_v7 = vrot.slane %v1044_v48, 4 }
  0xc7   : > { %v7752_v8 = vpop.f32.mrf.mxu2  ;;  %1204 = vst [vmem:[#allocation2 + $0x24c] sm:$0xf] %v5701_v45  ;;  %v651_v20 = vrot.slane %v649_v14, 4  ;;  %v909_v43 = vld [vmem:[%s7335_s17 + $0x74] sm:$0x1]  ;;  %v5678_v45 = vrot.slane %v907_v33, 9  ;;  %v6232_v33 = vor.u32 %v6906_v63, %v6229_v1 }
  0xc8   : > { %v7756_v11 = vpop.f32.mrf.mxu3  ;;  %1701 = vst [vmem:[#allocation2 + $0x274] sm:$0xf] %v1483_v19  ;;  %v670_v47 = vrot.slane %v668_v32, 5  ;;  %v1047_v49 = vrot.slane %v909_v43, 5  ;;  %v6907_v13 = vld [vmem:[#allocation2 + $0x204] sm:$0xf] }
  0xc9   : > { %v7760_v17 = vpop.f32.mrf.mxu1  ;;  %v655_v27 = vor.u32 %v654_v21, %v651_v20  ;;  %v6237_v14 = vld [vmem:[#allocation2 + $0x224] sm:$0xf0]  ;;  %v6912_v16 = vld [vmem:[#allocation2 + $0x228] sm:$0xf0]  ;;  %v5703_v19 = vld [vmem:[%s7335_s17 + $0x78] sm:$0xf] }
  0xca   : > { %v5704_v20 = vld [vmem:[%s7335_s17 + $0x7c] sm:$0xf]  ;;  %v1048_v21 = vsel %vm7496_vm5, %v1046_v7, %v1047_v49  ;;  %v1498_v26 = vshrl.u32 %v5745_v51, 16  ;;  %1206 = vst [vmem:[#allocation2 + $0x294] sm:$0xf] %v5703_v19  ;;  %v6240_v41 = vor.u32 %v6907_v13, %v6237_v14  ;;  %v6244_v43 = vor.u32 %v6912_v16, %v6243_v15 }
  0xcb   : > { %v7762_v22 = vpop.f32.mrf.mxu0  ;;  %v656_v39 = vrot.slane %v655_v27, 4  ;;  %1142 = vst [vmem:[#allocation2 + $0x2b4] sm:$0xf] %v1048_v21  ;;  %v412_v49 = vld [vmem:[%s7335_s17 + $0x7c] sm:$0xf] }
  0xcc   : > { %1207 = vst [vmem:[#allocation2 + $0x2b8] sm:$0xf] %v5704_v20  ;;  %v686_v63 = vshrl.u32 %v412_v49, 16  ;;  %v911_v14 = vld [vmem:[%s7335_s17 + $0x7c] sm:$0xf] }
  0xcd   : > { %v661_v56 = vsel %vm7482_vm3, %v656_v39, %v660_v28  ;;  %v1500_v39 = vrot.slane %v1498_v26, 4  ;;  %v5747_v15 = vld [vmem:[%s7335_s17 + $0x84] sm:$0xf]  ;;  %v910_v19 = vld [vmem:[%s7335_s17 + $0x78] sm:$0xe] }
  0xce   : > { %866 = vst [vmem:[#allocation2 + $0x28c] sm:$0xf] %v661_v56  ;;  %v688_v12 = vrot.slane %v686_v63, 4 }
  0xcf   : > { %v7775_v57 = vpop.f32.mrf.mxu2  ;;  %v1501_v54 = vor.u32 %v1500_v39, %v1496_v25  ;;  %v1509_v39 = vshrl.u32 %v5747_v15, 16 }
  0xd0   : > { %v7777_v61 = vpop.f32.mrf.mxu3 }
  0xd1   : > { %v7779_v3 = vpop.f32.mrf.mxu1  ;;  %v1502_v1 = vrot.slane %v1501_v54, 4  ;;  %v1512_v54 = vshll.u32 %v5747_v15, 16  ;;  %v5706_v15 = vld [vmem:[%s7335_s17 + $0x88] sm:$0xf] }
  0xd2   : > { %1209 = vst [vmem:[#allocation2 + $0x300] sm:$0xf] %v5706_v15 }
  0xd3   : > { %v7783_v10 = vpop.f32.mrf.mxu0 }
  0xd4   : > { %4420 = vmatmul.bf16.gmra.mxu1 %v6196_v60  ;;  %4509 = vmatmul.bf16.gmra.mxu2 %v6200_v62  ;;  %v666_v60 = vrot.slane %v665_v40, 4  ;;  %v1488_v62 = vshll.u32 %v5744_v23, 16  ;;  %v5746_v23 = vld [vmem:[%s7335_s17 + $0x80] sm:$0x1] }
  0xd5   : > { %4598 = vmatmul.bf16.gmra.mxu3 %v6204_v4  ;;  %v6911_v4 = vld [vmem:[#allocation2 + $0x220] sm:$0xf0]  ;;  %v1504_v27 = vshll.u32 %v5746_v23, 16 }
  0xd6   : > { %4687 = vmatmul.bf16.gmra.mxu0 %v6208_v5  ;;  %v1045_v5 = vsel %vm7496_vm5, %v5678_v45, %v1044_v48  ;;  %v671_v18 = vsel %vm7482_vm3, %v666_v60, %v670_v47  ;;  %v1490_v24 = vrot.slane %v1488_v62, 5  ;;  %v6236_v35 = vor.u32 %v6911_v4, %v6235_v2  ;;  %v411_v48 = vld [vmem:[%s7335_s17 + $0x78] sm:$0xf]  ;;  %v413_v4 = vld [vmem:[%s7335_s17 + $0x80] sm:$0x1] }
  0xd7   : > { %v7797_v31 = vpop.f32.mrf.mxu2  ;;  %1141 = vst [vmem:[#allocation2 + $0x290] sm:$0xf] %v1045_v5  ;;  %v1506_v47 = vrot.slane %v1504_v27, 5  ;;  %v673_v55 = vshrl.u32 %v411_v48, 16  ;;  %v676_v56 = vshll.u32 %v411_v48, 16  ;;  %v682_v60 = vshll.u32 %v412_v49, 16 }
  0xd8   : > { %v7800_v37 = vpop.f32.mrf.mxu3  ;;  %867 = vst [vmem:[#allocation2 + $0x2b0] sm:$0xf] %v671_v18  ;;  %v1491_v30 = vor.u32 %v1490_v24, %v1487_v9  ;;  %v692_v13 = vshll.u32 %v413_v4, 16  ;;  %v912_v24 = vld [vmem:[%s7335_s17 + $0x80] sm:$0x1] }
  0xd9   : > { %v7804_v46 = vpop.f32.mrf.mxu1  ;;  %v675_v2 = vrot.slane %v673_v55, 4  ;;  %v678_v5 = vrot.slane %v676_v56, 5  ;;  %v684_v7 = vrot.slane %v682_v60, 5  ;;  %v1507_v9 = vsel %vm7482_vm3, %v1502_v1, %v1506_v47  ;;  %v5705_v48 = vld [vmem:[%s7335_s17 + $0x84] sm:$0xf] }
  0xda   : > { %v1492_v45 = vrot.slane %v1491_v30, 4  ;;  %1703 = vst [vmem:[#allocation2 + $0x2bc] sm:$0xf] %v1507_v9  ;;  %v694_v23 = vrot.slane %v692_v13, 5  ;;  %v1051_v30 = vrot.slane %v911_v14, 5  ;;  %v1511_v1 = vrot.slane %v1509_v39, 4 }
  0xdb   : > { %v7807_v52 = vpop.f32.mrf.mxu0  ;;  %v679_v18 = vor.u32 %v678_v5, %v675_v2  ;;  %v689_v21 = vor.u32 %v688_v12, %v684_v7  ;;  %v5749_v49 = vld [vmem:[%s7335_s17 + $0x8c] sm:$0x1]  ;;  %v6271_v55 = vld [vmem:[#allocation2 + $0x248] sm:$0xf]  ;;  %1208 = vst [vmem:[#allocation2 + $0x2dc] sm:$0xf] %v5705_v48 }
  0xdc   : > { %v1497_v62 = vsel %vm7482_vm3, %v1492_v45, %v1496_v25  ;;  %v5679_v25 = vrot.slane %v910_v19, 9  ;;  %v6265_v45 = vld [vmem:[#allocation2 + $0x264] sm:$0xf0]  ;;  %v6920_v56 = vld [vmem:[#allocation2 + $0x268] sm:$0xf0]  ;;  %v1053_v63 = vrot.slane %v1051_v30, 4 }
  0xdd   : > { %1702 = vst [vmem:[#allocation2 + $0x298] sm:$0xf] %v1497_v62  ;;  %v680_v27 = vrot.slane %v679_v18, 4  ;;  %v690_v47 = vrot.slane %v689_v21, 4  ;;  %v6916_v2 = vld [vmem:[#allocation2 + $0x24c] sm:$0xf] }
  0xde   : > { %v1052_v62 = vsel %vm7496_vm5, %v5679_v25, %v1051_v30  ;;  %v6273_v4 = vld [vmem:[#allocation2 + $0x26c] sm:$0xf0]  ;;  %v1514_v12 = vrot.slane %v1512_v54, 5  ;;  %v1528_v18 = vshll.u32 %v5749_v49, 16  ;;  %v6921_v19 = vld [vmem:[#allocation2 + $0x270] sm:$0xf0] }
  0xdf   : > { %v7826_v28 = vpop.f32.mrf.mxu2  ;;  %v685_v60 = vsel %vm7482_vm3, %v680_v27, %v684_v7  ;;  %v6279_v5 = vld [vmem:[#allocation2 + $0x250] sm:$0xf]  ;;  %v695_v9 = vsel %vm7482_vm3, %v690_v47, %v694_v23  ;;  %1143 = vst [vmem:[#allocation2 + $0x2d8] sm:$0xf] %v1052_v62  ;;  %v6276_v49 = vor.u32 %v6916_v2, %v6273_v4  ;;  %v415_v62 = vld [vmem:[%s7335_s17 + $0x88] sm:$0xf] }
  0xe0   : > { %v7828_v32 = vpop.f32.mrf.mxu3  ;;  %868 = vst [vmem:[#allocation2 + $0x2d4] sm:$0xf] %v685_v60  ;;  %v1515_v21 = vor.u32 %v1514_v12, %v1511_v1  ;;  %v6280_v54 = vor.u32 %v6921_v19, %v6279_v5  ;;  %v414_v60 = vld [vmem:[%s7335_s17 + $0x84] sm:$0xf]  ;;  %v7037_v5 = vld [vmem:[%s8818_s1 + $0x190] sm:$0xff] }
  0xe1   : > { %v7830_v40 = vpop.f32.mrf.mxu1  ;;  %869 = vst [vmem:[#allocation2 + $0x2f8] sm:$0xf] %v695_v9  ;;  %v697_v9 = vshrl.u32 %v414_v60, 16  ;;  %v7045_v12 = vld [vmem:[%s8818_s1 + $0x1d0] sm:$0xff]  ;;  %4832 = vmatpush.bf16.msra.mxu2 %v7037_v5 }
  0xe2   : > { %v1516_v39 = vrot.slane %v1515_v21, 4  ;;  %4921 = vmatpush.bf16.msra.mxu3 %v7045_v12  ;;  %v913_v21 = vld [vmem:[%s7335_s17 + $0x84] sm:$0xe]  ;;  %v6929_v12 = vld [vmem:[#allocation2 + $0x2b0] sm:$0xf0] }
  0xe3   : > { %v7834_v51 = vpop.f32.mrf.mxu0  ;;  %v699_v4 = vrot.slane %v697_v9, 4 }
  0xe4   : > { %4425 = vmatmul.bf16.gmra.mxu1 %v6232_v33  ;;  %4514 = vmatmul.bf16.gmra.mxu2 %v6236_v35  ;;  %v1054_v33 = vrot.slane %v912_v24, 5  ;;  %v5748_v35 = vld [vmem:[%s7335_s17 + $0x88] sm:$0xf] }
  0xe5   : > { %4603 = vmatmul.bf16.gmra.mxu3 %v6240_v41  ;;  %v1518_v13 = vshll.u32 %v5748_v35, 16  ;;  %v1522_v14 = vshrl.u32 %v5748_v35, 16  ;;  %v6272_v35 = vor.u32 %v6920_v56, %v6271_v55  ;;  %v700_v55 = vshll.u32 %v414_v60, 16 }
  0xe6   : > { %4692 = vmatmul.bf16.gmra.mxu0 %v6244_v43  ;;  %v6915_v43 = vld [vmem:[#allocation2 + $0x244] sm:$0xf]  ;;  %v1055_v7 = vsel %vm7496_vm5, %v1053_v63, %v1054_v33  ;;  %v1530_v33 = vrot.slane %v1528_v18, 5  ;;  %v706_v56 = vshll.u32 %v415_v62, 16 }
  0xe7   : > { %v7843_v16 = vpop.f32.mrf.mxu2  ;;  %v1520_v24 = vrot.slane %v1518_v13, 5  ;;  %v1524_v25 = vrot.slane %v1522_v14, 4  ;;  %v6268_v23 = vor.u32 %v6915_v43, %v6265_v45  ;;  %1144 = vst [vmem:[#allocation2 + $0x2fc] sm:$0xf] %v1055_v7  ;;  %v416_v13 = vld [vmem:[%s7335_s17 + $0x8c] sm:$0x1] }
  0xe8   : > { %v7846_v20 = vpop.f32.mrf.mxu3  ;;  %v702_v14 = vrot.slane %v700_v55, 5  ;;  %v708_v7 = vrot.slane %v706_v56, 5  ;;  %v716_v19 = vshll.u32 %v416_v13, 16  ;;  %v6924_v55 = vld [vmem:[#allocation2 + $0x28c] sm:$0xf] }
  0xe9   : > { %8829 = vst [vmem:[#allocation6_spill] sm:$0xff] %v7846_v20  ;;  %v7849_v26 = vpop.f32.mrf.mxu1  ;;  %v1525_v47 = vor.u32 %v1524_v25, %v1520_v24  ;;  %v1521_v43 = vsel %vm7482_vm3, %v1516_v39, %v1520_v24  ;;  %v5750_v24 = vld [vmem:[%s7335_s17 + $0x90] sm:$0xf]  ;;  %v914_v39 = vld [vmem:[%s7335_s17 + $0x88] sm:$0xf] }
  0xea   : > { %1704 = vst [vmem:[#allocation2 + $0x2e0] sm:$0xf] %v1521_v43  ;;  %v1058_v60 = vrot.slane %v914_v39, 5  ;;  %v6301_v56 = vld [vmem:[#allocation2 + $0x2ac] sm:$0xf0]  ;;  %v1533_v5 = vshrl.u32 %v5750_v24, 16 }
  0xeb   : > { %v7852_v41 = vpop.f32.mrf.mxu0  ;;  %v1526_v45 = vrot.slane %v1525_v47, 4  ;;  %v915_v47 = vld [vmem:[%s7335_s17 + $0x8c] sm:$0x1]  ;;  %v5752_v39 = vld [vmem:[%s7335_s17 + $0x98] sm:$0x1] }
  0xed   : > { %v1531_v2 = vsel %vm7482_vm3, %v1526_v45, %v1530_v33  ;;  %v5680_v33 = vrot.slane %v913_v21, 9  ;;  %v6315_v21 = vld [vmem:[#allocation2 + $0x298] sm:$0xf] }
  0xee   : > { %1705 = vst [vmem:[#allocation2 + $0x304] sm:$0xf] %v1531_v2  ;;  %v6307_v2 = vld [vmem:[#allocation2 + $0x290] sm:$0xf] }
  0xef   : > { %v7865_v27 = vpop.f32.mrf.mxu2  ;;  %v6308_v20 = vor.u32 %v6929_v12, %v6307_v2  ;;  %v418_v2 = vld [vmem:[%s7335_s17 + $0x94] sm:$0xf] }
  0xf0   : > { %v7867_v30 = vpop.f32.mrf.mxu3 }
  0xf1   : > { %8830 = vst [vmem:[#allocation7_spill] sm:$0xff] %v7867_v30  ;;  %v4391_v48 = vpop.f32.mrf.mxu1 }
  0xf2   : > { %v4392_v63 = vadd.f32 %v4391_v48, %v7693_v36  ;;  %v710_v36 = vshrl.u32 %v415_v62, 16  ;;  %v1061_v62 = vrot.slane %v915_v47, 5 }
  0xf3   : > { %v7872_v1 = vpop.f32.mrf.mxu0 }
  0xf4   : > { %4430 = vmatmul.bf16.gmra.mxu1 %v6268_v23  ;;  %4519 = vmatmul.bf16.gmra.mxu2 %v6272_v35  ;;  %v712_v18 = vrot.slane %v710_v36, 4  ;;  %v703_v35 = vor.u32 %v702_v14, %v699_v4  ;;  %v7053_v4 = vld [vmem:[%s8818_s1 + $0x210] sm:$0xff]  ;;  %v1060_v14 = vrot.slane %v1058_v60, 4 }
  0xf5   : > { %4608 = vmatmul.bf16.gmra.mxu3 %v6276_v49  ;;  %5010 = vmatpush.bf16.msra.mxu0 %v7053_v4 }
  0xf6   : > { %4697 = vmatmul.bf16.gmra.mxu0 %v6280_v54  ;;  %v713_v49 = vor.u32 %v712_v18, %v708_v7  ;;  %v718_v54 = vrot.slane %v716_v19, 5  ;;  %v704_v36 = vrot.slane %v703_v35, 4  ;;  %v6925_v18 = vld [vmem:[#allocation2 + $0x294] sm:$0xf]  ;;  %v6309_v19 = vld [vmem:[#allocation2 + $0x2b4] sm:$0xf0] }
  0xf7   : > { %v4480_v15 = vpop.f32.mrf.mxu2  ;;  %v5707_v35 = vld [vmem:[%s7335_s17 + $0x90] sm:$0xf] }
  0xf8   : > { %v4481_v25 = vadd.f32 %v4480_v15, %v4392_v63  ;;  %v4569_v23 = vpop.f32.mrf.mxu3  ;;  %v7029_v63 = vld [vmem:[%s8818_s1 + $0x150] sm:$0xff]  ;;  %v714_v13 = vrot.slane %v713_v49, 4  ;;  %1210 = vst [vmem:[#allocation2 + $0x324] sm:$0xf] %v5707_v35 }
  0xf9   : > { %v4393_v48 = vpop.f32.mrf.mxu1  ;;  %v5751_v15 = vld [vmem:[%s7335_s17 + $0x94] sm:$0xf]  ;;  %4743 = vmatpush.bf16.msra.mxu1 %v7029_v63  ;;  %v1536_v63 = vshll.u32 %v5750_v24, 16 }
  0xfa   : > { %v4570_v43 = vadd.f32 %v4569_v23, %v4481_v25  ;;  %v4394_v45 = vadd.f32 %v4393_v48, %v7719_v6  ;;  %v1059_v6 = vsel %vm7496_vm5, %v5680_v33, %v1058_v60  ;;  %v6930_v25 = vld [vmem:[#allocation2 + $0x2b8] sm:$0xf0]  ;;  %v709_v23 = vsel %vm7482_vm3, %v704_v36, %v708_v7  ;;  %v5708_v49 = vld [vmem:[%s7335_s17 + $0x94] sm:$0xf] }
  0xfb   : > { %v7890_v9 = vpop.f32.mrf.mxu0  ;;  %1145 = vst [vmem:[#allocation2 + $0x320] sm:$0xf] %v1059_v6  ;;  %v719_v33 = vsel %vm7482_vm3, %v714_v13, %v718_v54  ;;  %v1062_v48 = vsel %vm7496_vm5, %v1060_v14, %v1061_v62  ;;  %v1535_v60 = vrot.slane %v1533_v5, 4  ;;  %v1542_v4 = vshll.u32 %v5751_v15, 16 }
  0xfc   : > { %v7906_v47 = vadd.f32 %v7872_v1, %v4570_v43  ;;  %870 = vst [vmem:[#allocation2 + $0x31c] sm:$0xf] %v709_v23  ;;  %v1546_v30 = vshrl.u32 %v5751_v15, 16  ;;  %v1552_v7 = vshll.u32 %v5752_v39, 16  ;;  %v6304_v6 = vor.u32 %v6924_v55, %v6301_v56 }
  0xfd   : > { %871 = vst [vmem:[#allocation2 + $0x340] sm:$0xf] %v719_v33  ;;  %v1538_v54 = vrot.slane %v1536_v63, 5  ;;  %v1544_v13 = vrot.slane %v1542_v4, 5  ;;  %v6312_v14 = vor.u32 %v6925_v18, %v6309_v19  ;;  %v6316_v5 = vor.u32 %v6930_v25, %v6315_v21  ;;  %v417_v33 = vld [vmem:[%s7335_s17 + $0x90] sm:$0xf] }
  0xfe   : > { %1146 = vst [vmem:[#allocation2 + $0x344] sm:$0xf] %v1062_v48  ;;  %v1548_v23 = vrot.slane %v1546_v30, 4  ;;  %v1554_v24 = vrot.slane %v1552_v7, 5  ;;  %v721_v12 = vshrl.u32 %v417_v33, 16  ;;  %v724_v35 = vshll.u32 %v417_v33, 16 }
  0xff   : > { %v4482_v36 = vpop.f32.mrf.mxu2  ;;  %1211 = vst [vmem:[#allocation2 + $0x348] sm:$0xf] %v5708_v49  ;;  %v1539_v56 = vor.u32 %v1538_v54, %v1535_v60  ;;  %v730_v48 = vshll.u32 %v418_v2, 16  ;;  %v734_v63 = vshrl.u32 %v418_v2, 16  ;;  %v916_v54 = vld [vmem:[%s7335_s17 + $0x90] sm:$0xe] }
 0x100   : > { %v4483_v1 = vadd.f32 %v4482_v36, %v4394_v45  ;;  %v4571_v43 = vpop.f32.mrf.mxu3  ;;  %v1549_v45 = vor.u32 %v1548_v23, %v1544_v13  ;;  %v723_v21 = vrot.slane %v721_v12, 4  ;;  %v726_v25 = vrot.slane %v724_v35, 5  ;;  %v5754_v12 = vld [vmem:[%s7335_s17 + $0xa0] sm:$0xf]  ;;  %v6933_v35 = vld [vmem:[#allocation2 + $0x2d4] sm:$0xf] }
 0x101   : > { %v4396_v62 = vpop.f32.mrf.mxu1  ;;  %v1540_v30 = vrot.slane %v1539_v56, 4 }
 0x102   : > { %v4572_v15 = vadd.f32 %v4571_v43, %v4483_v1  ;;  %v4397_v39 = vadd.f32 %v4396_v62, %v7744_v50  ;;  %v1550_v18 = vrot.slane %v1549_v45, 4  ;;  %v419_v50 = vld [vmem:[%s7335_s17 + $0x98] sm:$0x1]  ;;  %v727_v7 = vor.u32 %v726_v25, %v723_v21  ;;  %v5710_v25 = vld [vmem:[%s7335_s17 + $0xa0] sm:$0xf] }
 0x103   : > { %v7915_v55 = vpop.f32.mrf.mxu0  ;;  %v1545_v49 = vsel %vm7482_vm3, %v1540_v30, %v1544_v13  ;;  %v740_v36 = vshll.u32 %v419_v50, 16  ;;  %v5681_v45 = vrot.slane %v916_v54, 9  ;;  %v6938_v30 = vld [vmem:[#allocation2 + $0x2f8] sm:$0xf0]  ;;  %1213 = vst [vmem:[#allocation2 + $0x390] sm:$0xf] %v5710_v25 }
 0x104   : > { %4435 = vmatmul.bf16.gmra.mxu1 %v6304_v6  ;;  %4524 = vmatmul.bf16.gmra.mxu2 %v6308_v20  ;;  %v7919_v19 = vadd.f32 %v7890_v9, %v4572_v15  ;;  %v1555_v60 = vsel %vm7482_vm3, %v1550_v18, %v1554_v24  ;;  %v732_v20 = vrot.slane %v730_v48, 5  ;;  %1706 = vst [vmem:[#allocation2 + $0x328] sm:$0xf] %v1545_v49  ;;  %v736_v9 = vrot.slane %v734_v63, 4  ;;  %v917_v6 = vld [vmem:[%s7335_s17 + $0x94] sm:$0xf] }
 0x105   : > { %4613 = vmatmul.bf16.gmra.mxu3 %v6312_v14  ;;  %1707 = vst [vmem:[#allocation2 + $0x34c] sm:$0xf] %v1555_v60  ;;  %v728_v13 = vrot.slane %v727_v7, 4  ;;  %v742_v14 = vrot.slane %v740_v36, 5  ;;  %v5753_v24 = vld [vmem:[%s7335_s17 + $0x9c] sm:$0xf] }
 0x106   : > { %8831 = vst [vmem:[#allocation8_spill] sm:$0xff] %v7919_v19  ;;  %4702 = vmatmul.bf16.gmra.mxu0 %v6316_v5  ;;  %v737_v62 = vor.u32 %v736_v9, %v732_v20  ;;  %v918_v5 = vld [vmem:[%s7335_s17 + $0x98] sm:$0x1]  ;;  %v1065_v2 = vrot.slane %v917_v6, 5  ;;  %v5755_v49 = vld [vmem:[%s7335_s17 + $0xa4] sm:$0x1] }
 0x107   : > { %v4485_v4 = vpop.f32.mrf.mxu2  ;;  %v6337_v48 = vld [vmem:[#allocation2 + $0x2f4] sm:$0xf0]  ;;  %v733_v18 = vsel %vm7482_vm3, %v728_v13, %v732_v20  ;;  %v1068_v21 = vrot.slane %v918_v5, 5  ;;  %v6934_v60 = vld [vmem:[#allocation2 + $0x2dc] sm:$0xf]  ;;  %v1557_v36 = vshrl.u32 %v5753_v24, 16 }
 0x108   : > { %v4486_v1 = vadd.f32 %v4485_v4, %v4397_v39  ;;  %v4574_v43 = vpop.f32.mrf.mxu3  ;;  %v5709_v39 = vld [vmem:[%s7335_s17 + $0x9c] sm:$0xf]  ;;  %v6343_v63 = vld [vmem:[#allocation2 + $0x2d8] sm:$0xf]  ;;  %v738_v50 = vrot.slane %v737_v62, 4  ;;  %v1066_v7 = vsel %vm7496_vm5, %v5681_v45, %v1065_v2  ;;  %v1067_v9 = vrot.slane %v1065_v2, 4 }
 0x109   : > { %v4398_v23 = vpop.f32.mrf.mxu1  ;;  %1212 = vst [vmem:[#allocation2 + $0x36c] sm:$0xf] %v5709_v39  ;;  %v6351_v4 = vld [vmem:[#allocation2 + $0x2e0] sm:$0xf]  ;;  %v1560_v6 = vshll.u32 %v5753_v24, 16  ;;  %v1566_v20 = vshll.u32 %v5754_v12, 16 }
 0x10a   : > { %v4575_v33 = vadd.f32 %v4574_v43, %v4486_v1  ;;  %v4399_v15 = vadd.f32 %v4398_v23, %v7762_v22  ;;  %v6345_v22 = vld [vmem:[#allocation2 + $0x2fc] sm:$0xf0]  ;;  %872 = vst [vmem:[#allocation2 + $0x364] sm:$0xf] %v733_v18  ;;  %v743_v1 = vsel %vm7482_vm3, %v738_v50, %v742_v14  ;;  %v1570_v43 = vshrl.u32 %v5754_v12, 16 }
 0x10b   : > { %v7931_v56 = vpop.f32.mrf.mxu0  ;;  %1147 = vst [vmem:[#allocation2 + $0x368] sm:$0xf] %v1066_v7  ;;  %v1576_v54 = vshll.u32 %v5755_v49, 16  ;;  %v6939_v23 = vld [vmem:[#allocation2 + $0x300] sm:$0xf0]  ;;  %v1069_v13 = vsel %vm7496_vm5, %v1067_v9, %v1068_v21  ;;  %v1559_v62 = vrot.slane %v1557_v36, 4  ;;  %v6340_v12 = vor.u32 %v6933_v35, %v6337_v48 }
 0x10c   : > { %873 = vst [vmem:[#allocation2 + $0x388] sm:$0xf] %v743_v1  ;;  %v1562_v5 = vrot.slane %v1560_v6, 5  ;;  %v7946_v39 = vadd.f32 %v7915_v55, %v4575_v33  ;;  %v1568_v24 = vrot.slane %v1566_v20, 5  ;;  %v1572_v14 = vrot.slane %v1570_v43, 4 }
 0x10d   : > { %1148 = vst [vmem:[#allocation2 + $0x38c] sm:$0xf] %v1069_v13  ;;  %v6344_v50 = vor.u32 %v6938_v30, %v6343_v63  ;;  %v6348_v1 = vor.u32 %v6934_v60, %v6345_v22  ;;  %v6352_v21 = vor.u32 %v6939_v23, %v6351_v4  ;;  %v1578_v36 = vrot.slane %v1576_v54, 5  ;;  %v420_v6 = vld [vmem:[%s7335_s17 + $0x9c] sm:$0xf]  ;;  %v7044_v4 = vld [vmem:[%s8818_s1 + $0x1c8] sm:$0xff] }
 0x10e   : > { %8832 = vst [vmem:[#allocation9_spill] sm:$0xff] %v7946_v39  ;;  %v1563_v49 = vor.u32 %v1562_v5, %v1559_v62  ;;  %v1573_v9 = vor.u32 %v1572_v14, %v1568_v24  ;;  %v421_v55 = vld [vmem:[%s7335_s17 + $0xa0] sm:$0xf]  ;;  %v745_v43 = vshrl.u32 %v420_v6, 16  ;;  %v748_v35 = vshll.u32 %v420_v6, 16  ;;  %4922 = vmatpush.bf16.msra.mxu3 %v7044_v4 }
 0x10f   : > { %v4487_v45 = vpop.f32.mrf.mxu2  ;;  %v754_v48 = vshll.u32 %v421_v55, 16  ;;  %v758_v63 = vshrl.u32 %v421_v55, 16  ;;  %v7967_v54 = vld [vmem:[%s7335_s17 + $0xa8] sm:$0xf]  ;;  %v5757_v4 = vld [vmem:[%s7335_s17 + $0xac] sm:$0xf] }
 0x110   : > { %v4488_v2 = vadd.f32 %v4487_v45, %v4399_v15  ;;  %v4576_v18 = vpop.f32.mrf.mxu3  ;;  %v1564_v20 = vrot.slane %v1563_v49, 4  ;;  %v1574_v15 = vrot.slane %v1573_v9, 4  ;;  %v747_v25 = vrot.slane %v745_v43, 4  ;;  %v6947_v43 = vld [vmem:[#allocation2 + $0x340] sm:$0xf0] }
 0x111   : > { %v4401_v7 = vpop.f32.mrf.mxu1  ;;  %v750_v13 = vrot.slane %v748_v35, 5  ;;  %v756_v62 = vrot.slane %v754_v48, 5  ;;  %v760_v5 = vrot.slane %v758_v63, 4  ;;  %v7052_v35 = vld [vmem:[%s8818_s1 + $0x208] sm:$0xff] }
 0x112   : > { %v4577_v33 = vadd.f32 %v4576_v18, %v4488_v2  ;;  %v4402_v39 = vadd.f32 %v4401_v7, %v7783_v10  ;;  %v1569_v30 = vsel %vm7482_vm3, %v1564_v20, %v1568_v24  ;;  %v7036_v10 = vld [vmem:[%s8818_s1 + $0x188] sm:$0xff]  ;;  %v1579_v22 = vsel %vm7482_vm3, %v1574_v15, %v1578_v36  ;;  %v919_v2 = vld [vmem:[%s7335_s17 + $0x9c] sm:$0xe]  ;;  %v920_v18 = vld [vmem:[%s7335_s17 + $0xa0] sm:$0xf]  ;;  %5011 = vmatpush.bf16.msra.mxu0 %v7052_v35 }
 0x113   : > { %v7951_v19 = vpop.f32.mrf.mxu0  ;;  %1708 = vst [vmem:[#allocation2 + $0x370] sm:$0xf] %v1569_v30  ;;  %4833 = vmatpush.bf16.msra.mxu2 %v7036_v10  ;;  %v751_v49 = vor.u32 %v750_v13, %v747_v25  ;;  %v761_v7 = vor.u32 %v760_v5, %v756_v62  ;;  %v1072_v9 = vrot.slane %v920_v18, 5  ;;  %v6379_v20 = vld [vmem:[#allocation2 + $0x320] sm:$0xf]  ;;  %v7028_v15 = vld [vmem:[%s8818_s1 + $0x148] sm:$0xff] }
 0x114   : > { %4440 = vmatmul.bf16.gmra.mxu1 %v6340_v12  ;;  %4529 = vmatmul.bf16.gmra.mxu2 %v6344_v50  ;;  %v7956_v60 = vadd.f32 %v7931_v56, %v4577_v33  ;;  %1709 = vst [vmem:[#allocation2 + $0x394] sm:$0xf] %v1579_v22  ;;  %v422_v56 = vld [vmem:[%s7335_s17 + $0xa4] sm:$0x1]  ;;  %v1581_v12 = vshrl.u32 %v7967_v54, 16 }
 0x115   : > { %4618 = vmatmul.bf16.gmra.mxu3 %v6348_v1  ;;  %v764_v14 = vshll.u32 %v422_v56, 16  ;;  %v921_v1 = vld [vmem:[%s7335_s17 + $0xa4] sm:$0x1]  ;;  %v6373_v33 = vld [vmem:[#allocation2 + $0x33c] sm:$0xf0]  ;;  %v752_v25 = vrot.slane %v751_v49, 4  ;;  %4744 = vmatpush.bf16.msra.mxu1 %v7028_v15 }
 0x116   : > { %4707 = vmatmul.bf16.gmra.mxu0 %v6352_v21  ;;  %v5682_v21 = vrot.slane %v919_v2, 9  ;;  %v1075_v63 = vrot.slane %v921_v1, 5  ;;  %v5711_v30 = vld [vmem:[%s7335_s17 + $0xa8] sm:$0xf]  ;;  %v1074_v22 = vrot.slane %v1072_v9, 4  ;;  %v1583_v49 = vrot.slane %v1581_v12, 4 }
 0x117   : > { %v4490_v23 = vpop.f32.mrf.mxu2  ;;  %v766_v48 = vrot.slane %v764_v14, 5  ;;  %v6943_v56 = vld [vmem:[#allocation2 + $0x324] sm:$0xf]  ;;  %v6387_v13 = vld [vmem:[#allocation2 + $0x328] sm:$0xf]  ;;  %v757_v14 = vsel %vm7482_vm3, %v752_v25, %v756_v62  ;;  %v1590_v1 = vshll.u32 %v5757_v4, 16 }
 0x118   : > { %v4491_v45 = vadd.f32 %v4490_v23, %v4402_v39  ;;  %v4579_v24 = vpop.f32.mrf.mxu3  ;;  %v6942_v39 = vld [vmem:[#allocation2 + $0x31c] sm:$0xf]  ;;  %v1073_v10 = vsel %vm7496_vm5, %v5682_v21, %v1072_v9  ;;  %v6381_v23 = vld [vmem:[#allocation2 + $0x344] sm:$0xf0]  ;;  %v5758_v5 = vld [vmem:[%s7335_s17 + $0xb0] sm:$0x1]  ;;  %v1076_v18 = vsel %vm7496_vm5, %v1074_v22, %v1075_v63 }
 0x119   : > { %v4403_v50 = vpop.f32.mrf.mxu1  ;;  %1149 = vst [vmem:[#allocation2 + $0x3b0] sm:$0xf] %v1073_v10  ;;  %v1594_v21 = vshrl.u32 %v5757_v4, 16  ;;  %v6376_v9 = vor.u32 %v6942_v39, %v6373_v33  ;;  %v1600_v62 = vshll.u32 %v5758_v5, 16  ;;  %v1592_v63 = vrot.slane %v1590_v1, 5 }
 0x11a   : > { %v4580_v36 = vadd.f32 %v4579_v24, %v4491_v45  ;;  %v4404_v6 = vadd.f32 %v4403_v50, %v7807_v52  ;;  %v762_v52 = vrot.slane %v761_v7, 4  ;;  %v6948_v24 = vld [vmem:[#allocation2 + $0x348] sm:$0xf0]  ;;  %1214 = vst [vmem:[#allocation2 + $0x3b4] sm:$0xf] %v5711_v30  ;;  %v1584_v7 = vshll.u32 %v7967_v54, 16 }
 0x11b   : > { %v7975_v55 = vpop.f32.mrf.mxu0  ;;  %v5712_v50 = vld [vmem:[%s7335_s17 + $0xac] sm:$0xf]  ;;  %874 = vst [vmem:[#allocation2 + $0x3ac] sm:$0xf] %v757_v14  ;;  %v1596_v25 = vrot.slane %v1594_v21, 4  ;;  %v6388_v12 = vor.u32 %v6948_v24, %v6387_v13  ;;  %v1602_v54 = vrot.slane %v1600_v62, 5 }
 0x11c   : > { %v7989_v45 = vadd.f32 %v7951_v19, %v4580_v36  ;;  %v767_v2 = vsel %vm7482_vm3, %v762_v52, %v766_v48  ;;  %v6380_v36 = vor.u32 %v6947_v43, %v6379_v20  ;;  %1150 = vst [vmem:[#allocation2 + $0x3d4] sm:$0xf] %v1076_v18  ;;  %v1586_v48 = vrot.slane %v1584_v7, 5  ;;  %v423_v10 = vld [vmem:[%s7335_s17 + $0xa8] sm:$0xf] }
 0x11d   : > { %875 = vst [vmem:[#allocation2 + $0x3d0] sm:$0xf] %v767_v2  ;;  %v6384_v52 = vor.u32 %v6943_v56, %v6381_v23  ;;  %v424_v20 = vld [vmem:[%s7335_s17 + $0xac] sm:$0xf]  ;;  %v769_v43 = vshrl.u32 %v423_v10, 16  ;;  %v772_v5 = vshll.u32 %v423_v10, 16 }
 0x11e   : > { %1215 = vst [vmem:[#allocation2 + $0x3d8] sm:$0xf] %v5712_v50  ;;  %v1587_v33 = vor.u32 %v1586_v48, %v1583_v49  ;;  %v778_v14 = vshll.u32 %v424_v20, 16  ;;  %v782_v2 = vshrl.u32 %v424_v20, 16  ;;  %v923_v21 = vld [vmem:[%s7335_s17 + $0xac] sm:$0xf] }
 0x11f   : > { %v4492_v19 = vpop.f32.mrf.mxu2  ;;  %v771_v24 = vrot.slane %v769_v43, 4  ;;  %v774_v18 = vrot.slane %v772_v5, 5  ;;  %v922_v48 = vld [vmem:[%s7335_s17 + $0xa8] sm:$0xe]  ;;  %v6951_v43 = vld [vmem:[#allocation2 + $0x364] sm:$0xf] }
 0x120   : > { %v4493_v15 = vadd.f32 %v4492_v19, %v4404_v6  ;;  %v4581_v35 = vpop.f32.mrf.mxu3  ;;  %v1597_v6 = vor.u32 %v1596_v25, %v1592_v63  ;;  %v1588_v56 = vrot.slane %v1587_v33, 4  ;;  %v780_v7 = vrot.slane %v778_v14, 5  ;;  %v5759_v25 = vld [vmem:[%s7335_s17 + $0xb4] sm:$0xf]  ;;  %v6409_v5 = vld [vmem:[#allocation2 + $0x384] sm:$0xf0] }
 0x121   : > { %v4406_v30 = vpop.f32.mrf.mxu1  ;;  %v784_v1 = vrot.slane %v782_v2, 4  ;;  %v6415_v14 = vld [vmem:[#allocation2 + $0x368] sm:$0xf]  ;;  %v6956_v2 = vld [vmem:[#allocation2 + $0x388] sm:$0xf0] }
 0x122   : > { %v4582_v22 = vadd.f32 %v4581_v35, %v4493_v15  ;;  %v4407_v4 = vadd.f32 %v4406_v30, %v7834_v51  ;;  %v1598_v23 = vrot.slane %v1597_v6, 4  ;;  %v425_v51 = vld [vmem:[%s7335_s17 + $0xb0] sm:$0x1]  ;;  %v1593_v50 = vsel %vm7482_vm3, %v1588_v56, %v1592_v63 }
 0x123   : > { %v8001_v39 = vpop.f32.mrf.mxu0  ;;  %1710 = vst [vmem:[#allocation2 + $0x3b8] sm:$0xf] %v1593_v50  ;;  %v785_v35 = vor.u32 %v784_v1, %v780_v7  ;;  %v6952_v50 = vld [vmem:[#allocation2 + $0x36c] sm:$0xf]  ;;  %v6423_v1 = vld [vmem:[#allocation2 + $0x370] sm:$0xf] }
 0x124   : > { %4445 = vmatmul.bf16.gmra.mxu1 %v6376_v9  ;;  %4534 = vmatmul.bf16.gmra.mxu2 %v6380_v36  ;;  %v8005_v13 = vadd.f32 %v7975_v55, %v4582_v22  ;;  %v1603_v49 = vsel %vm7482_vm3, %v1598_v23, %v1602_v54  ;;  %v775_v55 = vor.u32 %v774_v18, %v771_v24  ;;  %v788_v9 = vshll.u32 %v425_v51, 16  ;;  %v5714_v24 = vld [vmem:[%s7335_s17 + $0xb8] sm:$0xf] }
 0x125   : > { %4623 = vmatmul.bf16.gmra.mxu3 %v6384_v52  ;;  %v1079_v36 = vrot.slane %v923_v21, 5  ;;  %1711 = vst [vmem:[#allocation2 + $0x3dc] sm:$0xf] %v1603_v49  ;;  %v5683_v54 = vrot.slane %v922_v48, 9  ;;  %v786_v6 = vrot.slane %v785_v35, 4 }
 0x126   : > { %4712 = vmatmul.bf16.gmra.mxu0 %v6388_v12  ;;  %v776_v30 = vrot.slane %v775_v55, 4  ;;  %v790_v52 = vrot.slane %v788_v9, 5  ;;  %v924_v12 = vld [vmem:[%s7335_s17 + $0xb0] sm:$0x1]  ;;  %v5760_v18 = vld [vmem:[%s7335_s17 + $0xb8] sm:$0xf] }
 0x127   : > { %v4495_v19 = vpop.f32.mrf.mxu2  ;;  %v1081_v20 = vrot.slane %v1079_v36, 4  ;;  %v1080_v23 = vsel %vm7496_vm5, %v5683_v54, %v1079_v36  ;;  %v1082_v51 = vrot.slane %v924_v12, 5  ;;  %v6417_v49 = vld [vmem:[#allocation2 + $0x38c] sm:$0xf0]  ;;  %v1608_v55 = vshll.u32 %v5759_v25, 16 }
 0x128   : > { %v4496_v62 = vadd.f32 %v4495_v19, %v4407_v4  ;;  %v4584_v15 = vpop.f32.mrf.mxu3  ;;  %v5713_v4 = vld [vmem:[%s7335_s17 + $0xb4] sm:$0xf]  ;;  %v781_v56 = vsel %vm7482_vm3, %v776_v30, %v780_v7  ;;  %v791_v21 = vsel %vm7482_vm3, %v786_v6, %v790_v52  ;;  %v5761_v19 = vld [vmem:[%s7335_s17 + $0xbc] sm:$0x1]  ;;  %v1614_v9 = vshll.u32 %v5760_v18, 16 }
 0x129   : > { %v4408_v63 = vpop.f32.mrf.mxu1  ;;  %1216 = vst [vmem:[#allocation2 + $0x3fc] sm:$0xf] %v5713_v4  ;;  %v1083_v36 = vsel %vm7496_vm5, %v1081_v20, %v1082_v51  ;;  %v1624_v35 = vshll.u32 %v5761_v19, 16  ;;  %v6957_v48 = vld [vmem:[#allocation2 + $0x390] sm:$0xf0]  ;;  %v6420_v20 = vor.u32 %v6952_v50, %v6417_v49  ;;  %v7043_v49 = vld [vmem:[%s8818_s1 + $0x1c0] sm:$0xff] }
 0x12a   : > { %v4585_v10 = vadd.f32 %v4584_v15, %v4496_v62  ;;  %v4409_v22 = vadd.f32 %v4408_v63, %v7852_v41  ;;  %v1605_v41 = vshrl.u32 %v5759_v25, 16  ;;  %876 = vst [vmem:[#allocation2 + $0x3f4] sm:$0xf] %v781_v56  ;;  %v1618_v15 = vshrl.u32 %v5760_v18, 16  ;;  %4923 = vmatpush.bf16.msra.mxu3 %v7043_v49 }
 0x12b   : > { %v4675_v33 = vpop.f32.mrf.mxu0  ;;  %877 = vst [vmem:[#allocation2 + $0x418] sm:$0xf] %v791_v21  ;;  %v1610_v63 = vrot.slane %v1608_v55, 5  ;;  %v1616_v30 = vrot.slane %v1614_v9, 5  ;;  %v6424_v56 = vor.u32 %v6957_v48, %v6423_v1  ;;  %v1626_v18 = vrot.slane %v1624_v35, 5 }
 0x12c   : > { %v8028_v7 = vadd.f32 %v8001_v39, %v4585_v10  ;;  %v1607_v62 = vrot.slane %v1605_v41, 4  ;;  %1151 = vst [vmem:[#allocation2 + $0x3f8] sm:$0xf] %v1080_v23  ;;  %v1620_v25 = vrot.slane %v1618_v15, 4  ;;  %v6412_v39 = vor.u32 %v6951_v43, %v6409_v5  ;;  %v426_v41 = vld [vmem:[%s7335_s17 + $0xb4] sm:$0xf] }
 0x12d   : > { %1152 = vst [vmem:[#allocation2 + $0x41c] sm:$0xf] %v1083_v36  ;;  %v6416_v10 = vor.u32 %v6956_v2, %v6415_v14  ;;  %v427_v23 = vld [vmem:[%s7335_s17 + $0xb8] sm:$0xf]  ;;  %v793_v9 = vshrl.u32 %v426_v41, 16 }
 0x12e   : > { %1217 = vst [vmem:[#allocation2 + $0x420] sm:$0xf] %v5714_v24  ;;  %v1611_v6 = vor.u32 %v1610_v63, %v1607_v62  ;;  %v1621_v51 = vor.u32 %v1620_v25, %v1616_v30  ;;  %v802_v15 = vshll.u32 %v427_v23, 16  ;;  %v806_v43 = vshrl.u32 %v427_v23, 16  ;;  %v7035_v24 = vld [vmem:[%s8818_s1 + $0x180] sm:$0xff] }
 0x12f   : > { %v4497_v52 = vpop.f32.mrf.mxu2  ;;  %v795_v14 = vrot.slane %v793_v9, 4  ;;  %v8049_v1 = vld [vmem:[%s7335_s17 + $0xc0] sm:$0xf]  ;;  %v428_v62 = vld [vmem:[%s7335_s17 + $0xbc] sm:$0x1]  ;;  %4834 = vmatpush.bf16.msra.mxu2 %v7035_v24 }
 0x130   : > { %v4498_v12 = vadd.f32 %v4497_v52, %v4409_v22  ;;  %v4586_v54 = vpop.f32.mrf.mxu3  ;;  %v1612_v55 = vrot.slane %v1611_v6, 4  ;;  %v1622_v36 = vrot.slane %v1621_v51, 4  ;;  %v796_v22 = vshll.u32 %v426_v41, 16  ;;  %v6960_v23 = vld [vmem:[#allocation2 + $0x3ac] sm:$0xf] }
 0x131   : > { %v4411_v4 = vpop.f32.mrf.mxu1  ;;  %v804_v63 = vrot.slane %v802_v15, 5  ;;  %v6965_v9 = vld [vmem:[#allocation2 + $0x3d0] sm:$0xf0] }
 0x132   : > { %v4587_v21 = vadd.f32 %v4586_v54, %v4498_v12  ;;  %v1617_v5 = vsel %vm7482_vm3, %v1612_v55, %v1616_v30  ;;  %v1627_v50 = vsel %vm7482_vm3, %v1622_v36, %v1626_v18  ;;  %v798_v48 = vrot.slane %v796_v22, 5  ;;  %v925_v54 = vld [vmem:[%s7335_s17 + $0xb4] sm:$0xe]  ;;  %v6451_v55 = vld [vmem:[#allocation2 + $0x3b0] sm:$0xf]  ;;  %v7027_v36 = vld [vmem:[%s8818_s1 + $0x140] sm:$0xff] }
 0x133   : > { %v8034_v19 = vpop.f32.mrf.mxu0  ;;  %1712 = vst [vmem:[#allocation2 + $0x400] sm:$0xf] %v1617_v5  ;;  %v808_v30 = vrot.slane %v806_v43, 4  ;;  %v812_v12 = vshll.u32 %v428_v62, 16  ;;  %v7051_v22 = vld [vmem:[%s8818_s1 + $0x200] sm:$0xff]  ;;  %4745 = vmatpush.bf16.msra.mxu1 %v7027_v36 }
 0x134   : > { %4450 = vmatmul.bf16.gmra.mxu1 %v6412_v39  ;;  %4539 = vmatmul.bf16.gmra.mxu2 %v6416_v10  ;;  %v8038_v2 = vadd.f32 %v4675_v33, %v4587_v21  ;;  %v4412_v33 = vadd.f32 %v4411_v4, %v7689_v29  ;;  %1713 = vst [vmem:[#allocation2 + $0x424] sm:$0xf] %v1627_v50  ;;  %v926_v39 = vld [vmem:[%s7335_s17 + $0xb8] sm:$0xf]  ;;  %v1629_v10 = vshrl.u32 %v8049_v1, 16 }
 0x135   : > { %4628 = vmatmul.bf16.gmra.mxu3 %v6420_v20  ;;  %v799_v20 = vor.u32 %v798_v48, %v795_v14  ;;  %v809_v29 = vor.u32 %v808_v30, %v804_v63  ;;  %v927_v4 = vld [vmem:[%s7335_s17 + $0xbc] sm:$0x1]  ;;  %v1086_v51 = vrot.slane %v926_v39, 5  ;;  %v6445_v21 = vld [vmem:[#allocation2 + $0x3cc] sm:$0xf0]  ;;  %v814_v15 = vrot.slane %v812_v12, 5  ;;  %5012 = vmatpush.bf16.msra.mxu0 %v7051_v22 }
 0x136   : > { %4717 = vmatmul.bf16.gmra.mxu0 %v6424_v56  ;;  %v5684_v56 = vrot.slane %v925_v54, 9  ;;  %v1089_v43 = vrot.slane %v927_v4, 5  ;;  %v5715_v5 = vld [vmem:[%s7335_s17 + $0xc0] sm:$0xf]  ;;  %v6961_v62 = vld [vmem:[#allocation2 + $0x3b4] sm:$0xf] }
 0x137   : > { %v4500_v35 = vpop.f32.mrf.mxu2  ;;  %v800_v14 = vrot.slane %v799_v20, 4  ;;  %v810_v24 = vrot.slane %v809_v29, 4  ;;  %v1088_v49 = vrot.slane %v1086_v51, 4  ;;  %v6459_v48 = vld [vmem:[#allocation2 + $0x3b8] sm:$0xf]  ;;  %v1631_v4 = vrot.slane %v1629_v10, 4 }
 0x138   : > { %v4501_v52 = vadd.f32 %v4500_v35, %v4412_v33  ;;  %v4589_v25 = vpop.f32.mrf.mxu3  ;;  %v1087_v50 = vsel %vm7496_vm5, %v5684_v56, %v1086_v51  ;;  %v5763_v33 = vld [vmem:[%s7335_s17 + $0xc4] sm:$0xf]  ;;  %v6453_v35 = vld [vmem:[#allocation2 + $0x3d4] sm:$0xf0]  ;;  %v5764_v30 = vld [vmem:[%s7335_s17 + $0xc8] sm:$0x1] }
 0x139   : > { %v4413_v6 = vpop.f32.mrf.mxu1  ;;  %1153 = vst [vmem:[#allocation2 + $0x440] sm:$0xf] %v1087_v50  ;;  %v6966_v12 = vld [vmem:[#allocation2 + $0x3d8] sm:$0xf0]  ;;  %v805_v54 = vsel %vm7482_vm3, %v800_v14, %v804_v63  ;;  %v815_v39 = vsel %vm7482_vm3, %v810_v24, %v814_v15  ;;  %v1090_v20 = vsel %vm7496_vm5, %v1088_v49, %v1089_v43  ;;  %v5716_v29 = vld [vmem:[%s7335_s17 + $0xc4] sm:$0xf]  ;;  %v6456_v24 = vor.u32 %v6961_v62, %v6453_v35 }
 0x13a   : > { %v4590_v18 = vadd.f32 %v4589_v25, %v4501_v52  ;;  %v4414_v25 = vadd.f32 %v4413_v6, %v7716_v0  ;;  %1218 = vst [vmem:[#allocation2 + $0x444] sm:$0xf] %v5715_v5  ;;  %v1632_v56 = vshll.u32 %v8049_v1, 16  ;;  %v1642_v51 = vshrl.u32 %v5763_v33, 16  ;;  %v5861_v1 = vld [vmem:[%s7335_s17 + $0x18] sm:$0xf] }
 0x13b   : > { %v4680_v41 = vpop.f32.mrf.mxu0  ;;  %878 = vst [vmem:[#allocation2 + $0x43c] sm:$0xf] %v805_v54  ;;  %v6448_v6 = vor.u32 %v6960_v23, %v6445_v21  ;;  %v1648_v63 = vshll.u32 %v5764_v30, 16  ;;  %v6460_v10 = vor.u32 %v6966_v12, %v6459_v48  ;;  %v5766_v35 = vld [vmem:[%s7335_s17 + $0x10] sm:$0xf]  ;;  %v2105_v48 = vshll.u32 %v5861_v1, 16 }
 0x13c   : > { %v8069_v52 = vadd.f32 %v8034_v19, %v4590_v18  ;;  %v1638_v19 = vshll.u32 %v5763_v33, 16  ;;  %v6452_v18 = vor.u32 %v6965_v9, %v6451_v55  ;;  %879 = vst [vmem:[#allocation2 + $0x460] sm:$0xf] %v815_v39  ;;  %v1634_v15 = vrot.slane %v1632_v56, 5  ;;  %v5862_v55 = vld [vmem:[%s7335_s17 + $0x1c] sm:$0xf] }
 0x13d   : > { %1154 = vst [vmem:[#allocation2 + $0x464] sm:$0xf] %v1090_v20  ;;  %v1644_v14 = vrot.slane %v1642_v51, 4  ;;  %v1650_v21 = vrot.slane %v1648_v63, 5  ;;  %v2111_v12 = vshll.u32 %v5862_v55, 16 }
 0x13e   : > { %v1640_v43 = vrot.slane %v1638_v19, 5  ;;  %1219 = vst [vmem:[#allocation2 + $0x468] sm:$0xf] %v5716_v29  ;;  %v1635_v33 = vor.u32 %v1634_v15, %v1631_v4  ;;  %v1814_v29 = vrot.slane %v5766_v35, 5  ;;  %v2115_v4 = vshrl.u32 %v5862_v55, 16 }
 0x13f   : > { %v4502_v0 = vpop.f32.mrf.mxu2  ;;  %v5909_v15 = vld [vmem:[%s7335_s17 + $0x18] sm:$0xe]  ;;  %v6970_v35 = vld [vmem:[#allocation2 + $0x3fc] sm:$0xf] }
 0x140   : > { %v4503_v36 = vadd.f32 %v4502_v0, %v4414_v25  ;;  %v4591_v22 = vpop.f32.mrf.mxu3  ;;  %v1645_v23 = vor.u32 %v1644_v14, %v1640_v43  ;;  %v1636_v9 = vrot.slane %v1635_v33, 4  ;;  %v2102_v25 = vshrl.u32 %v5861_v1, 16  ;;  %v5767_v0 = vld [vmem:[%s7335_s17 + $0x14] sm:$0x1]  ;;  %v5830_v1 = vld [vmem:[%s7335_s17 + $0x1c] sm:$0xf] }
 0x141   : > { %v4416_v5 = vpop.f32.mrf.mxu1  ;;  %v2113_v33 = vrot.slane %v2111_v12, 5  ;;  %2022 = vst [vmem:[#allocation2 + $0x3c] sm:$0xf] %v5830_v1 }
 0x142   : > { %v4592_v50 = vadd.f32 %v4591_v22, %v4503_v36  ;;  %v1646_v30 = vrot.slane %v1645_v23, 4  ;;  %v4417_v62 = vadd.f32 %v4416_v5, %v7740_v42  ;;  %v1641_v39 = vsel %vm7482_vm3, %v1636_v9, %v1640_v43  ;;  %v5863_v42 = vld [vmem:[%s7335_s17 + $0x20] sm:$0x1]  ;;  %v6969_v5 = vld [vmem:[#allocation2 + $0x3f4] sm:$0xf] }
 0x143   : > { %v4683_v49 = vpop.f32.mrf.mxu0  ;;  %1714 = vst [vmem:[#allocation2 + $0x448] sm:$0xf] %v1641_v39  ;;  %v1816_v36 = vrot.slane %v1814_v29, 4  ;;  %v1817_v22 = vrot.slane %v5767_v0, 5  ;;  %v6487_v23 = vld [vmem:[#allocation2 + $0x3f8] sm:$0xf] }
 0x144   : > { %4455 = vmatmul.bf16.gmra.mxu1 %v6448_v6  ;;  %4544 = vmatmul.bf16.gmra.mxu2 %v6452_v18  ;;  %v8082_v54 = vadd.f32 %v4680_v41, %v4592_v50  ;;  %v1651_v20 = vsel %vm7482_vm3, %v1646_v30, %v1650_v21  ;;  %v5765_v41 = vld [vmem:[%s7335_s17 + $0xc] sm:$0xe]  ;;  %v2104_v6 = vrot.slane %v2102_v25, 4  ;;  %v2107_v50 = vrot.slane %v2105_v48, 5  ;;  %v6974_v21 = vld [vmem:[#allocation2 + $0x418] sm:$0xf0] }
 0x145   : > { %4633 = vmatmul.bf16.gmra.mxu3 %v6456_v24  ;;  %1715 = vst [vmem:[#allocation2 + $0x46c] sm:$0xf] %v1651_v20  ;;  %v5813_v63 = vrot.slane %v5765_v41, 9  ;;  %v6481_v24 = vld [vmem:[#allocation2 + $0x414] sm:$0xf0]  ;;  %v1818_v9 = vsel %vm7496_vm5, %v1816_v36, %v1817_v22  ;;  %v2117_v30 = vrot.slane %v2115_v4, 4 }
 0x146   : > { %4722 = vmatmul.bf16.gmra.mxu0 %v6460_v10  ;;  %v5829_v10 = vld [vmem:[%s7335_s17 + $0x18] sm:$0xf]  ;;  %v2121_v25 = vshll.u32 %v5863_v42, 16  ;;  %v6489_v39 = vld [vmem:[#allocation2 + $0x41c] sm:$0xf0]  ;;  %v2108_v20 = vor.u32 %v2107_v50, %v2104_v6  ;;  %v5957_v41 = vrot.slane %v5909_v15, 9  ;;  %v6484_v15 = vor.u32 %v6969_v5, %v6481_v24 }
 0x147   : > { %v4505_v56 = vpop.f32.mrf.mxu2  ;;  %v1815_v55 = vsel %vm7496_vm5, %v5813_v63, %v1814_v29  ;;  %2021 = vst [vmem:[#allocation2 + $0x18] sm:$0xf] %v5829_v10  ;;  %v6975_v36 = vld [vmem:[#allocation2 + $0x420] sm:$0xf0]  ;;  %v6488_v50 = vor.u32 %v6974_v21, %v6487_v23  ;;  %v6492_v1 = vor.u32 %v6970_v35, %v6489_v39  ;;  %v5865_v5 = vld [vmem:[%s7335_s17 + $0x28] sm:$0xf] }
 0x148   : > { %v4506_v19 = vadd.f32 %v4505_v56, %v4417_v62  ;;  %v4594_v51 = vpop.f32.mrf.mxu3  ;;  %v5910_v62 = vld [vmem:[%s7335_s17 + $0x1c] sm:$0xf]  ;;  %1956 = vst [vmem:[#allocation2 + $0x14] sm:$0xf] %v1815_v55  ;;  %v5911_v56 = vld [vmem:[%s7335_s17 + $0x20] sm:$0x1] }
 0x149   : > { %v4418_v18 = vpop.f32.mrf.mxu1  ;;  %v2647_v48 = vrot.slane %v5910_v62, 5  ;;  %1957 = vst [vmem:[#allocation2 + $0x38] sm:$0xf] %v1818_v9  ;;  %v2123_v29 = vrot.slane %v2121_v25, 5  ;;  %v2650_v0 = vrot.slane %v5911_v56, 5  ;;  %v2109_v4 = vrot.slane %v2108_v20, 4 }
 0x14a   : > { %v4595_v43 = vadd.f32 %v4594_v51, %v4506_v19  ;;  %v6495_v19 = vld [vmem:[#allocation2 + $0x400] sm:$0xf]  ;;  %v2118_v51 = vor.u32 %v2117_v30, %v2113_v33  ;;  %v4419_v63 = vadd.f32 %v4418_v18, %v7760_v17  ;;  %v5864_v25 = vld [vmem:[%s7335_s17 + $0x24] sm:$0xf]  ;;  %v2139_v20 = vshrl.u32 %v5865_v5, 16 }
 0x14b   : > { %v4685_v14 = vpop.f32.mrf.mxu0  ;;  %v2648_v42 = vsel %vm7496_vm5, %v5957_v41, %v2647_v48  ;;  %v2649_v6 = vrot.slane %v2647_v48, 4  ;;  %v2114_v55 = vsel %vm7482_vm3, %v2109_v4, %v2113_v33  ;;  %v6496_v9 = vor.u32 %v6975_v36, %v6495_v19  ;;  %v5769_v41 = vld [vmem:[%s7335_s17 + $0x1c] sm:$0xf]  ;;  %v5866_v48 = vld [vmem:[%s7335_s17 + $0x2c] sm:$0x1] }
 0x14c   : > { %v8102_v12 = vadd.f32 %v4683_v49, %v4595_v43  ;;  %v2119_v49 = vrot.slane %v2118_v51, 4  ;;  %2789 = vst [vmem:[#allocation2 + $0x20] sm:$0xf] %v2648_v42  ;;  %v2126_v23 = vshrl.u32 %v5864_v25, 16  ;;  %v2129_v21 = vshll.u32 %v5864_v25, 16 }
 0x14d   : > { %v2651_v17 = vsel %vm7496_vm5, %v2649_v6, %v2650_v0  ;;  %2517 = vst [vmem:[#allocation2 + $0x1c] sm:$0xf] %v2114_v55  ;;  %v2135_v33 = vshll.u32 %v5865_v5, 16  ;;  %v1821_v51 = vrot.slane %v5769_v41, 5  ;;  %v5768_v36 = vld [vmem:[%s7335_s17 + $0x18] sm:$0xe] }
 0x14e   : > { %v2124_v30 = vsel %vm7482_vm3, %v2119_v49, %v2123_v29  ;;  %2790 = vst [vmem:[#allocation2 + $0x44] sm:$0xf] %v2651_v17  ;;  %v2128_v35 = vrot.slane %v2126_v23, 4  ;;  %v2131_v39 = vrot.slane %v2129_v21, 5  ;;  %v5770_v4 = vld [vmem:[%s7335_s17 + $0x20] sm:$0x1] }
 0x14f   : > { %v4507_v22 = vpop.f32.mrf.mxu2  ;;  %2518 = vst [vmem:[#allocation2 + $0x40] sm:$0xf] %v2124_v30  ;;  %v2137_v0 = vrot.slane %v2135_v33, 5  ;;  %v2141_v42 = vrot.slane %v2139_v20, 4  ;;  %v2145_v6 = vshll.u32 %v5866_v48, 16  ;;  %v1823_v49 = vrot.slane %v1821_v51, 4 }
 0x150   : > { %v4508_v43 = vadd.f32 %v4507_v22, %v4419_v63  ;;  %v4596_v10 = vpop.f32.mrf.mxu3  ;;  %v2132_v29 = vor.u32 %v2131_v39, %v2128_v35  ;;  %v5912_v17 = vld [vmem:[%s7335_s17 + $0x24] sm:$0xe]  ;;  %v5832_v25 = vld [vmem:[%s7335_s17 + $0x28] sm:$0xf]  ;;  %v6978_v5 = vld [vmem:[#allocation2 + $0x43c] sm:$0xf] }
 0x151   : > { %v4421_v18 = vpop.f32.mrf.mxu1  ;;  %v2147_v55 = vrot.slane %v2145_v6, 5  ;;  %v5831_v30 = vld [vmem:[%s7335_s17 + $0x24] sm:$0xf]  ;;  %v6523_v23 = vld [vmem:[#allocation2 + $0x440] sm:$0xf] }
 0x152   : > { %v4597_v24 = vadd.f32 %v4596_v10, %v4508_v43  ;;  %v4422_v19 = vadd.f32 %v4421_v18, %v7779_v3  ;;  %v1824_v43 = vrot.slane %v5770_v4, 5  ;;  %v2142_v3 = vor.u32 %v2141_v42, %v2137_v0  ;;  %v6983_v21 = vld [vmem:[#allocation2 + $0x460] sm:$0xf0]  ;;  %v5913_v35 = vld [vmem:[%s7335_s17 + $0x28] sm:$0xf] }
 0x153   : > { %v4688_v62 = vpop.f32.mrf.mxu0  ;;  %v6979_v39 = vld [vmem:[#allocation2 + $0x444] sm:$0xf]  ;;  %v6525_v41 = vld [vmem:[#allocation2 + $0x464] sm:$0xf0]  ;;  %2023 = vst [vmem:[#allocation2 + $0x60] sm:$0xf] %v5831_v30 }
 0x154   : > { %4460 = vmatmul.bf16.gmra.mxu1 %v6484_v15  ;;  %4549 = vmatmul.bf16.gmra.mxu2 %v6488_v50  ;;  %v8115_v56 = vadd.f32 %v4685_v14, %v4597_v24  ;;  %v5814_v15 = vrot.slane %v5768_v36, 9  ;;  %v2133_v50 = vrot.slane %v2132_v29, 4  ;;  %v6517_v24 = vld [vmem:[#allocation2 + $0x45c] sm:$0xf0]  ;;  %v1825_v33 = vsel %vm7496_vm5, %v1823_v49, %v1824_v43  ;;  %v6531_v36 = vld [vmem:[#allocation2 + $0x448] sm:$0xf] }
 0x155   : > { %4638 = vmatmul.bf16.gmra.mxu3 %v6492_v1  ;;  %v2143_v20 = vrot.slane %v2142_v3, 4  ;;  %1959 = vst [vmem:[#allocation2 + $0x80] sm:$0xf] %v1825_v33  ;;  %v2654_v29 = vrot.slane %v5913_v35, 5  ;;  %v6520_v43 = vor.u32 %v6978_v5, %v6517_v24 }
 0x156   : > { %4727 = vmatmul.bf16.gmra.mxu0 %v6496_v9  ;;  %v1822_v9 = vsel %vm7496_vm5, %v5814_v15, %v1821_v51  ;;  %v2138_v48 = vsel %vm7482_vm3, %v2133_v50, %v2137_v0  ;;  %v5958_v51 = vrot.slane %v5912_v17, 9  ;;  %2024 = vst [vmem:[#allocation2 + $0x84] sm:$0xf] %v5832_v25  ;;  %v6524_v50 = vor.u32 %v6983_v21, %v6523_v23  ;;  %v5867_v17 = vld [vmem:[%s7335_s17 + $0x30] sm:$0xf] }
 0x157   : > { %v4510_v63 = vpop.f32.mrf.mxu2  ;;  %1958 = vst [vmem:[#allocation2 + $0x5c] sm:$0xf] %v1822_v9  ;;  %v2148_v4 = vsel %vm7482_vm3, %v2143_v20, %v2147_v55  ;;  %v2150_v25 = vshrl.u32 %v5867_v17, 16  ;;  %v2153_v33 = vshll.u32 %v5867_v17, 16  ;;  %v5772_v20 = vld [vmem:[%s7335_s17 + $0x28] sm:$0xf] }
 0x158   : > { %v4511_v22 = vadd.f32 %v4510_v63, %v4422_v19  ;;  %v4599_v14 = vpop.f32.mrf.mxu3  ;;  %v5914_v19 = vld [vmem:[%s7335_s17 + $0x2c] sm:$0x1]  ;;  %v2655_v0 = vsel %vm7496_vm5, %v5958_v51, %v2654_v29  ;;  %2519 = vst [vmem:[#allocation2 + $0x64] sm:$0xf] %v2138_v48  ;;  %v5869_v48 = vld [vmem:[%s7335_s17 + $0x38] sm:$0x1] }
 0x159   : > { %v4423_v10 = vpop.f32.mrf.mxu1  ;;  %v2657_v42 = vrot.slane %v5914_v19, 5  ;;  %2520 = vst [vmem:[#allocation2 + $0x88] sm:$0xf] %v2148_v4  ;;  %v2152_v5 = vrot.slane %v2150_v25, 4  ;;  %v2155_v24 = vrot.slane %v2153_v33, 5  ;;  %v7230_v25 = vmov 0  }
 0x15a   : > { %v4600_v18 = vadd.f32 %v4599_v14, %v4511_v22  ;;  %v4424_v6 = vadd.f32 %v4423_v10, %v7804_v46  ;;  %v6984_v22 = vld [vmem:[#allocation2 + $0x468] sm:$0xf0]  ;;  %v2656_v14 = vrot.slane %v2654_v29, 4  ;;  %v6528_v10 = vor.u32 %v6979_v39, %v6525_v41  ;;  %2791 = vst [vmem:[#allocation2 + $0x68] sm:$0xf] %v2655_v0  ;;  %7143 = vset.pattern.permute.xlu0 %v7230_v25 }
 0x15b   : > { %v4690_v1 = vpop.f32.mrf.mxu0  ;;  %v6532_v55 = vor.u32 %v6984_v22, %v6531_v36  ;;  %v1828_v41 = vrot.slane %v5772_v20, 5  ;;  %v2156_v19 = vor.u32 %v2155_v24, %v2152_v5  ;;  %v5771_v29 = vld [vmem:[%s7335_s17 + $0x24] sm:$0xe]  ;;  %v5773_v36 = vld [vmem:[%s7335_s17 + $0x2c] sm:$0x1]  ;;  %7144 = vset.pattern.permute.xlu1 %v7230_v25  ;;  %7145 = vset.pattern.permute.xlu2 %v7230_v25 }
 0x15c   : > { %v8133_v63 = vadd.f32 %v4688_v62, %v4600_v18  ;;  %v2658_v3 = vsel %vm7496_vm5, %v2656_v14, %v2657_v42  ;;  %v5868_v18 = vld [vmem:[%s7335_s17 + $0x34] sm:$0xf]  ;;  %v5815_v42 = vrot.slane %v5771_v29, 9  ;;  %v1831_v0 = vrot.slane %v5773_v36, 5  ;;  %v5915_v20 = vld [vmem:[%s7335_s17 + $0x30] sm:$0xe] }
 0x15d   : > { %2792 = vst [vmem:[#allocation2 + $0x8c] sm:$0xf] %v2658_v3  ;;  %v2159_v23 = vshll.u32 %v5868_v18, 16  ;;  %v2163_v35 = vshrl.u32 %v5868_v18, 16  ;;  %v2157_v14 = vrot.slane %v2156_v19, 4 }
 0x15e   : > { %v6845_v3 = vld [vmem:[#allocation2 + $0x14] sm:$0xf]  ;;  %v5999_v18 = vld [vmem:[#allocation2 + $0x18] sm:$0xf]  ;;  %v1829_v33 = vsel %vm7496_vm5, %v5815_v42, %v1828_v41  ;;  %v6851_v42 = vld [vmem:[#allocation2 + $0x40] sm:$0xf0] }
 0x15f   : > { %v4512_v15 = vpop.f32.mrf.mxu2  ;;  %v5834_v17 = vld [vmem:[%s7335_s17 + $0x34] sm:$0xf]  ;;  %1960 = vst [vmem:[#allocation2 + $0xa4] sm:$0xf] %v1829_v33  ;;  %v5917_v19 = vld [vmem:[%s7335_s17 + $0x38] sm:$0x1] }
 0x160   : > { %v4513_v62 = vadd.f32 %v4512_v15, %v4424_v6  ;;  %v4601_v49 = vpop.f32.mrf.mxu3  ;;  %v1830_v6 = vrot.slane %v1828_v41, 4  ;;  %v2165_v15 = vrot.slane %v2163_v35, 4  ;;  %v6846_v35 = vld [vmem:[#allocation2 + $0x1c] sm:$0xf]  ;;  %v6001_v41 = vld [vmem:[#allocation2 + $0x3c] sm:$0xf0] }
 0x161   : > { %v4426_v46 = vpop.f32.mrf.mxu1  ;;  %2026 = vst [vmem:[#allocation2 + $0xcc] sm:$0xf] %v5834_v17  ;;  %v5870_v17 = vld [vmem:[%s7335_s17 + $0x3c] sm:$0xf]  ;;  %v5871_v25 = vld [vmem:[%s7335_s17 + $0x40] sm:$0xf] }
 0x162   : > { %v4602_v9 = vadd.f32 %v4601_v49, %v4513_v62  ;;  %v4427_v39 = vadd.f32 %v4426_v46, %v7830_v40  ;;  %v2161_v40 = vrot.slane %v2159_v23, 5  ;;  %v2169_v62 = vshll.u32 %v5869_v48, 16  ;;  %v5916_v49 = vld [vmem:[%s7335_s17 + $0x34] sm:$0xf]  ;;  %v5993_v46 = vld [vmem:[#allocation2 + $0x34] sm:$0xf0] }
 0x163   : > { %v4693_v30 = vpop.f32.mrf.mxu0  ;;  %v1832_v5 = vsel %vm7496_vm5, %v1830_v6, %v1831_v0  ;;  %v2661_v29 = vrot.slane %v5916_v49, 5  ;;  %v2174_v33 = vshrl.u32 %v5870_v17, 16 }
 0x164   : > { %4465 = vmatmul.bf16.gmra.mxu1 %v6520_v43  ;;  %4554 = vmatmul.bf16.gmra.mxu2 %v6524_v50  ;;  %v8145_v21 = vadd.f32 %v4690_v1, %v4602_v9  ;;  %v6850_v9 = vld [vmem:[#allocation2 + $0x38] sm:$0xf0]  ;;  %v2162_v24 = vsel %vm7482_vm3, %v2157_v14, %v2161_v40  ;;  %v2171_v23 = vrot.slane %v2169_v62, 5  ;;  %v2166_v48 = vor.u32 %v2165_v15, %v2161_v40 }
 0x165   : > { %4643 = vmatmul.bf16.gmra.mxu3 %v6528_v10  ;;  %v5130_v10 = vld [vmem:[%s8153_s15] sm:$0xff]  ;;  %1961 = vst [vmem:[#allocation2 + $0xc8] sm:$0xf] %v1832_v5  ;;  %v2663_v40 = vrot.slane %v2661_v29, 4  ;;  %v5996_v15 = vor.u32 %v6845_v3, %v5993_v46  ;;  %v6000_v49 = vor.u32 %v6850_v9, %v5999_v18  ;;  %v2177_v18 = vshll.u32 %v5870_v17, 16 }
 0x166   : > { %4732 = vmatmul.bf16.gmra.mxu0 %v6532_v55  ;;  %v5833_v55 = vld [vmem:[%s7335_s17 + $0x30] sm:$0xf]  ;;  %5164 = vperm.xlu0 %7143, %v5130_v10   ;;  %v2167_v6 = vrot.slane %v2166_v48, 4  ;;  %2521 = vst [vmem:[#allocation2 + $0xac] sm:$0xf] %v2162_v24  ;;  %v6004_v10 = vor.u32 %v6846_v35, %v6001_v41  ;;  %v2183_v9 = vshll.u32 %v5871_v25, 16 }
 0x167   : > { %v4515_v51 = vpop.f32.mrf.mxu2  ;;  %2025 = vst [vmem:[#allocation2 + $0xa8] sm:$0xf] %v5833_v55  ;;  %v2187_v5 = vshrl.u32 %v5871_v25, 16  ;;  %v2176_v24 = vrot.slane %v2174_v33, 4  ;;  %v5131_v35 = vld [vmem:[%s8153_s15 + $0x8] sm:$0xff] }
 0x168   : > { %v4516_v1 = vadd.f32 %v4515_v51, %v4427_v39  ;;  %v4604_v4 = vpop.f32.mrf.mxu3  ;;  %v6007_v39 = vld [vmem:[#allocation2 + $0x20] sm:$0xf]  ;;  %v5959_v51 = vrot.slane %v5915_v20, 9  ;;  %v2185_v48 = vrot.slane %v2183_v9, 5  ;;  %v5835_v17 = vld [vmem:[%s7335_s17 + $0x3c] sm:$0xf] }
 0x169   : > { %v4428_v22 = vpop.f32.mrf.mxu1  ;;  %v6008_v55 = vor.u32 %v6851_v42, %v6007_v39  ;;  %v5775_v39 = vld [vmem:[%s7335_s17 + $0x34] sm:$0xf]  ;;  %v5774_v42 = vld [vmem:[%s7335_s17 + $0x30] sm:$0xe]  ;;  %v5836_v25 = vld [vmem:[%s7335_s17 + $0x40] sm:$0xf] }
 0x16a   : > { %v4605_v43 = vadd.f32 %v4604_v4, %v4516_v1  ;;  %v2664_v1 = vrot.slane %v5917_v19, 5  ;;  %v4429_v4 = vadd.f32 %v4428_v22, %v7849_v26  ;;  %v2662_v0 = vsel %vm7496_vm5, %v5959_v51, %v2661_v29  ;;  %v5872_v29 = vld [vmem:[%s7335_s17 + $0x44] sm:$0x1]  ;;  %v6029_v33 = vld [vmem:[#allocation2 + $0x7c] sm:$0xf0] }
 0x16b   : > { %v4695_v50 = vpop.f32.mrf.mxu0  ;;  %2793 = vst [vmem:[#allocation2 + $0xb0] sm:$0xf] %v2662_v0  ;;  %v1835_v51 = vrot.slane %v5775_v39, 5  ;;  %v6859_v9 = vld [vmem:[#allocation2 + $0x80] sm:$0xf0] }
 0x16c   : > { %v8169_v36 = vadd.f32 %v4693_v30, %v4605_v43  ;;  %v2172_v43 = vsel %vm7482_vm3, %v2167_v6, %v2171_v23  ;;  %v2665_v26 = vsel %vm7496_vm5, %v2663_v40, %v2664_v1  ;;  %v2179_v23 = vrot.slane %v2177_v18, 5  ;;  %v5776_v6 = vld [vmem:[%s7335_s17 + $0x38] sm:$0x1]  ;;  %v6035_v18 = vld [vmem:[#allocation2 + $0x60] sm:$0xf] }
 0x16d   : > { %2522 = vst [vmem:[#allocation2 + $0xd0] sm:$0xf] %v2172_v43  ;;  %v2189_v1 = vrot.slane %v2187_v5, 4  ;;  %v5816_v40 = vrot.slane %v5774_v42, 9  ;;  %v5918_v43 = vld [vmem:[%s7335_s17 + $0x3c] sm:$0xe] }
 0x16e   : > { %2794 = vst [vmem:[#allocation2 + $0xd4] sm:$0xf] %v2665_v26  ;;  %5169 = vperm.xlu0 %7143, %v5131_v35   ;;  %v2180_v41 = vor.u32 %v2179_v23, %v2176_v24  ;;  %v5919_v35 = vld [vmem:[%s7335_s17 + $0x40] sm:$0xf]  ;;  %v6855_v39 = vld [vmem:[#allocation2 + $0x64] sm:$0xf] }
 0x16f   : > { %v4517_v14 = vpop.f32.mrf.mxu2  ;;  %2027 = vst [vmem:[#allocation2 + $0xf0] sm:$0xf] %v5835_v17 }
 0x170   : > { %v4518_v30 = vadd.f32 %v4517_v14, %v4429_v4  ;;  %v4606_v62 = vpop.f32.mrf.mxu3  ;;  %v1837_v14 = vrot.slane %v1835_v51, 4  ;;  %2028 = vst [vmem:[#allocation2 + $0x114] sm:$0xf] %v5836_v25 }
 0x171   : > { %v4431_v22 = vpop.f32.mrf.mxu1 }
 0x172   : > { %v4607_v3 = vadd.f32 %v4606_v62, %v4518_v30  ;;  %v4432_v19 = vadd.f32 %v4431_v22, %v7707_v53  ;;  %v2181_v62 = vrot.slane %v2180_v41, 4  ;;  %v2190_v53 = vor.u32 %v2189_v1, %v2185_v48  ;;  %v5920_v41 = vld [vmem:[%s7335_s17 + $0x44] sm:$0x1] }
 0x173   : > { %v4698_v46 = vpop.f32.mrf.mxu0  ;;  %v5960_v1 = vrot.slane %v5918_v43, 9 }
 0x174   : > { %4746 = vmatmul.bf16.vlgmr.msra.gmra.mxu1 %v5996_v15  ;;  %4835 = vmatmul.bf16.vlgmr.msra.gmra.mxu2 %v6000_v49  ;;  %v8180_v20 = vadd.f32 %v4695_v50, %v4607_v3  ;;  %v1838_v15 = vrot.slane %v5776_v6, 5  ;;  %v2193_v49 = vshll.u32 %v5872_v29, 16  ;;  %v6854_v3 = vld [vmem:[#allocation2 + $0x5c] sm:$0xf]  ;;  %v2191_v24 = vrot.slane %v2190_v53, 4 }
 0x175   : > { %4924 = vmatmul.bf16.vlgmr.msra.gmra.mxu3 %v6004_v10  ;;  %v5132_v10 = vld [vmem:[%s8153_s15 + $0x10] sm:$0xff]  ;;  %v6043_v29 = vld [vmem:[#allocation2 + $0x68] sm:$0xf]  ;;  %v6032_v53 = vor.u32 %v6854_v3, %v6029_v33 }
 0x176   : > { %5013 = vmatmul.bf16.vlgmr.msra.gmra.mxu0 %v6008_v55  ;;  %v1836_v55 = vsel %vm7496_vm5, %v5816_v40, %v1835_v51  ;;  %5174 = vperm.xlu1 %7144, %v5132_v10   ;;  %v1839_v5 = vsel %vm7496_vm5, %v1837_v14, %v1838_v15  ;;  %v2195_v23 = vrot.slane %v2193_v49, 5  ;;  %v2186_v51 = vsel %vm7482_vm3, %v2181_v62, %v2185_v48  ;;  %v6860_v40 = vld [vmem:[#allocation2 + $0x88] sm:$0xf0]  ;;  %v5873_v10 = vld [vmem:[%s7335_s17 + $0x48] sm:$0xf] }
 0x177   : > { %v4520_v4 = vpop.f32.mrf.mxu2  ;;  %1962 = vst [vmem:[#allocation2 + $0xec] sm:$0xf] %v1836_v55  ;;  %v6036_v49 = vor.u32 %v6859_v9, %v6035_v18  ;;  %v5874_v55 = vld [vmem:[%s7335_s17 + $0x4c] sm:$0xf] }
 0x178   : > { %v4521_v50 = vadd.f32 %v4520_v4, %v4432_v19  ;;  %v4609_v0 = vpop.f32.mrf.mxu3  ;;  %v6037_v19 = vld [vmem:[#allocation2 + $0x84] sm:$0xf0]  ;;  %1963 = vst [vmem:[#allocation2 + $0x110] sm:$0xf] %v1839_v5  ;;  %v2668_v4 = vrot.slane %v5919_v35, 5  ;;  %v2196_v6 = vsel %vm7482_vm3, %v2191_v24, %v2195_v23  ;;  %v2198_v5 = vshrl.u32 %v5873_v10, 16 }
 0x179   : > { %v4433_v30 = vpop.f32.mrf.mxu1  ;;  %2523 = vst [vmem:[#allocation2 + $0xf4] sm:$0xf] %v2186_v51  ;;  %v2201_v24 = vshll.u32 %v5873_v10, 16  ;;  %v2207_v3 = vshll.u32 %v5874_v55, 16  ;;  %v2211_v33 = vshrl.u32 %v5874_v55, 16  ;;  %v5133_v35 = vld [vmem:[%s8153_s15 + $0x18] sm:$0xff] }
 0x17a   : > { %v4610_v26 = vadd.f32 %v4609_v0, %v4521_v50  ;;  %v2671_v50 = vrot.slane %v5920_v41, 5  ;;  %v4434_v0 = vadd.f32 %v4433_v30, %v7736_v34  ;;  %v2669_v48 = vsel %vm7496_vm5, %v5960_v1, %v2668_v4  ;;  %2524 = vst [vmem:[#allocation2 + $0x118] sm:$0xf] %v2196_v6  ;;  %v5875_v41 = vld [vmem:[%s7335_s17 + $0x50] sm:$0x1] }
 0x17b   : > { %v4700_v22 = vpop.f32.mrf.mxu0  ;;  %v2670_v14 = vrot.slane %v2668_v4, 4  ;;  %v6040_v34 = vor.u32 %v6855_v39, %v6037_v19  ;;  %v6044_v30 = vor.u32 %v6860_v40, %v6043_v29  ;;  %2795 = vst [vmem:[#allocation2 + $0xf8] sm:$0xf] %v2669_v48  ;;  %v2200_v18 = vrot.slane %v2198_v5, 4  ;;  %v5778_v39 = vld [vmem:[%s7335_s17 + $0x40] sm:$0xf] }
 0x17c   : > { %v8206_v42 = vadd.f32 %v4698_v46, %v4610_v26  ;;  %v2203_v9 = vrot.slane %v2201_v24, 5  ;;  %v2209_v19 = vrot.slane %v2207_v3, 5  ;;  %v1842_v51 = vrot.slane %v5778_v39, 5  ;;  %v5838_v10 = vld [vmem:[%s7335_s17 + $0x4c] sm:$0xf] }
 0x17d   : > { %v2672_v43 = vsel %vm7496_vm5, %v2670_v14, %v2671_v50  ;;  %v2213_v4 = vrot.slane %v2211_v33, 4  ;;  %v5777_v50 = vld [vmem:[%s7335_s17 + $0x3c] sm:$0xe]  ;;  %v5921_v55 = vld [vmem:[%s7335_s17 + $0x48] sm:$0xe] }
 0x17e   : > { %2796 = vst [vmem:[#allocation2 + $0x11c] sm:$0xf] %v2672_v43  ;;  %5179 = vperm.xlu1 %7144, %v5133_v35   ;;  %v2204_v1 = vor.u32 %v2203_v9, %v2200_v18  ;;  %v5817_v48 = vrot.slane %v5777_v50, 9  ;;  %v1844_v14 = vrot.slane %v1842_v51, 4  ;;  %v6065_v5 = vld [vmem:[#allocation2 + $0xc4] sm:$0xf0] }
 0x17f   : > { %v4522_v15 = vpop.f32.mrf.mxu2  ;;  %v6071_v24 = vld [vmem:[#allocation2 + $0xa8] sm:$0xf]  ;;  %v6868_v3 = vld [vmem:[#allocation2 + $0xc8] sm:$0xf0]  ;;  %v5923_v39 = vld [vmem:[%s7335_s17 + $0x50] sm:$0x1] }
 0x180   : > { %v4523_v62 = vadd.f32 %v4522_v15, %v4434_v0  ;;  %v4611_v46 = vpop.f32.mrf.mxu3  ;;  %v5779_v0 = vld [vmem:[%s7335_s17 + $0x44] sm:$0x1]  ;;  %v6079_v50 = vld [vmem:[#allocation2 + $0xb0] sm:$0xf]  ;;  %2030 = vst [vmem:[#allocation2 + $0x15c] sm:$0xf] %v5838_v10 }
 0x181   : > { %v4436_v26 = vpop.f32.mrf.mxu1 }
 0x182   : > { %v4612_v17 = vadd.f32 %v4611_v46, %v4523_v62  ;;  %v4437_v29 = vadd.f32 %v4436_v26, %v7752_v8  ;;  %v1845_v62 = vrot.slane %v5779_v0, 5  ;;  %v2205_v46 = vrot.slane %v2204_v1, 4 }
 0x183   : > { %v4703_v25 = vpop.f32.mrf.mxu0  ;;  %v2214_v8 = vor.u32 %v2213_v4, %v2209_v19  ;;  %v2678_v1 = vrot.slane %v5923_v39, 5 }
 0x184   : > { %4751 = vmatmul.bf16.gmra.mxu1 %v6032_v53  ;;  %4840 = vmatmul.bf16.gmra.mxu2 %v6036_v49  ;;  %v8217_v23 = vadd.f32 %v4700_v22, %v4612_v17  ;;  %v2217_v53 = vshll.u32 %v5875_v41, 16  ;;  %v5922_v49 = vld [vmem:[%s7335_s17 + $0x4c] sm:$0xf]  ;;  %v6863_v17 = vld [vmem:[#allocation2 + $0xa4] sm:$0xf]  ;;  %v1846_v33 = vsel %vm7496_vm5, %v1844_v14, %v1845_v62  ;;  %v2210_v18 = vsel %vm7482_vm3, %v2205_v46, %v2209_v19 }
 0x185   : > { %4929 = vmatmul.bf16.gmra.mxu3 %v6040_v34  ;;  %v1843_v34 = vsel %vm7496_vm5, %v5817_v48, %v1842_v51  ;;  %v2215_v9 = vrot.slane %v2214_v8, 4  ;;  %1965 = vst [vmem:[#allocation2 + $0x158] sm:$0xf] %v1846_v33  ;;  %v5961_v51 = vrot.slane %v5921_v55, 9  ;;  %v2675_v41 = vrot.slane %v5922_v49, 5 }
 0x186   : > { %5018 = vmatmul.bf16.gmra.mxu0 %v6044_v30  ;;  %v5837_v30 = vld [vmem:[%s7335_s17 + $0x48] sm:$0xf]  ;;  %1964 = vst [vmem:[#allocation2 + $0x134] sm:$0xf] %v1843_v34  ;;  %v2219_v35 = vrot.slane %v2217_v53, 5  ;;  %v6068_v46 = vor.u32 %v6863_v17, %v6065_v5  ;;  %v6072_v8 = vor.u32 %v6868_v3, %v6071_v24 }
 0x187   : > { %v4525_v6 = vpop.f32.mrf.mxu2  ;;  %2029 = vst [vmem:[#allocation2 + $0x138] sm:$0xf] %v5837_v30  ;;  %v2676_v19 = vsel %vm7496_vm5, %v5961_v51, %v2675_v41  ;;  %v2677_v48 = vrot.slane %v2675_v41, 4  ;;  %v5877_v34 = vld [vmem:[%s7335_s17 + $0x58] sm:$0xf] }
 0x188   : > { %v4526_v22 = vadd.f32 %v4525_v6, %v4437_v29  ;;  %v4614_v40 = vpop.f32.mrf.mxu3  ;;  %v6864_v29 = vld [vmem:[#allocation2 + $0xac] sm:$0xf]  ;;  %v6073_v6 = vld [vmem:[#allocation2 + $0xcc] sm:$0xf0]  ;;  %v2220_v0 = vsel %vm7482_vm3, %v2215_v9, %v2219_v35  ;;  %2525 = vst [vmem:[#allocation2 + $0x13c] sm:$0xf] %v2210_v18 }
 0x189   : > { %v4438_v15 = vpop.f32.mrf.mxu1  ;;  %2526 = vst [vmem:[#allocation2 + $0x160] sm:$0xf] %v2220_v0  ;;  %v2679_v53 = vsel %vm7496_vm5, %v2677_v48, %v2678_v1  ;;  %v2231_v17 = vshll.u32 %v5877_v34, 16  ;;  %v5781_v18 = vld [vmem:[%s7335_s17 + $0x4c] sm:$0xf]  ;;  %v2235_v9 = vshrl.u32 %v5877_v34, 16 }
 0x18a   : > { %v4615_v43 = vadd.f32 %v4614_v40, %v4526_v22  ;;  %v4439_v22 = vadd.f32 %v4438_v15, %v7775_v57  ;;  %v6869_v40 = vld [vmem:[#allocation2 + $0xd0] sm:$0xf0]  ;;  %v6076_v57 = vor.u32 %v6864_v29, %v6073_v6  ;;  %2797 = vst [vmem:[#allocation2 + $0x140] sm:$0xf] %v2676_v19  ;;  %v1849_v39 = vrot.slane %v5781_v18, 5 }
 0x18b   : > { %v4705_v26 = vpop.f32.mrf.mxu0  ;;  %v6080_v15 = vor.u32 %v6869_v40, %v6079_v50  ;;  %2798 = vst [vmem:[#allocation2 + $0x164] sm:$0xf] %v2679_v53  ;;  %v5878_v29 = vld [vmem:[%s7335_s17 + $0x5c] sm:$0x1]  ;;  %v5780_v1 = vld [vmem:[%s7335_s17 + $0x48] sm:$0xe] }
 0x18c   : > { %v8236_v4 = vadd.f32 %v4703_v25, %v4615_v43  ;;  %v5876_v43 = vld [vmem:[%s7335_s17 + $0x54] sm:$0xf]  ;;  %v5782_v6 = vld [vmem:[%s7335_s17 + $0x50] sm:$0x1]  ;;  %v2233_v50 = vrot.slane %v2231_v17, 5  ;;  %v1851_v40 = vrot.slane %v1849_v39, 4 }
 0x18d   : > { %v2222_v55 = vshrl.u32 %v5876_v43, 16  ;;  %v2225_v33 = vshll.u32 %v5876_v43, 16  ;;  %v1852_v48 = vrot.slane %v5782_v6, 5  ;;  %v5136_v53 = vld [vmem:[%s8153_s15 + $0x30] sm:$0xff]  ;;  %v6872_v43 = vld [vmem:[#allocation2 + $0xec] sm:$0xf] }
 0x18e   : > { %v6101_v34 = vld [vmem:[#allocation2 + $0x10c] sm:$0xf0]  ;;  %5194 = vperm.xlu0 %7143, %v5136_v53   ;;  %v6873_v18 = vld [vmem:[#allocation2 + $0xf4] sm:$0xf] }
 0x18f   : > { %v4527_v14 = vpop.f32.mrf.mxu2  ;;  %v2224_v5 = vrot.slane %v2222_v55, 4  ;;  %v2227_v24 = vrot.slane %v2225_v33, 5  ;;  %v6877_v55 = vld [vmem:[#allocation2 + $0x110] sm:$0xf0]  ;;  %v1853_v33 = vsel %vm7496_vm5, %v1851_v40, %v1852_v48 }
 0x190   : > { %v4528_v25 = vadd.f32 %v4527_v14, %v4439_v22  ;;  %v4616_v62 = vpop.f32.mrf.mxu3  ;;  %v5818_v22 = vrot.slane %v5780_v1, 9  ;;  %1967 = vst [vmem:[#allocation2 + $0x1a0] sm:$0xf] %v1853_v33  ;;  %v6115_v1 = vld [vmem:[#allocation2 + $0xf8] sm:$0xf] }
 0x191   : > { %v4441_v49 = vpop.f32.mrf.mxu1  ;;  %v2228_v51 = vor.u32 %v2227_v24, %v2224_v5  ;;  %v5924_v24 = vld [vmem:[%s7335_s17 + $0x54] sm:$0xe] }
 0x192   : > { %v4617_v30 = vadd.f32 %v4616_v62, %v4528_v25  ;;  %v4442_v35 = vadd.f32 %v4441_v49, %v7797_v31  ;;  %v2237_v25 = vrot.slane %v2235_v9, 4  ;;  %v2241_v31 = vshll.u32 %v5878_v29, 16  ;;  %v5925_v62 = vld [vmem:[%s7335_s17 + $0x58] sm:$0xf] }
 0x193   : > { %v4708_v10 = vpop.f32.mrf.mxu0  ;;  %v2229_v14 = vrot.slane %v2228_v51, 4  ;;  %v1850_v49 = vsel %vm7496_vm5, %v5818_v22, %v1849_v39  ;;  %v6109_v9 = vld [vmem:[#allocation2 + $0x114] sm:$0xf0]  ;;  %v5926_v39 = vld [vmem:[%s7335_s17 + $0x5c] sm:$0x1]  ;;  %v5962_v29 = vrot.slane %v5924_v24, 9 }
 0x194   : > { %4756 = vmatmul.bf16.gmra.mxu1 %v6068_v46  ;;  %4845 = vmatmul.bf16.gmra.mxu2 %v6072_v8  ;;  %v8247_v3 = vadd.f32 %v4705_v26, %v4617_v30  ;;  %v6107_v30 = vld [vmem:[#allocation2 + $0xf0] sm:$0xf]  ;;  %1966 = vst [vmem:[#allocation2 + $0x17c] sm:$0xf] %v1850_v49  ;;  %v2238_v17 = vor.u32 %v2237_v25, %v2233_v50  ;;  %v2243_v5 = vrot.slane %v2241_v31, 5  ;;  %v2682_v51 = vrot.slane %v5925_v62, 5 }
 0x195   : > { %4934 = vmatmul.bf16.gmra.mxu3 %v6076_v57  ;;  %v5839_v57 = vld [vmem:[%s7335_s17 + $0x54] sm:$0xf]  ;;  %v6878_v22 = vld [vmem:[#allocation2 + $0x118] sm:$0xf0]  ;;  %v6104_v31 = vor.u32 %v6872_v43, %v6101_v34  ;;  %v6108_v62 = vor.u32 %v6877_v55, %v6107_v30  ;;  %v5879_v49 = vld [vmem:[%s7335_s17 + $0x60] sm:$0xf] }
 0x196   : > { %5023 = vmatmul.bf16.gmra.mxu0 %v6080_v15  ;;  %v5840_v15 = vld [vmem:[%s7335_s17 + $0x58] sm:$0xf]  ;;  %2031 = vst [vmem:[#allocation2 + $0x180] sm:$0xf] %v5839_v57  ;;  %v2239_v6 = vrot.slane %v2238_v17, 4  ;;  %v2683_v40 = vsel %vm7496_vm5, %v5962_v29, %v2682_v51  ;;  %v2684_v48 = vrot.slane %v2682_v51, 4  ;;  %v6116_v53 = vor.u32 %v6878_v22, %v6115_v1 }
 0x197   : > { %v4530_v41 = vpop.f32.mrf.mxu2  ;;  %2032 = vst [vmem:[#allocation2 + $0x1a4] sm:$0xf] %v5840_v15  ;;  %v5880_v57 = vld [vmem:[%s7335_s17 + $0x64] sm:$0xf]  ;;  %v2246_v17 = vshrl.u32 %v5879_v49, 16 }
 0x198   : > { %v4531_v0 = vadd.f32 %v4530_v41, %v4442_v35  ;;  %v4619_v26 = vpop.f32.mrf.mxu3  ;;  %v2234_v35 = vsel %vm7482_vm3, %v2229_v14, %v2233_v50  ;;  %v2244_v14 = vsel %vm7482_vm3, %v2239_v6, %v2243_v5  ;;  %2799 = vst [vmem:[#allocation2 + $0x188] sm:$0xf] %v2683_v40  ;;  %v2249_v5 = vshll.u32 %v5879_v49, 16  ;;  %v5784_v51 = vld [vmem:[%s7335_s17 + $0x58] sm:$0xf] }
 0x199   : > { %v4443_v19 = vpop.f32.mrf.mxu1  ;;  %2527 = vst [vmem:[#allocation2 + $0x184] sm:$0xf] %v2234_v35  ;;  %v2255_v24 = vshll.u32 %v5880_v57, 16  ;;  %v2259_v43 = vshrl.u32 %v5880_v57, 16  ;;  %v2248_v34 = vrot.slane %v2246_v17, 4 }
 0x19a   : > { %v4620_v46 = vadd.f32 %v4619_v26, %v4531_v0  ;;  %v2685_v0 = vrot.slane %v5926_v39, 5  ;;  %v4444_v26 = vadd.f32 %v4443_v19, %v7826_v28  ;;  %2528 = vst [vmem:[#allocation2 + $0x1a8] sm:$0xf] %v2244_v14  ;;  %v2251_v30 = vrot.slane %v2249_v5, 5  ;;  %v5881_v1 = vld [vmem:[%s7335_s17 + $0x68] sm:$0x1] }
 0x19b   : > { %v4710_v8 = vpop.f32.mrf.mxu0  ;;  %v2257_v35 = vrot.slane %v2255_v24, 5  ;;  %v2261_v39 = vrot.slane %v2259_v43, 4  ;;  %v5785_v22 = vld [vmem:[%s7335_s17 + $0x5c] sm:$0x1]  ;;  %v1856_v14 = vrot.slane %v5784_v51, 5 }
 0x19c   : > { %v8266_v41 = vadd.f32 %v4708_v10, %v4620_v46  ;;  %v2686_v28 = vsel %vm7496_vm5, %v2684_v48, %v2685_v0  ;;  %v6112_v46 = vor.u32 %v6873_v18, %v6109_v9  ;;  %v5134_v18 = vld [vmem:[%s8153_s15 + $0x20] sm:$0xff]  ;;  %v5137_v9 = vld [vmem:[%s8153_s15 + $0x38] sm:$0xff]  ;;  %v2252_v6 = vor.u32 %v2251_v30, %v2248_v34  ;;  %v6881_v17 = vld [vmem:[#allocation2 + $0x134] sm:$0xf] }
 0x19d   : > { %2800 = vst [vmem:[#allocation2 + $0x1ac] sm:$0xf] %v2686_v28  ;;  %5184 = vperm.xlu2 %7145, %v5134_v18   ;;  %5199 = vperm.xlu1 %7144, %v5137_v9   ;;  %v5928_v28 = vld [vmem:[%s7335_s17 + $0x64] sm:$0xf]  ;;  %v5841_v57 = vld [vmem:[%s7335_s17 + $0x60] sm:$0xf] }
 0x19e   : > { %v6137_v5 = vld [vmem:[#allocation2 + $0x154] sm:$0xf0]  ;;  %v6886_v43 = vld [vmem:[#allocation2 + $0x158] sm:$0xf0]  ;;  %v1858_v34 = vrot.slane %v1856_v14, 4 }
 0x19f   : > { %v4532_v50 = vpop.f32.mrf.mxu2  ;;  %v6143_v24 = vld [vmem:[#allocation2 + $0x138] sm:$0xf]  ;;  %v5927_v18 = vld [vmem:[%s7335_s17 + $0x60] sm:$0xe]  ;;  %v6882_v9 = vld [vmem:[#allocation2 + $0x13c] sm:$0xf] }
 0x1a0   : > { %v4533_v10 = vadd.f32 %v4532_v50, %v4444_v26  ;;  %v4621_v25 = vpop.f32.mrf.mxu3  ;;  %v5783_v26 = vld [vmem:[%s7335_s17 + $0x54] sm:$0xe]  ;;  %2033 = vst [vmem:[#allocation2 + $0x1c8] sm:$0xf] %v5841_v57  ;;  %v5929_v51 = vld [vmem:[%s7335_s17 + $0x68] sm:$0x1] }
 0x1a1   : > { %v4446_v19 = vpop.f32.mrf.mxu1  ;;  %v5819_v50 = vrot.slane %v5783_v26, 9  ;;  %v6151_v26 = vld [vmem:[#allocation2 + $0x140] sm:$0xf] }
 0x1a2   : > { %v4622_v15 = vadd.f32 %v4621_v25, %v4533_v10  ;;  %v4447_v29 = vadd.f32 %v4446_v19, %v7843_v16  ;;  %v1859_v25 = vrot.slane %v5785_v22, 5  ;;  %v2253_v16 = vrot.slane %v2252_v6, 4 }
 0x1a3   : > { %v4713_v33 = vpop.f32.mrf.mxu0  ;;  %v1857_v49 = vsel %vm7496_vm5, %v5819_v50, %v1856_v14  ;;  %v2689_v6 = vrot.slane %v5928_v28, 5  ;;  %v6887_v50 = vld [vmem:[#allocation2 + $0x160] sm:$0xf0]  ;;  %v6144_v28 = vor.u32 %v6886_v43, %v6143_v24 }
 0x1a4   : > { %4761 = vmatmul.bf16.gmra.mxu1 %v6104_v31  ;;  %4850 = vmatmul.bf16.gmra.mxu2 %v6108_v62  ;;  %v8277_v55 = vadd.f32 %v4710_v8, %v4622_v15  ;;  %v2262_v8 = vor.u32 %v2261_v39, %v2257_v35  ;;  %v2265_v62 = vshll.u32 %v5881_v1, 16  ;;  %v5842_v15 = vld [vmem:[%s7335_s17 + $0x64] sm:$0xf]  ;;  %1968 = vst [vmem:[#allocation2 + $0x1c4] sm:$0xf] %v1857_v49  ;;  %v5963_v1 = vrot.slane %v5927_v18, 9 }
 0x1a5   : > { %4939 = vmatmul.bf16.gmra.mxu3 %v6112_v46  ;;  %v6145_v39 = vld [vmem:[#allocation2 + $0x15c] sm:$0xf0]  ;;  %v1860_v22 = vsel %vm7496_vm5, %v1858_v34, %v1859_v25  ;;  %2034 = vst [vmem:[#allocation2 + $0x1ec] sm:$0xf] %v5842_v15  ;;  %v5883_v49 = vld [vmem:[%s7335_s17 + $0x70] sm:$0xf] }
 0x1a6   : > { %5028 = vmatmul.bf16.gmra.mxu0 %v6116_v53  ;;  %v2263_v31 = vrot.slane %v2262_v8, 4  ;;  %v5135_v53 = vld [vmem:[%s8153_s15 + $0x28] sm:$0xff]  ;;  %v2267_v30 = vrot.slane %v2265_v62, 5  ;;  %1969 = vst [vmem:[#allocation2 + $0x1e8] sm:$0xf] %v1860_v22  ;;  %v6140_v62 = vor.u32 %v6881_v17, %v6137_v5  ;;  %v2279_v17 = vshll.u32 %v5883_v49, 16 }
 0x1a7   : > { %v4535_v0 = vpop.f32.mrf.mxu2  ;;  %5189 = vperm.xlu2 %7145, %v5135_v53   ;;  %v5882_v53 = vld [vmem:[%s7335_s17 + $0x6c] sm:$0xf]  ;;  %v2283_v5 = vshrl.u32 %v5883_v49, 16  ;;  %v5844_v49 = vld [vmem:[%s7335_s17 + $0x70] sm:$0xf] }
 0x1a8   : > { %v4536_v40 = vadd.f32 %v4535_v0, %v4447_v29  ;;  %v4624_v48 = vpop.f32.mrf.mxu3  ;;  %v2258_v29 = vsel %vm7482_vm3, %v2253_v16, %v2257_v35  ;;  %v2268_v8 = vsel %vm7482_vm3, %v2263_v31, %v2267_v30  ;;  %v2691_v35 = vrot.slane %v2689_v6, 4  ;;  %2036 = vst [vmem:[#allocation2 + $0x234] sm:$0xf] %v5844_v49 }
 0x1a9   : > { %v4448_v10 = vpop.f32.mrf.mxu1  ;;  %2529 = vst [vmem:[#allocation2 + $0x1cc] sm:$0xf] %v2258_v29  ;;  %v2270_v34 = vshrl.u32 %v5882_v53, 16  ;;  %v2273_v30 = vshll.u32 %v5882_v53, 16  ;;  %v2281_v29 = vrot.slane %v2279_v17, 5  ;;  %v2285_v22 = vrot.slane %v2283_v5, 4 }
 0x1aa   : > { %v4625_v19 = vadd.f32 %v4624_v48, %v4536_v40  ;;  %v2692_v40 = vrot.slane %v5929_v51, 5  ;;  %v4449_v48 = vadd.f32 %v4448_v10, %v7865_v27  ;;  %2530 = vst [vmem:[#allocation2 + $0x1f0] sm:$0xf] %v2268_v8  ;;  %v6148_v10 = vor.u32 %v6882_v9, %v6145_v39  ;;  %v5139_v9 = vld [vmem:[%s8153_s15 + $0x48] sm:$0xff]  ;;  %v5787_v39 = vld [vmem:[%s7335_s17 + $0x64] sm:$0xf] }
 0x1ab   : > { %v4715_v46 = vpop.f32.mrf.mxu0  ;;  %v2272_v24 = vrot.slane %v2270_v34, 4  ;;  %v2275_v43 = vrot.slane %v2273_v30, 5  ;;  %5209 = vperm.xlu0 %7143, %v5139_v9   ;;  %v5843_v53 = vld [vmem:[%s7335_s17 + $0x6c] sm:$0xf]  ;;  %v6173_v34 = vld [vmem:[#allocation2 + $0x19c] sm:$0xf0] }
 0x1ac   : > { %v8296_v0 = vadd.f32 %v4713_v33, %v4625_v19  ;;  %v2690_v33 = vsel %vm7496_vm5, %v5963_v1, %v2689_v6  ;;  %v2693_v31 = vsel %vm7496_vm5, %v2691_v35, %v2692_v40  ;;  %v6152_v19 = vor.u32 %v6887_v50, %v6151_v26  ;;  %v5884_v6 = vld [vmem:[%s7335_s17 + $0x74] sm:$0x1]  ;;  %v5786_v40 = vld [vmem:[%s7335_s17 + $0x60] sm:$0xe]  ;;  %v6895_v17 = vld [vmem:[#allocation2 + $0x1a0] sm:$0xf0] }
 0x1ad   : > { %2801 = vst [vmem:[#allocation2 + $0x1d0] sm:$0xf] %v2690_v33  ;;  %v1863_v1 = vrot.slane %v5787_v39, 5  ;;  %v2276_v26 = vor.u32 %v2275_v43, %v2272_v24  ;;  %v5820_v33 = vrot.slane %v5786_v40, 9  ;;  %v6179_v30 = vld [vmem:[#allocation2 + $0x180] sm:$0xf] }
 0x1ae   : > { %2802 = vst [vmem:[#allocation2 + $0x1f4] sm:$0xf] %v2693_v31  ;;  %v5930_v9 = vld [vmem:[%s7335_s17 + $0x6c] sm:$0xe]  ;;  %v6891_v39 = vld [vmem:[#allocation2 + $0x184] sm:$0xf] }
 0x1af   : > { %v4537_v14 = vpop.f32.mrf.mxu2  ;;  %v1865_v35 = vrot.slane %v1863_v1, 4  ;;  %v6187_v40 = vld [vmem:[#allocation2 + $0x188] sm:$0xf]  ;;  %2035 = vst [vmem:[#allocation2 + $0x210] sm:$0xf] %v5843_v53 }
 0x1b0   : > { %v4538_v16 = vadd.f32 %v4537_v14, %v4449_v48  ;;  %v4626_v25 = vpop.f32.mrf.mxu3  ;;  %v5788_v48 = vld [vmem:[%s7335_s17 + $0x68] sm:$0x1] }
 0x1b1   : > { %v4451_v27 = vpop.f32.mrf.mxu1 }
 0x1b2   : > { %v4627_v57 = vadd.f32 %v4626_v25, %v4538_v16  ;;  %v4452_v51 = vadd.f32 %v4451_v27, %v7709_v58  ;;  %v1866_v16 = vrot.slane %v5788_v48, 5  ;;  %v2277_v25 = vrot.slane %v2276_v26, 4 }
 0x1b3   : > { %v4718_v15 = vpop.f32.mrf.mxu0  ;;  %v2286_v58 = vor.u32 %v2285_v22, %v2281_v29  ;;  %v5964_v26 = vrot.slane %v5930_v9, 9  ;;  %v5138_v9 = vld [vmem:[%s8153_s15 + $0x40] sm:$0xff] }
 0x1b4   : > { %4766 = vmatmul.bf16.gmra.mxu1 %v6140_v62  ;;  %4855 = vmatmul.bf16.gmra.mxu2 %v6144_v28  ;;  %v8309_v18 = vadd.f32 %v4715_v46, %v4627_v57  ;;  %v2289_v62 = vshll.u32 %v5884_v6, 16  ;;  %v5931_v28 = vld [vmem:[%s7335_s17 + $0x70] sm:$0xf]  ;;  %v6890_v57 = vld [vmem:[#allocation2 + $0x17c] sm:$0xf]  ;;  %v1867_v5 = vsel %vm7496_vm5, %v1865_v35, %v1866_v16 }
 0x1b5   : > { %4944 = vmatmul.bf16.gmra.mxu3 %v6148_v10  ;;  %v5140_v10 = vld [vmem:[%s8153_s15 + $0x50] sm:$0xff]  ;;  %v2287_v24 = vrot.slane %v2286_v58, 4  ;;  %1971 = vst [vmem:[#allocation2 + $0x230] sm:$0xf] %v1867_v5  ;;  %v2696_v22 = vrot.slane %v5931_v28, 5  ;;  %v6176_v58 = vor.u32 %v6890_v57, %v6173_v34  ;;  %5204 = vperm.xlu2 %7145, %v5138_v9  }
 0x1b6   : > { %5033 = vmatmul.bf16.gmra.mxu0 %v6152_v19  ;;  %v1864_v19 = vsel %vm7496_vm5, %v5820_v33, %v1863_v1  ;;  %5214 = vperm.xlu1 %7144, %v5140_v10   ;;  %v2291_v43 = vrot.slane %v2289_v62, 5  ;;  %v2282_v1 = vsel %vm7482_vm3, %v2277_v25, %v2281_v29  ;;  %v5932_v6 = vld [vmem:[%s7335_s17 + $0x74] sm:$0x1]  ;;  %v6896_v33 = vld [vmem:[#allocation2 + $0x1a8] sm:$0xf0]  ;;  %v6180_v62 = vor.u32 %v6895_v17, %v6179_v30 }
 0x1b7   : > { %v4540_v8 = vpop.f32.mrf.mxu2  ;;  %1970 = vst [vmem:[#allocation2 + $0x20c] sm:$0xf] %v1864_v19  ;;  %v2697_v29 = vsel %vm7496_vm5, %v5964_v26, %v2696_v22  ;;  %v2698_v35 = vrot.slane %v2696_v22, 4  ;;  %v5885_v10 = vld [vmem:[%s7335_s17 + $0x78] sm:$0xf] }
 0x1b8   : > { %v4541_v46 = vadd.f32 %v4540_v8, %v4452_v51  ;;  %v4629_v50 = vpop.f32.mrf.mxu3  ;;  %v6181_v51 = vld [vmem:[#allocation2 + $0x1a4] sm:$0xf0]  ;;  %v2292_v48 = vsel %vm7482_vm3, %v2287_v24, %v2291_v43  ;;  %2531 = vst [vmem:[#allocation2 + $0x214] sm:$0xf] %v2282_v1  ;;  %v5886_v19 = vld [vmem:[%s7335_s17 + $0x7c] sm:$0xf] }
 0x1b9   : > { %v4453_v14 = vpop.f32.mrf.mxu1  ;;  %2532 = vst [vmem:[#allocation2 + $0x238] sm:$0xf] %v2292_v48  ;;  %v2294_v5 = vshrl.u32 %v5885_v10, 16  ;;  %v2297_v24 = vshll.u32 %v5885_v10, 16  ;;  %v2303_v57 = vshll.u32 %v5886_v19, 16  ;;  %v2307_v34 = vshrl.u32 %v5886_v19, 16 }
 0x1ba   : > { %v4630_v31 = vadd.f32 %v4629_v50, %v4541_v46  ;;  %v2699_v46 = vrot.slane %v5932_v6, 5  ;;  %v4454_v50 = vadd.f32 %v4453_v14, %v7738_v38  ;;  %v6184_v38 = vor.u32 %v6891_v39, %v6181_v51  ;;  %2803 = vst [vmem:[#allocation2 + $0x218] sm:$0xf] %v2697_v29  ;;  %v5790_v39 = vld [vmem:[%s7335_s17 + $0x70] sm:$0xf] }
 0x1bb   : > { %v4720_v27 = vpop.f32.mrf.mxu0  ;;  %v6188_v14 = vor.u32 %v6896_v33, %v6187_v40  ;;  %v2296_v30 = vrot.slane %v2294_v5, 4  ;;  %v2299_v17 = vrot.slane %v2297_v24, 5  ;;  %v2305_v51 = vrot.slane %v2303_v57, 5  ;;  %v5887_v26 = vld [vmem:[%s7335_s17 + $0x80] sm:$0x1] }
 0x1bc   : > { %v8329_v8 = vadd.f32 %v4718_v15, %v4630_v31  ;;  %v2700_v28 = vsel %vm7496_vm5, %v2698_v35, %v2699_v46  ;;  %v1870_v6 = vrot.slane %v5790_v39, 5  ;;  %v2309_v40 = vrot.slane %v2307_v34, 4  ;;  %v5789_v46 = vld [vmem:[%s7335_s17 + $0x6c] sm:$0xe]  ;;  %v5845_v10 = vld [vmem:[%s7335_s17 + $0x78] sm:$0xf] }
 0x1bd   : > { %2804 = vst [vmem:[#allocation2 + $0x23c] sm:$0xf] %v2700_v28  ;;  %v2300_v22 = vor.u32 %v2299_v17, %v2296_v30  ;;  %v5821_v29 = vrot.slane %v5789_v46, 9  ;;  %v5846_v19 = vld [vmem:[%s7335_s17 + $0x7c] sm:$0xf] }
 0x1be   : > { %v1872_v35 = vrot.slane %v1870_v6, 4  ;;  %v6209_v5 = vld [vmem:[#allocation2 + $0x1e4] sm:$0xf0]  ;;  %v6904_v57 = vld [vmem:[#allocation2 + $0x1e8] sm:$0xf0] }
 0x1bf   : > { %v4542_v16 = vpop.f32.mrf.mxu2  ;;  %v6215_v24 = vld [vmem:[#allocation2 + $0x1c8] sm:$0xf]  ;;  %v5933_v9 = vld [vmem:[%s7335_s17 + $0x78] sm:$0xe]  ;;  %v6900_v39 = vld [vmem:[#allocation2 + $0x1cc] sm:$0xf] }
 0x1c0   : > { %v4543_v15 = vadd.f32 %v4542_v16, %v4454_v50  ;;  %v4631_v25 = vpop.f32.mrf.mxu3  ;;  %v5791_v50 = vld [vmem:[%s7335_s17 + $0x74] sm:$0x1]  ;;  %v6223_v46 = vld [vmem:[#allocation2 + $0x1d0] sm:$0xf]  ;;  %2037 = vst [vmem:[#allocation2 + $0x258] sm:$0xf] %v5845_v10 }
 0x1c1   : > { %v4456_v31 = vpop.f32.mrf.mxu1  ;;  %2038 = vst [vmem:[#allocation2 + $0x27c] sm:$0xf] %v5846_v19  ;;  %v5888_v10 = vld [vmem:[%s7335_s17 + $0x84] sm:$0xf]  ;;  %v5889_v19 = vld [vmem:[%s7335_s17 + $0x88] sm:$0xf] }
 0x1c2   : > { %v4632_v53 = vadd.f32 %v4631_v25, %v4543_v15  ;;  %v4457_v1 = vadd.f32 %v4456_v31, %v7756_v11  ;;  %v1873_v15 = vrot.slane %v5791_v50, 5  ;;  %v2301_v25 = vrot.slane %v2300_v22, 4 }
 0x1c3   : > { %v4723_v49 = vpop.f32.mrf.mxu0  ;;  %v2310_v11 = vor.u32 %v2309_v40, %v2305_v51  ;;  %v5965_v22 = vrot.slane %v5933_v9, 9 }
 0x1c4   : > { %4771 = vmatmul.bf16.gmra.mxu1 %v6176_v58  ;;  %4860 = vmatmul.bf16.gmra.mxu2 %v6180_v62  ;;  %v8340_v43 = vadd.f32 %v4720_v27, %v4632_v53  ;;  %v2313_v58 = vshll.u32 %v5887_v26, 16  ;;  %v5934_v62 = vld [vmem:[%s7335_s17 + $0x7c] sm:$0xf]  ;;  %v6899_v53 = vld [vmem:[#allocation2 + $0x1c4] sm:$0xf]  ;;  %v1874_v34 = vsel %vm7496_vm5, %v1872_v35, %v1873_v15 }
 0x1c5   : > { %4949 = vmatmul.bf16.gmra.mxu3 %v6184_v38  ;;  %v5142_v38 = vld [vmem:[%s8153_s15 + $0x60] sm:$0xff]  ;;  %v2311_v30 = vrot.slane %v2310_v11, 4  ;;  %1973 = vst [vmem:[#allocation2 + $0x278] sm:$0xf] %v1874_v34  ;;  %v2703_v40 = vrot.slane %v5934_v62, 5  ;;  %v6212_v11 = vor.u32 %v6899_v53, %v6209_v5  ;;  %v2318_v34 = vshrl.u32 %v5888_v10, 16 }
 0x1c6   : > { %5038 = vmatmul.bf16.gmra.mxu0 %v6188_v14  ;;  %v1871_v14 = vsel %vm7496_vm5, %v5821_v29, %v1870_v6  ;;  %5224 = vperm.xlu0 %7143, %v5142_v38   ;;  %v2315_v17 = vrot.slane %v2313_v58, 5  ;;  %v2306_v6 = vsel %vm7482_vm3, %v2301_v25, %v2305_v51  ;;  %v5935_v26 = vld [vmem:[%s7335_s17 + $0x80] sm:$0x1]  ;;  %v6905_v29 = vld [vmem:[#allocation2 + $0x1f0] sm:$0xf0]  ;;  %v6216_v58 = vor.u32 %v6904_v57, %v6215_v24  ;;  %v5143_v57 = vld [vmem:[%s8153_s15 + $0x68] sm:$0xff] }
 0x1c7   : > { %v4545_v48 = vpop.f32.mrf.mxu2  ;;  %1972 = vst [vmem:[#allocation2 + $0x254] sm:$0xf] %v1871_v14  ;;  %v2704_v35 = vsel %vm7496_vm5, %v5965_v22, %v2703_v40  ;;  %v2705_v15 = vrot.slane %v2703_v40, 4  ;;  %v2327_v53 = vshll.u32 %v5889_v19, 16  ;;  %v2331_v5 = vshrl.u32 %v5889_v19, 16  ;;  %5229 = vperm.xlu1 %7144, %v5143_v57  }
 0x1c8   : > { %v4546_v27 = vadd.f32 %v4545_v48, %v4457_v1  ;;  %v4634_v33 = vpop.f32.mrf.mxu3  ;;  %v6217_v1 = vld [vmem:[#allocation2 + $0x1ec] sm:$0xf0]  ;;  %v2316_v50 = vsel %vm7482_vm3, %v2311_v30, %v2315_v17  ;;  %2533 = vst [vmem:[#allocation2 + $0x25c] sm:$0xf] %v2306_v6  ;;  %v2321_v30 = vshll.u32 %v5888_v10, 16  ;;  %v2320_v17 = vrot.slane %v2318_v34, 4 }
 0x1c9   : > { %v4458_v16 = vpop.f32.mrf.mxu1  ;;  %2534 = vst [vmem:[#allocation2 + $0x280] sm:$0xf] %v2316_v50  ;;  %v2329_v40 = vrot.slane %v2327_v53, 5  ;;  %v6251_v10 = vld [vmem:[#allocation2 + $0x210] sm:$0xf] }
 0x1ca   : > { %v4635_v28 = vadd.f32 %v4634_v33, %v4546_v27  ;;  %v2706_v27 = vrot.slane %v5935_v26, 5  ;;  %v4459_v33 = vadd.f32 %v4458_v16, %v7777_v61  ;;  %v6220_v61 = vor.u32 %v6900_v39, %v6217_v1  ;;  %2805 = vst [vmem:[#allocation2 + $0x260] sm:$0xf] %v2704_v35  ;;  %v5793_v1 = vld [vmem:[%s7335_s17 + $0x7c] sm:$0xf] }
 0x1cb   : > { %v4725_v31 = vpop.f32.mrf.mxu0  ;;  %v6224_v16 = vor.u32 %v6905_v29, %v6223_v46  ;;  %v2323_v9 = vrot.slane %v2321_v30, 5  ;;  %v1877_v26 = vrot.slane %v5793_v1, 5  ;;  %v5890_v29 = vld [vmem:[%s7335_s17 + $0x8c] sm:$0x1]  ;;  %v6913_v19 = vld [vmem:[#allocation2 + $0x230] sm:$0xf0] }
 0x1cc   : > { %v8360_v48 = vadd.f32 %v4723_v49, %v4635_v28  ;;  %v2707_v62 = vsel %vm7496_vm5, %v2705_v15, %v2706_v27  ;;  %v5792_v27 = vld [vmem:[%s7335_s17 + $0x78] sm:$0xe]  ;;  %v2337_v53 = vshll.u32 %v5890_v29, 16 }
 0x1cd   : > { %2806 = vst [vmem:[#allocation2 + $0x284] sm:$0xf] %v2707_v62  ;;  %v2324_v22 = vor.u32 %v2323_v9, %v2320_v17  ;;  %v5822_v15 = vrot.slane %v5792_v27, 9  ;;  %v5936_v62 = vld [vmem:[%s7335_s17 + $0x84] sm:$0xe]  ;;  %v5141_v17 = vld [vmem:[%s8153_s15 + $0x58] sm:$0xff] }
 0x1ce   : > { %v6253_v57 = vld [vmem:[#allocation2 + $0x234] sm:$0xf0]  ;;  %v5847_v9 = vld [vmem:[%s7335_s17 + $0x84] sm:$0xf]  ;;  %5219 = vperm.xlu2 %7145, %v5141_v17  }
 0x1cf   : > { %v4547_v51 = vpop.f32.mrf.mxu2  ;;  %v1878_v34 = vsel %vm7496_vm5, %v5822_v15, %v1877_v26  ;;  %v6259_v27 = vld [vmem:[#allocation2 + $0x218] sm:$0xf]  ;;  %2039 = vst [vmem:[#allocation2 + $0x2a0] sm:$0xf] %v5847_v9 }
 0x1d0   : > { %v4548_v49 = vadd.f32 %v4547_v51, %v4459_v33  ;;  %v4636_v25 = vpop.f32.mrf.mxu3  ;;  %v5794_v33 = vld [vmem:[%s7335_s17 + $0x80] sm:$0x1]  ;;  %v1879_v51 = vrot.slane %v1877_v26, 4  ;;  %1974 = vst [vmem:[#allocation2 + $0x29c] sm:$0xf] %v1878_v34 }
 0x1d1   : > { %v4461_v28 = vpop.f32.mrf.mxu1 }
 0x1d2   : > { %v4637_v38 = vadd.f32 %v4636_v25, %v4548_v49  ;;  %v4462_v39 = vadd.f32 %v4461_v28, %v7800_v37  ;;  %v1880_v49 = vrot.slane %v5794_v33, 5  ;;  %v2325_v37 = vrot.slane %v2324_v22, 4  ;;  %v5937_v28 = vld [vmem:[%s7335_s17 + $0x88] sm:$0xf]  ;;  %v6914_v33 = vld [vmem:[#allocation2 + $0x238] sm:$0xf0] }
 0x1d3   : > { %v4728_v14 = vpop.f32.mrf.mxu0  ;;  %v2339_v22 = vrot.slane %v2337_v53, 5  ;;  %v5892_v53 = vld [vmem:[%s7335_s17 + $0x94] sm:$0xf] }
 0x1d4   : > { %4776 = vmatmul.bf16.gmra.mxu1 %v6212_v11  ;;  %4865 = vmatmul.bf16.gmra.mxu2 %v6216_v58  ;;  %v8371_v24 = vadd.f32 %v4725_v31, %v4637_v38  ;;  %v2333_v31 = vrot.slane %v2331_v5, 4  ;;  %v6245_v38 = vld [vmem:[#allocation2 + $0x22c] sm:$0xf0]  ;;  %v1881_v30 = vsel %vm7496_vm5, %v1879_v51, %v1880_v49  ;;  %v6909_v5 = vld [vmem:[#allocation2 + $0x214] sm:$0xf]  ;;  %v2330_v29 = vsel %vm7482_vm3, %v2325_v37, %v2329_v40 }
 0x1d5   : > { %4954 = vmatmul.bf16.gmra.mxu3 %v6220_v61  ;;  %v5938_v61 = vld [vmem:[%s7335_s17 + $0x8c] sm:$0x1]  ;;  %1975 = vst [vmem:[#allocation2 + $0x2c0] sm:$0xf] %v1881_v30  ;;  %v5891_v30 = vld [vmem:[%s7335_s17 + $0x90] sm:$0xf] }
 0x1d6   : > { %5043 = vmatmul.bf16.gmra.mxu0 %v6224_v16  ;;  %v2334_v58 = vor.u32 %v2333_v31, %v2329_v40  ;;  %v6908_v16 = vld [vmem:[#allocation2 + $0x20c] sm:$0xf]  ;;  %v5966_v31 = vrot.slane %v5936_v62, 9  ;;  %v6252_v62 = vor.u32 %v6913_v19, %v6251_v10  ;;  %2535 = vst [vmem:[#allocation2 + $0x2a4] sm:$0xf] %v2330_v29  ;;  %v2351_v10 = vshll.u32 %v5892_v53, 16 }
 0x1d7   : > { %v4550_v6 = vpop.f32.mrf.mxu2  ;;  %v2355_v19 = vshrl.u32 %v5892_v53, 16  ;;  %v6922_v53 = vld [vmem:[#allocation2 + $0x278] sm:$0xf0] }
 0x1d8   : > { %v4551_v46 = vadd.f32 %v4550_v6, %v4462_v39  ;;  %v4639_v50 = vpop.f32.mrf.mxu3  ;;  %v5848_v39 = vld [vmem:[%s7335_s17 + $0x88] sm:$0xf]  ;;  %v2335_v1 = vrot.slane %v2334_v58, 4  ;;  %v6248_v58 = vor.u32 %v6908_v16, %v6245_v38  ;;  %v2342_v16 = vshrl.u32 %v5891_v30, 16 }
 0x1d9   : > { %v4463_v35 = vpop.f32.mrf.mxu1  ;;  %2040 = vst [vmem:[#allocation2 + $0x2c4] sm:$0xf] %v5848_v39  ;;  %v2345_v38 = vshll.u32 %v5891_v30, 16  ;;  %v2353_v9 = vrot.slane %v2351_v10, 5  ;;  %v2357_v39 = vrot.slane %v2355_v19, 4 }
 0x1da   : > { %v4640_v25 = vadd.f32 %v4639_v50, %v4551_v46  ;;  %v2710_v46 = vrot.slane %v5937_v28, 5  ;;  %v2713_v50 = vrot.slane %v5938_v61, 5  ;;  %v4464_v26 = vadd.f32 %v4463_v35, %v7828_v32  ;;  %v6287_v30 = vld [vmem:[#allocation2 + $0x258] sm:$0xf]  ;;  %v5849_v10 = vld [vmem:[%s7335_s17 + $0x90] sm:$0xf] }
 0x1db   : > { %v4730_v11 = vpop.f32.mrf.mxu0  ;;  %v6256_v28 = vor.u32 %v6909_v5, %v6253_v57  ;;  %v6260_v61 = vor.u32 %v6914_v33, %v6259_v27  ;;  %v2344_v57 = vrot.slane %v2342_v16, 4  ;;  %v2347_v17 = vrot.slane %v2345_v38, 5  ;;  %v5850_v19 = vld [vmem:[%s7335_s17 + $0x94] sm:$0xf]  ;;  %2041 = vst [vmem:[#allocation2 + $0x2e8] sm:$0xf] %v5849_v10 }
 0x1dc   : > { %v8389_v6 = vadd.f32 %v4728_v14, %v4640_v25  ;;  %v2340_v14 = vsel %vm7482_vm3, %v2335_v1, %v2339_v22  ;;  %v2712_v51 = vrot.slane %v2710_v46, 4  ;;  %v2711_v32 = vsel %vm7496_vm5, %v5966_v31, %v2710_v46  ;;  %v8835_v1 = vld [vmem:[#allocation6_spill] sm:$0xff]  ;;  %v5145_v31 = vld [vmem:[%s8153_s15 + $0x78] sm:$0xff]  ;;  %v5796_v46 = vld [vmem:[%s7335_s17 + $0x88] sm:$0xf] }
 0x1dd   : > { %2536 = vst [vmem:[#allocation2 + $0x2c8] sm:$0xf] %v2340_v14  ;;  %5239 = vperm.xlu0 %7143, %v5145_v31   ;;  %v2348_v27 = vor.u32 %v2347_v17, %v2344_v57  ;;  %v5797_v14 = vld [vmem:[%s7335_s17 + $0x8c] sm:$0x1]  ;;  %v6918_v17 = vld [vmem:[#allocation2 + $0x25c] sm:$0xf] }
 0x1de   : > { %8833 = vst [vmem:[#allocation10_spill] sm:$0xff] %v8389_v6  ;;  %v2714_v40 = vsel %vm7496_vm5, %v2712_v51, %v2713_v50 }
 0x1df   : > { %v4552_v15 = vpop.f32.mrf.mxu2  ;;  %2807 = vst [vmem:[#allocation2 + $0x2a8] sm:$0xf] %v2711_v32  ;;  %v2349_v32 = vrot.slane %v2348_v27, 4 }
 0x1e0   : > { %v4553_v49 = vadd.f32 %v4552_v15, %v4464_v26  ;;  %v4641_v25 = vpop.f32.mrf.mxu3  ;;  %2808 = vst [vmem:[#allocation2 + $0x2cc] sm:$0xf] %v2714_v40  ;;  %v1884_v26 = vrot.slane %v5796_v46, 5  ;;  %v5795_v15 = vld [vmem:[%s7335_s17 + $0x84] sm:$0xe] }
 0x1e1   : > { %v4466_v35 = vpop.f32.mrf.mxu1  ;;  %v6917_v40 = vld [vmem:[#allocation2 + $0x254] sm:$0xf]  ;;  %2042 = vst [vmem:[#allocation2 + $0x30c] sm:$0xf] %v5850_v19 }
 0x1e2   : > { %v4642_v37 = vadd.f32 %v4641_v25, %v4553_v49  ;;  %v4467_v22 = vadd.f32 %v4466_v35, %v8835_v1  ;;  %v5823_v49 = vrot.slane %v5795_v15, 9  ;;  %v1886_v25 = vrot.slane %v1884_v26, 4  ;;  %v6295_v1 = vld [vmem:[#allocation2 + $0x260] sm:$0xf]  ;;  %v5940_v46 = vld [vmem:[%s7335_s17 + $0x94] sm:$0xf] }
 0x1e3   : > { %v4733_v34 = vpop.f32.mrf.mxu0  ;;  %v8837_v15 = vld [vmem:[#allocation7_spill] sm:$0xff] }
 0x1e4   : > { %4781 = vmatmul.bf16.gmra.mxu1 %v6248_v58  ;;  %4870 = vmatmul.bf16.gmra.mxu2 %v6252_v62  ;;  %v8402_v5 = vadd.f32 %v4730_v11, %v4642_v37  ;;  %v2358_v11 = vor.u32 %v2357_v39, %v2353_v9  ;;  %v1887_v58 = vrot.slane %v5797_v14, 5  ;;  %v5893_v62 = vld [vmem:[%s7335_s17 + $0x98] sm:$0x1]  ;;  %v1885_v16 = vsel %vm7496_vm5, %v5823_v49, %v1884_v26  ;;  %v6289_v39 = vld [vmem:[#allocation2 + $0x27c] sm:$0xf0] }
 0x1e5   : > { %4959 = vmatmul.bf16.gmra.mxu3 %v6256_v28  ;;  %v6281_v37 = vld [vmem:[#allocation2 + $0x274] sm:$0xf0]  ;;  %1976 = vst [vmem:[#allocation2 + $0x2e4] sm:$0xf] %v1885_v16  ;;  %v2361_v31 = vshll.u32 %v5893_v62, 16  ;;  %v2354_v26 = vsel %vm7482_vm3, %v2349_v32, %v2353_v9  ;;  %v5146_v49 = vld [vmem:[%s8153_s15 + $0x80] sm:$0xff]  ;;  %v6288_v32 = vor.u32 %v6922_v53, %v6287_v30 }
 0x1e6   : > { %8834 = vst [vmem:[#allocation11_spill] sm:$0xff] %v8402_v5  ;;  %5048 = vmatmul.bf16.gmra.mxu0 %v6260_v61  ;;  %v5939_v61 = vld [vmem:[%s7335_s17 + $0x90] sm:$0xe]  ;;  %v1888_v38 = vsel %vm7496_vm5, %v1886_v25, %v1887_v58  ;;  %v2359_v57 = vrot.slane %v2358_v11, 4  ;;  %5244 = vperm.xlu1 %7144, %v5146_v49   ;;  %v6284_v9 = vor.u32 %v6917_v40, %v6281_v37  ;;  %v5799_v49 = vld [vmem:[%s7335_s17 + $0x94] sm:$0xf] }
 0x1e7   : > { %v4555_v50 = vpop.f32.mrf.mxu2  ;;  %1977 = vst [vmem:[#allocation2 + $0x308] sm:$0xf] %v1888_v38  ;;  %v2363_v11 = vrot.slane %v2361_v31, 5  ;;  %v6292_v38 = vor.u32 %v6918_v17, %v6289_v39 }
 0x1e8   : > { %v4556_v33 = vadd.f32 %v4555_v50, %v4467_v22  ;;  %v4644_v29 = vpop.f32.mrf.mxu3  ;;  %v6923_v22 = vld [vmem:[#allocation2 + $0x280] sm:$0xf0]  ;;  %v5967_v50 = vrot.slane %v5939_v61, 9  ;;  %2537 = vst [vmem:[#allocation2 + $0x2ec] sm:$0xf] %v2354_v26  ;;  %v5149_v26 = vld [vmem:[%s8153_s15 + $0x98] sm:$0xff] }
 0x1e9   : > { %v4468_v51 = vpop.f32.mrf.mxu1  ;;  %v6296_v10 = vor.u32 %v6923_v22, %v6295_v1  ;;  %v5144_v22 = vld [vmem:[%s8153_s15 + $0x70] sm:$0xff] }
 0x1ea   : > { %v4645_v35 = vadd.f32 %v4644_v29, %v4556_v33  ;;  %v5941_v33 = vld [vmem:[%s7335_s17 + $0x98] sm:$0x1]  ;;  %v2717_v29 = vrot.slane %v5940_v46, 5  ;;  %v4469_v14 = vadd.f32 %v4468_v51, %v8837_v15  ;;  %v2364_v51 = vsel %vm7482_vm3, %v2359_v57, %v2363_v11  ;;  %5234 = vperm.xlu2 %7145, %v5144_v22  }
 0x1eb   : > { %v4735_v28 = vpop.f32.mrf.mxu0  ;;  %v2720_v25 = vrot.slane %v5941_v33, 5  ;;  %2538 = vst [vmem:[#allocation2 + $0x310] sm:$0xf] %v2364_v51  ;;  %v5895_v33 = vld [vmem:[%s7335_s17 + $0xa0] sm:$0xf] }
 0x1ec   : > { %v8418_v27 = vadd.f32 %v4733_v34, %v4645_v35  ;;  %v2718_v62 = vsel %vm7496_vm5, %v5967_v50, %v2717_v29  ;;  %v2719_v34 = vrot.slane %v2717_v29, 4  ;;  %v5894_v50 = vld [vmem:[%s7335_s17 + $0x9c] sm:$0xf]  ;;  %v2375_v30 = vshll.u32 %v5895_v33, 16 }
 0x1ed   : > { %2809 = vst [vmem:[#allocation2 + $0x2f0] sm:$0xf] %v2718_v62  ;;  %v2366_v40 = vshrl.u32 %v5894_v50, 16  ;;  %v2369_v37 = vshll.u32 %v5894_v50, 16  ;;  %v2379_v53 = vshrl.u32 %v5895_v33, 16 }
 0x1ee   : > { %8836 = vst [vmem:[#allocation6_spill] sm:$0xff] %v8418_v27  ;;  %v2721_v19 = vsel %vm7496_vm5, %v2719_v34, %v2720_v25  ;;  %v8438_v29 = vrot.slane %v2375_v30, 5  ;;  %5259 = vperm.xlu1 %7144, %v5149_v26   ;;  %v5798_v62 = vld [vmem:[%s7335_s17 + $0x90] sm:$0xe]  ;;  %v5800_v34 = vld [vmem:[%s7335_s17 + $0x98] sm:$0x1]  ;;  %v5165_v30 = vpop.permute.xlu0 %5164 }
 0x1ef   : > { %v4557_v58 = vpop.f32.mrf.mxu2  ;;  %2810 = vst [vmem:[#allocation2 + $0x314] sm:$0xf] %v2721_v19  ;;  %v2368_v17 = vrot.slane %v2366_v40, 4  ;;  %v2371_v39 = vrot.slane %v2369_v37, 5  ;;  %v2381_v15 = vrot.slane %v2379_v53, 4  ;;  %v1894_v51 = vrot.slane %v5800_v34, 5 }
 0x1f0   : > { %v4558_v35 = vadd.f32 %v4557_v58, %v4469_v14  ;;  %v4646_v61 = vpop.f32.mrf.mxu3  ;;  %v8453_v19 = vld [vmem:[#allocation2 + $0x2bc] sm:$0xf0]  ;;  %v8457_v50 = vld [vmem:[#allocation2 + $0x2c0] sm:$0xf0]  ;;  %v5151_v27 = vld [vmem:[%s8153_s15 + $0xa8] sm:$0xff] }
 0x1f1   : > { %v4747_v16 = vpop.f32.mrf.mxu1  ;;  %v2372_v11 = vor.u32 %v2371_v39, %v2368_v17  ;;  %v5896_v33 = vld [vmem:[%s7335_s17 + $0xa4] sm:$0x1]  ;;  %v5851_v39 = vld [vmem:[%s7335_s17 + $0x9c] sm:$0xf] }
 0x1f2   : > { %v4647_v31 = vadd.f32 %v4646_v61, %v4558_v35  ;;  %v4748_v1 = vadd.f32 %v4747_v16, %v7906_v47  ;;  %v2382_v47 = vor.u32 %v2381_v15, %v8438_v29  ;;  %v8447_v61 = vld [vmem:[%s8204_s25] ss:$0 sm:$0xff]  ;;  %v2385_v22 = vshll.u32 %v5896_v33, 16  ;;  %2043 = vst [vmem:[#allocation2 + $0x330] sm:$0xf] %v5851_v39 }
 0x1f3   : > { %v5014_v46 = vpop.f32.mrf.mxu0  ;;  %v2373_v40 = vrot.slane %v2372_v11, 4  ;;  %v8467_v15 = vld [vmem:[%s8820_s3] ss:$0 sm:$0xff]  ;;  %v6932_v11 = vld [vmem:[#allocation2 + $0x2c8] sm:$0xf0] }
 0x1f4   : > { %4786 = vmatmul.bf16.gmra.mxu1 %v6284_v9  ;;  %4875 = vmatmul.bf16.gmra.mxu2 %v6288_v32  ;;  %v8433_v57 = vadd.f32 %v4735_v28, %v4647_v31  ;;  %v5148_v28 = vld [vmem:[%s8153_s15 + $0x90] sm:$0xff]  ;;  %v5824_v9 = vrot.slane %v5798_v62, 9  ;;  %v1891_v32 = vrot.slane %v5799_v49, 5  ;;  %v8455_v31 = vld [vmem:[#allocation2 + $0x2a0] sm:$0xf]  ;;  %v2383_v37 = vrot.slane %v2382_v47, 4 }
 0x1f5   : > { %4964 = vmatmul.bf16.gmra.mxu3 %v6292_v38  ;;  %5254 = vperm.xlu0 %7143, %v5148_v28   ;;  %v6325_v28 = vld [vmem:[#allocation2 + $0x2c4] sm:$0xf0]  ;;  %v2387_v34 = vrot.slane %v2385_v22, 5  ;;  %v5944_v47 = vld [vmem:[%s7335_s17 + $0xa4] sm:$0x1] }
 0x1f6   : > { %8838 = vst [vmem:[#allocation7_spill] sm:$0xff] %v8433_v57  ;;  %5053 = vmatmul.bf16.gmra.mxu0 %v6296_v10  ;;  %v8451_v10 = vld [vmem:[#allocation2 + $0x29c] sm:$0xf]  ;;  %v1892_v53 = vsel %vm7496_vm5, %v5824_v9, %v1891_v32  ;;  %v1893_v17 = vrot.slane %v1891_v32, 4  ;;  %v6331_v49 = vld [vmem:[#allocation2 + $0x2a8] sm:$0xf] }
 0x1f7   : > { %v4836_v14 = vpop.f32.mrf.mxu2  ;;  %1978 = vst [vmem:[#allocation2 + $0x32c] sm:$0xf] %v1892_v53  ;;  %v8839_v32 = vld [vmem:[#allocation8_spill] sm:$0xff]  ;;  %v2727_v5 = vrot.slane %v5944_v47, 5 }
 0x1f8   : > { %v4837_v25 = vadd.f32 %v4836_v14, %v4748_v1  ;;  %v4925_v58 = vpop.f32.mrf.mxu3  ;;  %v5852_v1 = vld [vmem:[%s7335_s17 + $0xa0] sm:$0xf]  ;;  %v6927_v14 = vld [vmem:[#allocation2 + $0x2a4] sm:$0xf]  ;;  %v1895_v62 = vsel %vm7496_vm5, %v1893_v17, %v1894_v51  ;;  %v5152_v57 = vld [vmem:[%s8153_s15 + $0xb0] sm:$0xff]  ;;  %v6320_v51 = vor.u32 %v8451_v10, %v8453_v19  ;;  %v6332_v19 = vor.u32 %v6932_v11, %v6331_v49  ;;  %v5170_v49 = vpop.permute.xlu0 %5169 }
 0x1f9   : > { %v4749_v35 = vpop.f32.mrf.mxu1  ;;  %1979 = vst [vmem:[#allocation2 + $0x350] sm:$0xf] %v1895_v62  ;;  %5274 = vperm.xlu1 %7144, %v5152_v57   ;;  %v6328_v57 = vor.u32 %v6927_v14, %v6325_v28 }
 0x1fa   : > { %v4926_v16 = vadd.f32 %v4925_v58, %v4837_v25  ;;  %v5942_v25 = vld [vmem:[%s7335_s17 + $0x9c] sm:$0xe]  ;;  %v5943_v58 = vld [vmem:[%s7335_s17 + $0xa0] sm:$0xf]  ;;  %2044 = vst [vmem:[#allocation2 + $0x354] sm:$0xf] %v5852_v1 }
 0x1fb   : > { %v8449_v38 = vpop.f32.mrf.mxu0  ;;  %v5968_v9 = vrot.slane %v5942_v25, 9  ;;  %v2724_v53 = vrot.slane %v5943_v58, 5 }
 0x1fc   : > { %v5015_v26 = vadd.f32 %v5014_v46, %v4926_v16  ;;  %v2378_v46 = vsel %vm7482_vm3, %v2373_v40, %v8438_v29  ;;  %v4750_v16 = vadd.f32 %v4749_v35, %v8839_v32  ;;  %v6324_v29 = vor.u32 %v8457_v50, %v8455_v31  ;;  %v5154_v32 = vld [vmem:[%s8153_s15 + $0xc0] sm:$0xff] }
 0x1fd   : > { %v2388_v35 = vsel %vm7482_vm3, %v2383_v37, %v2387_v34  ;;  %5269 = vperm.xlu0 %7143, %v5151_v27   ;;  %2539 = vst [vmem:[#allocation2 + $0x334] sm:$0xf] %v2378_v46  ;;  %v2725_v22 = vsel %vm7496_vm5, %v5968_v9, %v2724_v53  ;;  %v5897_v27 = vld [vmem:[%s7335_s17 + $0xa8] sm:$0xf]  ;;  %v8840_v46 = vld [vmem:[#allocation9_spill] sm:$0xff] }
 0x1fe   : > { %v5098_v33 = vmul.f32 %v8447_v61, %v5015_v26  ;;  %v2726_v26 = vrot.slane %v2724_v53, 4  ;;  %2540 = vst [vmem:[#allocation2 + $0x358] sm:$0xf] %v2388_v35  ;;  %v2390_v1 = vshrl.u32 %v5897_v27, 16  ;;  %v2393_v25 = vshll.u32 %v5897_v27, 16  ;;  %v5155_v9 = vld [vmem:[%s8153_s15 + $0xc8] sm:$0xff] }
 0x1ff   : > { %v4838_v6 = vpop.f32.mrf.mxu2  ;;  %2811 = vst [vmem:[#allocation2 + $0x338] sm:$0xf] %v2725_v22  ;;  %v8515_v27 = vld [vmem:[#allocation2 + $0x304] sm:$0xf0] }
 0x200   : > { %v5322_v40 = vadd.f32 %v5165_v30, %v5098_v33  ;;  %v4839_v17 = vadd.f32 %v4838_v6, %v4750_v16  ;;  %v4927_v39 = vpop.f32.mrf.mxu3  ;;  %v2728_v37 = vsel %vm7496_vm5, %v2726_v26, %v2727_v5  ;;  %v5898_v30 = vld [vmem:[%s7335_s17 + $0xac] sm:$0xf]  ;;  %v2392_v5 = vrot.slane %v2390_v1, 4  ;;  %v5802_v16 = vld [vmem:[%s7335_s17 + $0xa0] sm:$0xf] }
 0x201   : > { %v4752_v10 = vpop.f32.mrf.mxu1  ;;  %2812 = vst [vmem:[#allocation2 + $0x35c] sm:$0xf] %v2728_v37  ;;  %v2395_v11 = vrot.slane %v2393_v25, 5  ;;  %v2399_v58 = vshll.u32 %v5898_v30, 16  ;;  %5289 = vperm.xlu1 %7144, %v5155_v9   ;;  %v2403_v53 = vshrl.u32 %v5898_v30, 16  ;;  %v1898_v26 = vrot.slane %v5802_v16, 5 }
 0x202   : > { %v5358_v31 = vadd.f32 %v8467_v15, %v5322_v40  ;;  %v4928_v50 = vadd.f32 %v4927_v39, %v4839_v17  ;;  %v4753_v34 = vadd.f32 %v4752_v10, %v8840_v46  ;;  %v5801_v40 = vld [vmem:[%s7335_s17 + $0x9c] sm:$0xe]  ;;  %v5803_v17 = vld [vmem:[%s7335_s17 + $0xa4] sm:$0x1]  ;;  %v8517_v30 = vld [vmem:[#allocation2 + $0x2e8] sm:$0xf] }
 0x203   : > { %v5019_v6 = vpop.f32.mrf.mxu0  ;;  %v2396_v33 = vor.u32 %v2395_v11, %v2392_v5  ;;  %v5825_v22 = vrot.slane %v5801_v40, 9  ;;  %v1901_v10 = vrot.slane %v5803_v17, 5  ;;  %v8513_v37 = vld [vmem:[#allocation2 + $0x2e4] sm:$0xf]  ;;  %v8519_v1 = vld [vmem:[#allocation2 + $0x308] sm:$0xf0] }
 0x204   : > { %vm5390_vm6 = vcmp.ge.f32.partialorder %v5358_v31, 0.0  ;;  %v5422_v14 = vmul.f32 0.2, %v5358_v31  ;;  %v5017_v28 = vadd.f32 %v8449_v38, %v4928_v50  ;;  %4791 = vmatmul.bf16.gmra.mxu1 %v6320_v51  ;;  %4880 = vmatmul.bf16.gmra.mxu2 %v6324_v29  ;;  %v5899_v25 = vld [vmem:[%s7335_s17 + $0xb0] sm:$0x1]  ;;  %v1900_v11 = vrot.slane %v1898_v26, 4 }
 0x205   : > { %4969 = vmatmul.bf16.gmra.mxu3 %v6328_v57  ;;  %5284 = vperm.xlu0 %7143, %v5154_v32   ;;  %v2401_v57 = vrot.slane %v2399_v58, 5  ;;  %v1899_v5 = vsel %vm7496_vm5, %v5825_v22, %v1898_v26  ;;  %v5853_v58 = vld [vmem:[%s7335_s17 + $0xa8] sm:$0xf]  ;;  %v2405_v46 = vrot.slane %v2403_v53, 4  ;;  %v6936_v32 = vld [vmem:[#allocation2 + $0x2ec] sm:$0xf] }
 0x206   : > { %5058 = vmatmul.bf16.gmra.mxu0 %v6332_v19  ;;  %v5454_v62 = vsel %vm5390_vm6, %v5358_v31, %v5422_v14  ;;  %v5099_v47 = vmul.f32 %v8447_v61, %v5017_v28  ;;  %v2397_v14 = vrot.slane %v2396_v33, 4  ;;  %v5945_v28 = vld [vmem:[%s7335_s17 + $0xa8] sm:$0xe]  ;;  %v6367_v16 = vld [vmem:[#allocation2 + $0x2f0] sm:$0xf]  ;;  %v2409_v53 = vshll.u32 %v5899_v25, 16 }
 0x207   : > { %5486 = vst [vmem:[%s8504_s8] sm:$0xff] %v5454_v62  ;;  %v4841_v38 = vpop.f32.mrf.mxu2  ;;  %v5854_v62 = vld [vmem:[%s7335_s17 + $0xac] sm:$0xf]  ;;  %v6941_v33 = vld [vmem:[#allocation2 + $0x310] sm:$0xf0]  ;;  %v5969_v40 = vrot.slane %v5945_v28, 9  ;;  %v5157_v22 = vld [vmem:[%s8153_s15 + $0xd8] sm:$0xff]  ;;  %v6360_v25 = vor.u32 %v8519_v1, %v8517_v30 }
 0x208   : > { %v5323_v51 = vadd.f32 %v5170_v49, %v5099_v47  ;;  %v4842_v29 = vadd.f32 %v4841_v38, %v4753_v34  ;;  %v4930_v35 = vpop.f32.mrf.mxu3  ;;  %v5175_v49 = vpop.permute.xlu1 %5174  ;;  %v6361_v38 = vld [vmem:[#allocation2 + $0x30c] sm:$0xf0]  ;;  %1980 = vst [vmem:[#allocation2 + $0x374] sm:$0xf] %v1899_v5  ;;  %v2402_v26 = vsel %vm7482_vm3, %v2397_v14, %v2401_v57  ;;  %v2411_v28 = vrot.slane %v2409_v53, 5 }
 0x209   : > { %v4754_v39 = vpop.f32.mrf.mxu1  ;;  %2045 = vst [vmem:[#allocation2 + $0x378] sm:$0xf] %v5853_v58  ;;  %v8552_v53 = vld [vmem:[%s7335_s17 + $0xb8] sm:$0xf] }
 0x20a   : > { %v5359_v19 = vadd.f32 %v8467_v15, %v5323_v51  ;;  %v4931_v31 = vadd.f32 %v4930_v35, %v4842_v29  ;;  %v4755_v9 = vadd.f32 %v4754_v39, %v7956_v60  ;;  %v1902_v51 = vsel %vm7496_vm5, %v1900_v11, %v1901_v10  ;;  %v5946_v35 = vld [vmem:[%s7335_s17 + $0xac] sm:$0xf]  ;;  %v5158_v39 = vld [vmem:[%s8153_s15 + $0xe0] sm:$0xff]  ;;  %v5947_v11 = vld [vmem:[%s7335_s17 + $0xb0] sm:$0x1] }
 0x20b   : > { %v8511_v50 = vpop.f32.mrf.mxu0  ;;  %v2406_v29 = vor.u32 %v2405_v46, %v2401_v57  ;;  %v5147_v60 = vld [vmem:[%s8153_s15 + $0x88] sm:$0xff]  ;;  %1981 = vst [vmem:[#allocation2 + $0x398] sm:$0xf] %v1902_v51  ;;  %v6356_v10 = vor.u32 %v8513_v37, %v8515_v27  ;;  %5304 = vperm.xlu1 %7144, %v5158_v39   ;;  %v6364_v27 = vor.u32 %v6936_v32, %v6361_v38  ;;  %v2734_v1 = vrot.slane %v5947_v11, 5 }
 0x20c   : > { %vm5391_vm7 = vcmp.ge.f32.partialorder %v5359_v19, 0.0  ;;  %v5423_v34 = vmul.f32 0.2, %v5359_v19  ;;  %v5020_v47 = vadd.f32 %v5019_v6, %v4931_v31  ;;  %v2731_v31 = vrot.slane %v5946_v35, 5  ;;  %5249 = vperm.xlu2 %7145, %v5147_v60   ;;  %2046 = vst [vmem:[#allocation2 + $0x39c] sm:$0xf] %v5854_v62 }
 0x20d   : > { %5299 = vperm.xlu0 %7143, %v5157_v22   ;;  %2541 = vst [vmem:[#allocation2 + $0x37c] sm:$0xf] %v2402_v26  ;;  %v5161_v22 = vld [vmem:[%s8153_s15 + $0xf8] sm:$0xff]  ;;  %v5160_v26 = vld [vmem:[%s8153_s15 + $0xf0] sm:$0xff] }
 0x20e   : > { %v5455_v17 = vsel %vm5391_vm7, %v5359_v19, %v5423_v34  ;;  %v5100_v6 = vmul.f32 %v8447_v61, %v5020_v47  ;;  %v2407_v19 = vrot.slane %v2406_v29, 4  ;;  %v2732_v57 = vsel %vm7496_vm5, %v5969_v40, %v2731_v31  ;;  %v5900_v29 = vld [vmem:[%s7335_s17 + $0xb4] sm:$0xf] }
 0x20f   : > { %5487 = vst [vmem:[%s8504_s8 + $0x8] sm:$0xff] %v5455_v17  ;;  %v4843_v5 = vpop.f32.mrf.mxu2  ;;  %v2733_v14 = vrot.slane %v2731_v31, 4  ;;  %v6368_v47 = vor.u32 %v6941_v33, %v6367_v16  ;;  %v2414_v35 = vshrl.u32 %v5900_v29, 16  ;;  %v2417_v32 = vshll.u32 %v5900_v29, 16  ;;  %v5805_v31 = vld [vmem:[%s7335_s17 + $0xac] sm:$0xf] }
 0x210   : > { %v5324_v58 = vadd.f32 %v5175_v49, %v5100_v6  ;;  %v4844_v46 = vadd.f32 %v4843_v5, %v4755_v9  ;;  %v4932_v34 = vpop.f32.mrf.mxu3  ;;  %v2412_v30 = vsel %vm7482_vm3, %v2407_v19, %v2411_v28  ;;  %2813 = vst [vmem:[#allocation2 + $0x380] sm:$0xf] %v2732_v57  ;;  %v5180_v33 = vpop.permute.xlu1 %5179  ;;  %v5806_v57 = vld [vmem:[%s7335_s17 + $0xb0] sm:$0x1]  ;;  %v8574_v29 = vld [vmem:[#allocation2 + $0x350] sm:$0xf0] }
 0x211   : > { %v4757_v37 = vpop.f32.mrf.mxu1  ;;  %2542 = vst [vmem:[#allocation2 + $0x3a0] sm:$0xf] %v2412_v30  ;;  %v2735_v62 = vsel %vm7496_vm5, %v2733_v14, %v2734_v1  ;;  %v2416_v40 = vrot.slane %v2414_v35, 4  ;;  %v2419_v17 = vrot.slane %v2417_v32, 5  ;;  %v5902_v30 = vld [vmem:[%s7335_s17 + $0xbc] sm:$0x1]  ;;  %v5185_v32 = vpop.permute.xlu2 %5184 }
 0x212   : > { %v5360_v49 = vadd.f32 %v8467_v15, %v5324_v58  ;;  %v4933_v9 = vadd.f32 %v4932_v34, %v4844_v46  ;;  %2814 = vst [vmem:[#allocation2 + $0x3a4] sm:$0xf] %v2735_v62  ;;  %v4758_v60 = vadd.f32 %v4757_v37, %v7989_v45  ;;  %v8562_v58 = vld [vmem:[#allocation2 + $0x32c] sm:$0xf]  ;;  %v8564_v45 = vld [vmem:[#allocation2 + $0x34c] sm:$0xf0] }
 0x213   : > { %v5024_v51 = vpop.f32.mrf.mxu0  ;;  %5319 = vperm.xlu1 %7144, %v5161_v22   ;;  %v8566_v46 = vld [vmem:[#allocation2 + $0x330] sm:$0xf]  ;;  %v5804_v34 = vld [vmem:[%s7335_s17 + $0xa8] sm:$0xe]  ;;  %v5948_v35 = vld [vmem:[%s7335_s17 + $0xb4] sm:$0xe] }
 0x214   : > { %vm5392_vm8 = vcmp.ge.f32.partialorder %v5360_v49, 0.0  ;;  %v5424_v38 = vmul.f32 0.2, %v5360_v49  ;;  %v5022_v16 = vadd.f32 %v8511_v50, %v4933_v9  ;;  %4796 = vmatmul.bf16.gmra.mxu1 %v6356_v10  ;;  %4885 = vmatmul.bf16.gmra.mxu2 %v6360_v25  ;;  %v2423_v50 = vshll.u32 %v8552_v53, 16  ;;  %v6397_v22 = vld [vmem:[#allocation2 + $0x354] sm:$0xf0] }
 0x215   : > { %4974 = vmatmul.bf16.gmra.mxu3 %v6364_v27  ;;  %v1905_v10 = vrot.slane %v5805_v31, 5  ;;  %v2420_v25 = vor.u32 %v2419_v17, %v2416_v40  ;;  %5314 = vperm.xlu0 %7143, %v5160_v26   ;;  %v5826_v37 = vrot.slane %v5804_v34, 9  ;;  %v2427_v40 = vshrl.u32 %v8552_v53, 16  ;;  %v5949_v17 = vld [vmem:[%s7335_s17 + $0xb8] sm:$0xf] }
 0x216   : > { %5063 = vmatmul.bf16.gmra.mxu0 %v6368_v47  ;;  %v5456_v6 = vsel %vm5392_vm8, %v5360_v49, %v5424_v38  ;;  %v5101_v39 = vmul.f32 %v8447_v61, %v5022_v16  ;;  %v1908_v47 = vrot.slane %v5806_v57, 5  ;;  %v2425_v62 = vrot.slane %v2423_v50, 5  ;;  %v6403_v26 = vld [vmem:[#allocation2 + $0x338] sm:$0xf]  ;;  %v6950_v31 = vld [vmem:[#allocation2 + $0x358] sm:$0xf0] }
 0x217   : > { %5488 = vst [vmem:[%s8504_s8 + $0x10] sm:$0xff] %v5456_v6  ;;  %v4846_v5 = vpop.f32.mrf.mxu2  ;;  %v1907_v27 = vrot.slane %v1905_v10, 4  ;;  %v1906_v38 = vsel %vm7496_vm5, %v5826_v37, %v1905_v10  ;;  %v5855_v50 = vld [vmem:[%s7335_s17 + $0xb4] sm:$0xf]  ;;  %v6392_v10 = vor.u32 %v8562_v58, %v8564_v45  ;;  %v2429_v53 = vrot.slane %v2427_v40, 4  ;;  %v5150_v57 = vld [vmem:[%s8153_s15 + $0xa0] sm:$0xff] }
 0x218   : > { %v5325_v19 = vadd.f32 %v5180_v33, %v5101_v39  ;;  %v4847_v28 = vadd.f32 %v4846_v5, %v4758_v60  ;;  %v4935_v11 = vpop.f32.mrf.mxu3  ;;  %v2421_v33 = vrot.slane %v2420_v25, 4  ;;  %v6945_v39 = vld [vmem:[#allocation2 + $0x334] sm:$0xf]  ;;  %v2433_v5 = vshll.u32 %v5902_v30, 16  ;;  %1982 = vst [vmem:[#allocation2 + $0x3bc] sm:$0xf] %v1906_v38  ;;  %5264 = vperm.xlu2 %7145, %v5150_v57  }
 0x219   : > { %v4759_v14 = vpop.f32.mrf.mxu1  ;;  %v1909_v16 = vsel %vm7496_vm5, %v1907_v27, %v1908_v47  ;;  %v6396_v25 = vor.u32 %v8574_v29, %v8566_v46  ;;  %v5856_v37 = vld [vmem:[%s7335_s17 + $0xb8] sm:$0xf]  ;;  %v2738_v27 = vrot.slane %v5949_v17, 5  ;;  %v2430_v45 = vor.u32 %v2429_v53, %v2425_v62  ;;  %2047 = vst [vmem:[#allocation2 + $0x3c0] sm:$0xf] %v5855_v50 }
 0x21a   : > { %v5361_v1 = vadd.f32 %v8467_v15, %v5325_v19  ;;  %v4936_v49 = vadd.f32 %v4935_v11, %v4847_v28  ;;  %v5950_v19 = vld [vmem:[%s7335_s17 + $0xbc] sm:$0x1]  ;;  %v5970_v28 = vrot.slane %v5948_v35, 9  ;;  %v4760_v11 = vadd.f32 %v4759_v14, %v8005_v13  ;;  %1983 = vst [vmem:[#allocation2 + $0x3e0] sm:$0xf] %v1909_v16 }
 0x21b   : > { %v8572_v9 = vpop.f32.mrf.mxu0  ;;  %v2426_v58 = vsel %vm7482_vm3, %v2421_v33, %v2425_v62  ;;  %v2435_v46 = vrot.slane %v2433_v5, 5  ;;  %v2741_v30 = vrot.slane %v5950_v19, 5  ;;  %v2740_v29 = vrot.slane %v2738_v27, 4  ;;  %2048 = vst [vmem:[#allocation2 + $0x3e4] sm:$0xf] %v5856_v37  ;;  %v5153_v57 = vld [vmem:[%s8153_s15 + $0xb8] sm:$0xff] }
 0x21c   : > { %vm5393_vm9 = vcmp.ge.f32.partialorder %v5361_v1, 0.0  ;;  %v5425_v6 = vmul.f32 0.2, %v5361_v1  ;;  %v5025_v60 = vadd.f32 %v5024_v51, %v4936_v49  ;;  %v2739_v14 = vsel %vm7496_vm5, %v5970_v28, %v2738_v27  ;;  %2543 = vst [vmem:[#allocation2 + $0x3c4] sm:$0xf] %v2426_v58 }
 0x21d   : > { %v6400_v38 = vor.u32 %v6945_v39, %v6397_v22  ;;  %v6404_v16 = vor.u32 %v6950_v31, %v6403_v26  ;;  %v2431_v40 = vrot.slane %v2430_v45, 4  ;;  %v2742_v50 = vsel %vm7496_vm5, %v2740_v29, %v2741_v30  ;;  %2815 = vst [vmem:[#allocation2 + $0x3c8] sm:$0xf] %v2739_v14  ;;  %v5190_v26 = vpop.permute.xlu2 %5189  ;;  %v5809_v30 = vld [vmem:[%s7335_s17 + $0xbc] sm:$0x1] }
 0x21e   : > { %v5457_v51 = vsel %vm5393_vm9, %v5361_v1, %v5425_v6  ;;  %v5102_v34 = vmul.f32 %v8447_v61, %v5025_v60  ;;  %v5903_v6 = vld [vmem:[%s7335_s17 + $0xc0] sm:$0xf]  ;;  %2816 = vst [vmem:[#allocation2 + $0x3ec] sm:$0xf] %v2742_v50  ;;  %v1915_v14 = vrot.slane %v5809_v30, 5 }
 0x21f   : > { %5489 = vst [vmem:[%s8504_s8 + $0x18] sm:$0xff] %v5457_v51  ;;  %v4848_v47 = vpop.f32.mrf.mxu2  ;;  %v2436_v60 = vsel %vm7482_vm3, %v2431_v40, %v2435_v46  ;;  %v2438_v5 = vshrl.u32 %v5903_v6, 16  ;;  %v2441_v53 = vshll.u32 %v5903_v6, 16  ;;  %v5807_v46 = vld [vmem:[%s7335_s17 + $0xb4] sm:$0xe] }
 0x220   : > { %v5326_v49 = vadd.f32 %v5185_v32, %v5102_v34  ;;  %v4849_v1 = vadd.f32 %v4848_v47, %v4760_v11  ;;  %v4937_v13 = vpop.f32.mrf.mxu3  ;;  %v5904_v32 = vld [vmem:[%s7335_s17 + $0xc4] sm:$0xf]  ;;  %2544 = vst [vmem:[#allocation2 + $0x3e8] sm:$0xf] %v2436_v60  ;;  %5279 = vperm.xlu2 %7145, %v5153_v57   ;;  %v8617_v40 = vld [vmem:[#allocation2 + $0x374] sm:$0xf] }
 0x221   : > { %v4762_v35 = vpop.f32.mrf.mxu1  ;;  %v2440_v31 = vrot.slane %v2438_v5, 4  ;;  %v2443_v19 = vrot.slane %v2441_v53, 5  ;;  %v2447_v28 = vshll.u32 %v5904_v32, 16  ;;  %v2451_v27 = vshrl.u32 %v5904_v32, 16  ;;  %v6431_v6 = vld [vmem:[#allocation2 + $0x378] sm:$0xf] }
 0x222   : > { %v5362_v33 = vadd.f32 %v8467_v15, %v5326_v49  ;;  %v4938_v62 = vadd.f32 %v4937_v13, %v4849_v1  ;;  %v4763_v11 = vadd.f32 %v4762_v35, %v8028_v7  ;;  %v5905_v49 = vld [vmem:[%s7335_s17 + $0xc8] sm:$0x1]  ;;  %v5827_v7 = vrot.slane %v5807_v46, 9  ;;  %v6958_v32 = vld [vmem:[#allocation2 + $0x398] sm:$0xf0] }
 0x223   : > { %v5029_v17 = vpop.f32.mrf.mxu0  ;;  %v2444_v37 = vor.u32 %v2443_v19, %v2440_v31  ;;  %v2449_v29 = vrot.slane %v2447_v28, 5  ;;  %v2453_v5 = vrot.slane %v2451_v27, 4  ;;  %v2457_v53 = vshll.u32 %v5905_v49, 16  ;;  %v6954_v31 = vld [vmem:[#allocation2 + $0x37c] sm:$0xf] }
 0x224   : > { %vm5394_vm10 = vcmp.ge.f32.partialorder %v5362_v33, 0.0  ;;  %v5426_v39 = vmul.f32 0.2, %v5362_v33  ;;  %v5027_v22 = vadd.f32 %v8572_v9, %v4938_v62  ;;  %4801 = vmatmul.bf16.gmra.mxu1 %v6392_v10  ;;  %4890 = vmatmul.bf16.gmra.mxu2 %v6396_v25  ;;  %v5808_v9 = vld [vmem:[%s7335_s17 + $0xb8] sm:$0xf] }
 0x225   : > { %4979 = vmatmul.bf16.gmra.mxu3 %v6400_v38  ;;  %v1912_v25 = vrot.slane %v5808_v9, 5  ;;  %v2445_v62 = vrot.slane %v2444_v37, 4  ;;  %v6433_v19 = vld [vmem:[#allocation2 + $0x39c] sm:$0xf0]  ;;  %v5858_v57 = vld [vmem:[%s7335_s17 + $0xc4] sm:$0xf]  ;;  %v2454_v9 = vor.u32 %v2453_v5, %v2449_v29 }
 0x226   : > { %5068 = vmatmul.bf16.gmra.mxu0 %v6404_v16  ;;  %v5458_v51 = vsel %vm5394_vm10, %v5362_v33, %v5426_v39  ;;  %v5103_v34 = vmul.f32 %v8447_v61, %v5027_v22  ;;  %v8619_v33 = vld [vmem:[#allocation2 + $0x394] sm:$0xf0]  ;;  %v5951_v39 = vld [vmem:[%s7335_s17 + $0xc0] sm:$0xe]  ;;  %2050 = vst [vmem:[#allocation2 + $0x42c] sm:$0xf] %v5858_v57 }
 0x227   : > { %5490 = vst [vmem:[%s8504_s8 + $0x20] sm:$0xff] %v5458_v51  ;;  %v4851_v10 = vpop.f32.mrf.mxu2  ;;  %v1914_v13 = vrot.slane %v1912_v25, 4  ;;  %v1913_v60 = vsel %vm7496_vm5, %v5827_v7, %v1912_v25  ;;  %v6439_v28 = vld [vmem:[#allocation2 + $0x380] sm:$0xf]  ;;  %v6959_v51 = vld [vmem:[#allocation2 + $0x3a0] sm:$0xf0]  ;;  %v6428_v46 = vor.u32 %v8617_v40, %v8619_v33  ;;  %v2450_v30 = vsel %vm7482_vm3, %v2445_v62, %v2449_v29 }
 0x228   : > { %v5327_v47 = vadd.f32 %v5190_v26, %v5103_v34  ;;  %v4852_v58 = vadd.f32 %v4851_v10, %v4763_v11  ;;  %v4940_v45 = vpop.f32.mrf.mxu3  ;;  %v5857_v11 = vld [vmem:[%s7335_s17 + $0xc0] sm:$0xf]  ;;  %v5195_v34 = vpop.permute.xlu0 %5194  ;;  %1984 = vst [vmem:[#allocation2 + $0x404] sm:$0xf] %v1913_v60  ;;  %v2459_v10 = vrot.slane %v2457_v53, 5  ;;  %v2455_v49 = vrot.slane %v2454_v9, 4 }
 0x229   : > { %v4764_v1 = vpop.f32.mrf.mxu1  ;;  %v1916_v50 = vsel %vm7496_vm5, %v1914_v13, %v1915_v14  ;;  %v5953_v7 = vld [vmem:[%s7335_s17 + $0xc8] sm:$0x1]  ;;  %2049 = vst [vmem:[#allocation2 + $0x408] sm:$0xf] %v5857_v11  ;;  %v6440_v5 = vor.u32 %v6959_v51, %v6439_v28  ;;  %v5200_v51 = vpop.permute.xlu1 %5199 }
 0x22a   : > { %v5363_v35 = vadd.f32 %v8467_v15, %v5327_v47  ;;  %v4941_v38 = vadd.f32 %v4940_v45, %v4852_v58  ;;  %v4765_v37 = vadd.f32 %v4764_v1, %v8038_v2  ;;  %v5156_v47 = vld [vmem:[%s8153_s15 + $0xd0] sm:$0xff]  ;;  %1985 = vst [vmem:[#allocation2 + $0x428] sm:$0xf] %v1916_v50  ;;  %v5971_v58 = vrot.slane %v5951_v39, 9 }
 0x22b   : > { %v8615_v16 = vpop.f32.mrf.mxu0  ;;  %5294 = vperm.xlu2 %7145, %v5156_v47   ;;  %v6436_v50 = vor.u32 %v6954_v31, %v6433_v19  ;;  %v2460_v40 = vsel %vm7482_vm3, %v2455_v49, %v2459_v10  ;;  %2545 = vst [vmem:[#allocation2 + $0x40c] sm:$0xf] %v2450_v30  ;;  %v5810_v49 = vld [vmem:[%s7335_s17 + $0xc0] sm:$0xe] }
 0x22c   : > { %vm5395_vm11 = vcmp.ge.f32.partialorder %v5363_v35, 0.0  ;;  %v5427_v22 = vmul.f32 0.2, %v5363_v35  ;;  %v5030_v26 = vadd.f32 %v5029_v17, %v4941_v38  ;;  %v5952_v17 = vld [vmem:[%s7335_s17 + $0xc4] sm:$0xf]  ;;  %v2748_v38 = vrot.slane %v5953_v7, 5 }
 0x22d   : > { %v2745_v13 = vrot.slane %v5952_v17, 5  ;;  %2546 = vst [vmem:[#allocation2 + $0x430] sm:$0xf] %v2460_v40  ;;  %v5812_v7 = vld [vmem:[%s7335_s17 + $0xc8] sm:$0x1] }
 0x22e   : > { %v5459_v25 = vsel %vm5395_vm11, %v5363_v35, %v5427_v22  ;;  %v5104_v27 = vmul.f32 %v8447_v61, %v5030_v26  ;;  %v6432_v35 = vor.u32 %v6958_v32, %v6431_v6  ;;  %v5906_v22 = vld [vmem:[%s7335_s17 + $0xcc] sm:$0xf]  ;;  %v5907_v6 = vld [vmem:[%s7335_s17 + $0xd0] sm:$0xf] }
 0x22f   : > { %5491 = vst [vmem:[%s8504_s8 + $0x28] sm:$0xff] %v5459_v25  ;;  %v4853_v45 = vpop.f32.mrf.mxu2  ;;  %v2747_v33 = vrot.slane %v2745_v13, 4  ;;  %v2746_v39 = vsel %vm7496_vm5, %v5971_v58, %v2745_v13  ;;  %v2462_v26 = vshrl.u32 %v5906_v22, 16  ;;  %v2465_v31 = vshll.u32 %v5906_v22, 16  ;;  %v5954_v40 = vld [vmem:[%s7335_s17 + $0xcc] sm:$0xe] }
 0x230   : > { %v5328_v14 = vadd.f32 %v5195_v34, %v5104_v27  ;;  %v4854_v2 = vadd.f32 %v4853_v45, %v4765_v37  ;;  %v4942_v1 = vpop.f32.mrf.mxu3  ;;  %2817 = vst [vmem:[#allocation2 + $0x410] sm:$0xf] %v2746_v39  ;;  %v2471_v57 = vshll.u32 %v5907_v6, 16  ;;  %v5159_v37 = vld [vmem:[%s8153_s15 + $0xe8] sm:$0xff]  ;;  %v2475_v58 = vshrl.u32 %v5907_v6, 16  ;;  %v5210_v44 = vpop.permute.xlu0 %5209  ;;  %s5532_s15 = sshll.u32 %s8504_s8, 4  ;;  %s5533_s15 = int_to_ptr.vmem [resolvable:$true] %s5532_s15 }
 0x231   : > { %v4767_v60 = vpop.f32.mrf.mxu1  ;;  %v2749_v32 = vsel %vm7496_vm5, %v2747_v33, %v2748_v38  ;;  %v2464_v11 = vrot.slane %v2462_v26, 4  ;;  %v2467_v34 = vrot.slane %v2465_v31, 5  ;;  %v6962_v33 = vld [vmem:[#allocation2 + $0x3bc] sm:$0xf]  ;;  %v6967_v39 = vld [vmem:[#allocation2 + $0x3e0] sm:$0xf0] }
 0x232   : > { %v5364_v29 = vadd.f32 %v8467_v15, %v5328_v14  ;;  %v4943_v62 = vadd.f32 %v4942_v1, %v4854_v2  ;;  %v4768_v10 = vadd.f32 %v4767_v60, %v8069_v52  ;;  %2818 = vst [vmem:[#allocation2 + $0x434] sm:$0xf] %v2749_v32  ;;  %v5828_v52 = vrot.slane %v5810_v49, 9 }
 0x233   : > { %v5034_v53 = vpop.f32.mrf.mxu0  ;;  %5309 = vperm.xlu2 %7145, %v5159_v37   ;;  %v2468_v17 = vor.u32 %v2467_v34, %v2464_v11  ;;  %v1922_v2 = vrot.slane %v5812_v7, 5  ;;  %v2473_v1 = vrot.slane %v2471_v57, 5  ;;  %v2477_v32 = vrot.slane %v2475_v58, 4  ;;  %v6968_v11 = vld [vmem:[#allocation2 + $0x3e8] sm:$0xf0]  ;;  %v5205_v57 = vpop.permute.xlu2 %5204 }
 0x234   : > { %vm5396_vm12 = vcmp.ge.f32.partialorder %v5364_v29, 0.0  ;;  %v5428_v19 = vmul.f32 0.2, %v5364_v29  ;;  %v5032_v28 = vadd.f32 %v8615_v16, %v4943_v62  ;;  %4806 = vmatmul.bf16.gmra.mxu1 %v6428_v46  ;;  %4895 = vmatmul.bf16.gmra.mxu2 %v6432_v35  ;;  %v5811_v16 = vld [vmem:[%s7335_s17 + $0xc4] sm:$0xf]  ;;  %v5972_v37 = vrot.slane %v5954_v40, 9 }
 0x235   : > { %4984 = vmatmul.bf16.gmra.mxu3 %v6436_v50  ;;  %v1919_v47 = vrot.slane %v5811_v16, 5  ;;  %v5908_v50 = vld [vmem:[%s7335_s17 + $0xd4] sm:$0x1]  ;;  %v6467_v62 = vld [vmem:[#allocation2 + $0x3c0] sm:$0xf] }
 0x236   : > { %5073 = vmatmul.bf16.gmra.mxu0 %v6440_v5  ;;  %v5460_v9 = vsel %vm5396_vm12, %v5364_v29, %v5428_v19  ;;  %v5105_v25 = vmul.f32 %v8447_v61, %v5032_v28  ;;  %v2469_v5 = vrot.slane %v2468_v17, 4  ;;  %v6461_v29 = vld [vmem:[#allocation2 + $0x3dc] sm:$0xf0]  ;;  %v6963_v19 = vld [vmem:[#allocation2 + $0x3c4] sm:$0xf] }
 0x237   : > { %5492 = vst [vmem:[%s8504_s8 + $0x30] sm:$0xff] %v5460_v9  ;;  %v4856_v27 = vpop.f32.mrf.mxu2  ;;  %v1921_v14 = vrot.slane %v1919_v47, 4  ;;  %v1920_v22 = vsel %vm7496_vm5, %v5828_v52, %v1919_v47  ;;  %v6469_v28 = vld [vmem:[#allocation2 + $0x3e4] sm:$0xf0]  ;;  %v5859_v34 = vld [vmem:[%s7335_s17 + $0xcc] sm:$0xf] }
 0x238   : > { %v5329_v45 = vadd.f32 %v5200_v51, %v5105_v25  ;;  %v4857_v46 = vadd.f32 %v4856_v27, %v4768_v10  ;;  %v4945_v30 = vpop.f32.mrf.mxu3  ;;  %v6475_v51 = vld [vmem:[#allocation2 + $0x3c8] sm:$0xf]  ;;  %1986 = vst [vmem:[#allocation2 + $0x44c] sm:$0xf] %v1920_v22  ;;  %v5860_v9 = vld [vmem:[%s7335_s17 + $0xd0] sm:$0xf]  ;;  %v2478_v10 = vor.u32 %v2477_v32, %v2473_v1 }
 0x239   : > { %v4769_v13 = vpop.f32.mrf.mxu1  ;;  %v1923_v6 = vsel %vm7496_vm5, %v1921_v14, %v1922_v2  ;;  %v2481_v25 = vshll.u32 %v5908_v50, 16  ;;  %v5955_v17 = vld [vmem:[%s7335_s17 + $0xd0] sm:$0xf]  ;;  %v5956_v58 = vld [vmem:[%s7335_s17 + $0xd4] sm:$0x1]  ;;  %v6476_v50 = vor.u32 %v6968_v11, %v6475_v51 }
 0x23a   : > { %v5365_v35 = vadd.f32 %v8467_v15, %v5329_v45  ;;  %v4946_v38 = vadd.f32 %v4945_v30, %v4857_v46  ;;  %v4770_v27 = vadd.f32 %v4769_v13, %v8082_v54  ;;  %1987 = vst [vmem:[#allocation2 + $0x470] sm:$0xf] %v1923_v6  ;;  %v2479_v46 = vrot.slane %v2478_v10, 4 }
 0x23b   : > { %v5036_v60 = vpop.f32.mrf.mxu0  ;;  %v2483_v30 = vrot.slane %v2481_v25, 5  ;;  %v2752_v49 = vrot.slane %v5955_v17, 5  ;;  %v2755_v7 = vrot.slane %v5956_v58, 5  ;;  %2051 = vst [vmem:[#allocation2 + $0x450] sm:$0xf] %v5859_v34  ;;  %v6472_v13 = vor.u32 %v6963_v19, %v6469_v28 }
 0x23c   : > { %vm5397_vm13 = vcmp.ge.f32.partialorder %v5365_v35, 0.0  ;;  %v5429_v26 = vmul.f32 0.2, %v5365_v35  ;;  %v5035_v31 = vadd.f32 %v5034_v53, %v4946_v38  ;;  %v2474_v53 = vsel %vm7482_vm3, %v2469_v5, %v2473_v1  ;;  %2052 = vst [vmem:[#allocation2 + $0x474] sm:$0xf] %v5860_v9 }
 0x23d   : > { %v6468_v38 = vor.u32 %v6967_v39, %v6467_v62  ;;  %v2484_v1 = vsel %vm7482_vm3, %v2479_v46, %v2483_v30  ;;  %v2754_v5 = vrot.slane %v2752_v49, 4  ;;  %2547 = vst [vmem:[#allocation2 + $0x454] sm:$0xf] %v2474_v53  ;;  %v2753_v32 = vsel %vm7496_vm5, %v5972_v37, %v2752_v49  ;;  %v6971_v9 = vld [vmem:[#allocation2 + $0x404] sm:$0xf] }
 0x23e   : > { %v5461_v16 = vsel %vm5397_vm13, %v5365_v35, %v5429_v26  ;;  %v5106_v47 = vmul.f32 %v8447_v61, %v5035_v31  ;;  %v6464_v35 = vor.u32 %v6962_v33, %v6461_v29  ;;  %2548 = vst [vmem:[#allocation2 + $0x478] sm:$0xf] %v2484_v1  ;;  %v6497_v37 = vld [vmem:[#allocation2 + $0x424] sm:$0xf0]  ;;  %v6511_v46 = vld [vmem:[#allocation2 + $0x410] sm:$0xf] }
 0x23f   : > { %5493 = vst [vmem:[%s8504_s8 + $0x38] sm:$0xff] %v5461_v16  ;;  %v4858_v45 = vpop.f32.mrf.mxu2  ;;  %v2756_v33 = vsel %vm7496_vm5, %v2754_v5, %v2755_v7  ;;  %v6503_v16 = vld [vmem:[#allocation2 + $0x408] sm:$0xf]  ;;  %v6977_v30 = vld [vmem:[#allocation2 + $0x430] sm:$0xf0] }
 0x240   : > { %v5330_v52 = vadd.f32 %v5205_v57, %v5106_v47  ;;  %v4859_v14 = vadd.f32 %v4858_v45, %v4770_v27  ;;  %v4947_v2 = vpop.f32.mrf.mxu3  ;;  %2819 = vst [vmem:[#allocation2 + $0x458] sm:$0xf] %v2753_v32  ;;  %v6976_v27 = vld [vmem:[#allocation2 + $0x428] sm:$0xf0]  ;;  %v6505_v45 = vld [vmem:[#allocation2 + $0x42c] sm:$0xf0] }
 0x241   : > { %v4772_v54 = vpop.f32.mrf.mxu1  ;;  %2820 = vst [vmem:[#allocation2 + $0x47c] sm:$0xf] %v2756_v33  ;;  %v6972_v47 = vld [vmem:[#allocation2 + $0x40c] sm:$0xf]  ;;  %v8688_v32 = vld [vmem:[%s8204_s25] ss:$0 sm:$0xff] }
 0x242   : > { %v5366_v40 = vadd.f32 %v8467_v15, %v5330_v52  ;;  %v4948_v22 = vadd.f32 %v4947_v2, %v4859_v14  ;;  %v4773_v26 = vadd.f32 %v4772_v54, %v8102_v12  ;;  %v5215_v12 = vpop.permute.xlu1 %5214  ;;  %v6500_v2 = vor.u32 %v6971_v9, %v6497_v37  ;;  %s7166_s25 = scalar_lea.hbm %s7165_s24, 256 }
 0x243   : > { %v5039_v6 = vpop.f32.mrf.mxu0  ;;  %v6508_v54 = vor.u32 %v6972_v47, %v6505_v45  ;;  %p7167_p12 = scmp.ne.s32.totalorder %s7165_s24, %s7166_s25  ;;  %p7172_p2 = scmp.lt.s32.totalorder %s7170_s7, %s7166_s25 }
 0x244   : > { %vm5398_vm14 = vcmp.ge.f32.partialorder %v5366_v40, 0.0  ;;  %v5430_v29 = vmul.f32 0.2, %v5366_v40  ;;  %v5037_v62 = vadd.f32 %v5036_v60, %v4948_v22  ;;  %4811 = vmatmul.bf16.gmra.mxu1 %v6464_v35  ;;  %4900 = vmatmul.bf16.gmra.mxu2 %v6468_v38  ;;  %v6504_v35 = vor.u32 %v6976_v27, %v6503_v16  ;;  %v6981_v9 = vld [vmem:[#allocation2 + $0x454] sm:$0xf] }
 0x245   : > { %4989 = vmatmul.bf16.gmra.mxu3 %v6472_v13  ;;  %v6512_v13 = vor.u32 %v6977_v30, %v6511_v46  ;;  %p7168_p13 = pnand %p7167_p12, %p7303_p4  ;;  %p7173_p3 = por %p7172_p2, %p7171_p1 }
 0x246   : > { %5078 = vmatmul.bf16.gmra.mxu0 %v6476_v50  ;;  %v5462_v39 = vsel %vm5398_vm14, %v5366_v40, %v5430_v29  ;;  %v5107_v31 = vmul.f32 %v8447_v61, %v5037_v62  ;;  %v5220_v40 = vpop.permute.xlu2 %5219 }
 0x247   : > { %5494 = vst [vmem:[%s8504_s8 + $0x40] sm:$0xff] %v5462_v39  ;;  %v4861_v19 = vpop.f32.mrf.mxu2  ;;  %v6547_v16 = vld [vmem:[#allocation2 + $0x458] sm:$0xf]  ;;  %p7169_p0 = pneg %p7168_p13 }
 0x248   : > { %v5331_v28 = vadd.f32 %v5210_v44, %v5107_v31  ;;  %v4862_v59 = vadd.f32 %v4861_v19, %v4773_v26  ;;  %v4950_v51 = vpop.f32.mrf.mxu3  ;;  %v8695_v26 = vld [vmem:[%s8820_s3] ss:$0 sm:$0xff]  ;;  %v6986_v27 = vld [vmem:[#allocation2 + $0x478] sm:$0xf0] }
 0x249   : > { %v4774_v11 = vpop.f32.mrf.mxu1  ;;  %p7174_p5 = pnand %p7173_p3, %p7169_p0 }
 0x24a   : > { %v5367_v60 = vadd.f32 %v8467_v15, %v5331_v28  ;;  %v4951_v34 = vadd.f32 %v4950_v51, %v4862_v59  ;;  %v4775_v17 = vadd.f32 %v4774_v11, %v8115_v56  ;;  %v6533_v11 = vld [vmem:[#allocation2 + $0x46c] sm:$0xf0] }
 0x24b   : > { %v5041_v57 = vpop.f32.mrf.mxu0 }
 0x24c   : > { %vm5399_vm15 = vcmp.ge.f32.partialorder %v5367_v60, 0.0  ;;  %v5431_v10 = vmul.f32 0.2, %v5367_v60  ;;  %v5040_v25 = vadd.f32 %v5039_v6, %v4951_v34  ;;  %v6539_v34 = vld [vmem:[#allocation2 + $0x450] sm:$0xf] }
 0x24e   : > { %v5463_v53 = vsel %vm5399_vm15, %v5367_v60, %v5431_v10  ;;  %v5108_v58 = vmul.f32 %v8447_v61, %v5040_v25  ;;  %v5225_v60 = vpop.permute.xlu0 %5224 }
 0x24f   : > { %5495 = vst [vmem:[%s8504_s8 + $0x48] sm:$0xff] %v5463_v53  ;;  %v4863_v49 = vpop.f32.mrf.mxu2 }
 0x250   : > { %v5332_v7 = vadd.f32 %v5215_v12, %v5108_v58  ;;  %v4864_v52 = vadd.f32 %v4863_v49, %v4775_v17  ;;  %v4952_v14 = vpop.f32.mrf.mxu3  ;;  %v6541_v12 = vld [vmem:[#allocation2 + $0x474] sm:$0xf0] }
 0x251   : > { %v4777_v38 = vpop.f32.mrf.mxu1  ;;  %v6544_v49 = vor.u32 %v6981_v9, %v6541_v12 }
 0x252   : > { %v5368_v50 = vadd.f32 %v8467_v15, %v5332_v7  ;;  %v4953_v56 = vadd.f32 %v4952_v14, %v4864_v52  ;;  %v4778_v6 = vadd.f32 %v4777_v38, %v8133_v63  ;;  %v6980_v63 = vld [vmem:[#allocation2 + $0x44c] sm:$0xf]  ;;  %v6548_v7 = vor.u32 %v6986_v27, %v6547_v16  ;;  %v5230_v38 = vpop.permute.xlu1 %5229 }
 0x253   : > { %v5044_v1 = vpop.f32.mrf.mxu0  ;;  %v6536_v45 = vor.u32 %v6980_v63, %v6533_v11 }
 0x254   : > { %vm5400_vm0 = vcmp.ge.f32.partialorder %v5368_v50, 0.0  ;;  %v5432_v61 = vmul.f32 0.2, %v5368_v50  ;;  %v5042_v5 = vadd.f32 %v5041_v57, %v4953_v56  ;;  %4816 = vmatmul.bf16.gmra.mxu1 %v6500_v2  ;;  %4905 = vmatmul.bf16.gmra.mxu2 %v6504_v35  ;;  %v6985_v57 = vld [vmem:[#allocation2 + $0x470] sm:$0xf0] }
 0x255   : > { %4994 = vmatmul.bf16.gmra.mxu3 %v6508_v54  ;;  %v6540_v46 = vor.u32 %v6985_v57, %v6539_v34 }
 0x256   : > { %5083 = vmatmul.bf16.gmra.mxu0 %v6512_v13  ;;  %v5464_v22 = vsel %vm5400_vm0, %v5368_v50, %v5432_v61  ;;  %v5109_v33 = vmul.f32 %v8688_v32, %v5042_v5  ;;  %v5240_v9 = vpop.permute.xlu0 %5239 }
 0x257   : > { %5496 = vst [vmem:[%s8504_s8 + $0x50] sm:$0xff] %v5464_v22  ;;  %v4866_v29 = vpop.f32.mrf.mxu2 }
 0x258   : > { %v5333_v15 = vadd.f32 %v5220_v40, %v5109_v33  ;;  %v4867_v62 = vadd.f32 %v4866_v29, %v4778_v6  ;;  %v4955_v44 = vpop.f32.mrf.mxu3 }
 0x259   : > { %v4779_v39 = vpop.f32.mrf.mxu1 }
 0x25a   : > { %v5369_v31 = vadd.f32 %v8695_v26, %v5333_v15  ;;  %v4956_v19 = vadd.f32 %v4955_v44, %v4867_v62  ;;  %v4780_v25 = vadd.f32 %v4779_v39, %v8145_v21  ;;  %v5235_v62 = vpop.permute.xlu2 %5234 }
 0x25b   : > { %v5046_v28 = vpop.f32.mrf.mxu0 }
 0x25c   : > { %vm5401_vm1 = vcmp.ge.f32.partialorder %v5369_v31, 0.0  ;;  %v5433_v59 = vmul.f32 0.2, %v5369_v31  ;;  %v5045_v51 = vadd.f32 %v5044_v1, %v4956_v19 }
 0x25e   : > { %v5465_v10 = vsel %vm5401_vm1, %v5369_v31, %v5433_v59  ;;  %v5110_v37 = vmul.f32 %v8688_v32, %v5045_v51 }
 0x25f   : > { %5497 = vst [vmem:[%s8504_s8 + $0x58] sm:$0xff] %v5465_v10  ;;  %v4868_v47 = vpop.f32.mrf.mxu2 }
 0x260   : > { %v5334_v53 = vadd.f32 %v5225_v60, %v5110_v37  ;;  %v4869_v17 = vadd.f32 %v4868_v47, %v4780_v25  ;;  %v4957_v58 = vpop.f32.mrf.mxu3 }
 0x261   : > { %v4782_v30 = vpop.f32.mrf.mxu1 }
 0x262   : > { %v5370_v52 = vadd.f32 %v8695_v26, %v5334_v53  ;;  %v4958_v14 = vadd.f32 %v4957_v58, %v4869_v17  ;;  %v4783_v13 = vadd.f32 %v4782_v30, %v8169_v36  ;;  %v5245_v30 = vpop.permute.xlu1 %5244 }
 0x263   : > { %v5049_v21 = vpop.f32.mrf.mxu0 }
 0x264   : > { %vm5402_vm2 = vcmp.ge.f32.partialorder %v5370_v52, 0.0  ;;  %v5434_v2 = vmul.f32 0.2, %v5370_v52  ;;  %v5047_v35 = vadd.f32 %v5046_v28, %v4958_v14  ;;  %4821 = vmatmul.bf16.gmra.mxu1 %v6536_v45  ;;  %4910 = vmatmul.bf16.gmra.mxu2 %v6540_v46 }
 0x265   : > { %4999 = vmatmul.bf16.gmra.mxu3 %v6544_v49 }
 0x266   : > { %5088 = vmatmul.bf16.gmra.mxu0 %v6548_v7  ;;  %v5466_v54 = vsel %vm5402_vm2, %v5370_v52, %v5434_v2  ;;  %v5111_v50 = vmul.f32 %v8688_v32, %v5047_v35 }
 0x267   : > { %5498 = vst [vmem:[%s8504_s8 + $0x60] sm:$0xff] %v5466_v54  ;;  %v4871_v56 = vpop.f32.mrf.mxu2 }
 0x268   : > { %v5335_v1 = vadd.f32 %v5230_v38, %v5111_v50  ;;  %v4872_v61 = vadd.f32 %v4871_v56, %v4783_v13  ;;  %v4960_v5 = vpop.f32.mrf.mxu3 }
 0x269   : > { %v4784_v40 = vpop.f32.mrf.mxu1 }
 0x26a   : > { %v5371_v22 = vadd.f32 %v8695_v26, %v5335_v1  ;;  %v4961_v6 = vadd.f32 %v4960_v5, %v4872_v61  ;;  %v4785_v36 = vadd.f32 %v4784_v40, %v8180_v20  ;;  %v5250_v1 = vpop.permute.xlu2 %5249 }
 0x26b   : > { %v5051_v33 = vpop.f32.mrf.mxu0 }
 0x26c   : > { %vm5403_vm3 = vcmp.ge.f32.partialorder %v5371_v22, 0.0  ;;  %v5435_v29 = vmul.f32 0.2, %v5371_v22  ;;  %v5050_v15 = vadd.f32 %v5049_v21, %v4961_v6 }
 0x26e   : > { %v5467_v44 = vsel %vm5403_vm3, %v5371_v22, %v5435_v29  ;;  %v5112_v39 = vmul.f32 %v8688_v32, %v5050_v15 }
 0x26f   : > { %5499 = vst [vmem:[%s8504_s8 + $0x68] sm:$0xff] %v5467_v44  ;;  %v4873_v31 = vpop.f32.mrf.mxu2 }
 0x270   : > { %v5336_v19 = vadd.f32 %v5235_v62, %v5112_v39  ;;  %v4874_v28 = vadd.f32 %v4873_v31, %v4785_v36  ;;  %v4962_v63 = vpop.f32.mrf.mxu3 }
 0x271   : > { %v4787_v59 = vpop.f32.mrf.mxu1 }
 0x272   : > { %v5372_v51 = vadd.f32 %v8695_v26, %v5336_v19  ;;  %v4963_v11 = vadd.f32 %v4962_v63, %v4874_v28  ;;  %v4788_v20 = vadd.f32 %v4787_v59, %v8206_v42  ;;  %v5255_v28 = vpop.permute.xlu0 %5254 }
 0x273   : > { %v5054_v60 = vpop.f32.mrf.mxu0 }
 0x274   : > { %vm5404_vm4 = vcmp.ge.f32.partialorder %v5372_v51, 0.0  ;;  %v5436_v34 = vmul.f32 0.2, %v5372_v51  ;;  %v5052_v57 = vadd.f32 %v5051_v33, %v4963_v11 }
 0x276   : > { %v5468_v10 = vsel %vm5404_vm4, %v5372_v51, %v5436_v34  ;;  %v5113_v25 = vmul.f32 %v8688_v32, %v5052_v57 }
 0x277   : > { %5500 = vst [vmem:[%s8504_s8 + $0x70] sm:$0xff] %v5468_v10  ;;  %v4876_v37 = vpop.f32.mrf.mxu2 }
 0x278   : > { %v5337_v12 = vadd.f32 %v5240_v9, %v5113_v25  ;;  %v4877_v16 = vadd.f32 %v4876_v37, %v4788_v20  ;;  %v4965_v27 = vpop.f32.mrf.mxu3 }
 0x279   : > { %v4789_v47 = vpop.f32.mrf.mxu1 }
 0x27a   : > { %v5373_v53 = vadd.f32 %v8695_v26, %v5337_v12  ;;  %v4966_v17 = vadd.f32 %v4965_v27, %v4877_v16  ;;  %v4790_v42 = vadd.f32 %v4789_v47, %v8217_v23  ;;  %v5260_v12 = vpop.permute.xlu1 %5259 }
 0x27b   : > { %v5056_v58 = vpop.f32.mrf.mxu0 }
 0x27c   : > { %vm5405_vm5 = vcmp.ge.f32.partialorder %v5373_v53, 0.0  ;;  %v5437_v45 = vmul.f32 0.2, %v5373_v53  ;;  %v5055_v46 = vadd.f32 %v5054_v60, %v4966_v17 }
 0x27e   : > { %v5469_v49 = vsel %vm5405_vm5, %v5373_v53, %v5437_v45  ;;  %v5114_v7 = vmul.f32 %v8688_v32, %v5055_v46 }
 0x27f   : > { %5501 = vst [vmem:[%s8504_s8 + $0x78] sm:$0xff] %v5469_v49  ;;  %v4878_v52 = vpop.f32.mrf.mxu2 }
 0x280   : > { %v5338_v14 = vadd.f32 %v5245_v30, %v5114_v7  ;;  %v4879_v21 = vadd.f32 %v4878_v52, %v4790_v42  ;;  %v4967_v2 = vpop.f32.mrf.mxu3  ;;  %v5265_v52 = vpop.permute.xlu2 %5264 }
 0x281   : > { %v4792_v35 = vpop.f32.mrf.mxu1 }
 0x282   : > { %v5374_v38 = vadd.f32 %v8695_v26, %v5338_v14  ;;  %v4968_v54 = vadd.f32 %v4967_v2, %v4879_v21  ;;  %v4793_v23 = vadd.f32 %v4792_v35, %v8236_v4 }
 0x283   : > { %v5059_v13 = vpop.f32.mrf.mxu0 }
 0x284   : > { %vm5406_vm6 = vcmp.ge.f32.partialorder %v5374_v38, 0.0  ;;  %v5438_v50 = vmul.f32 0.2, %v5374_v38  ;;  %v5057_v56 = vadd.f32 %v5056_v58, %v4968_v54 }
 0x286   : > { %v5470_v61 = vsel %vm5406_vm6, %v5374_v38, %v5438_v50  ;;  %v5115_v5 = vmul.f32 %v8688_v32, %v5057_v56 }
 0x287   : > { %5502 = vst [vmem:[%s8504_s8 + $0x80] sm:$0xff] %v5470_v61  ;;  %v4881_v40 = vpop.f32.mrf.mxu2 }
 0x288   : > { %v5339_v22 = vadd.f32 %v5250_v1, %v5115_v5  ;;  %v4882_v6 = vadd.f32 %v4881_v40, %v4793_v23  ;;  %v4970_v33 = vpop.f32.mrf.mxu3  ;;  %v5270_v5 = vpop.permute.xlu0 %5269 }
 0x289   : > { %v4794_v29 = vpop.f32.mrf.mxu1 }
 0x28a   : > { %v5375_v15 = vadd.f32 %v8695_v26, %v5339_v22  ;;  %v4971_v62 = vadd.f32 %v4970_v33, %v4882_v6  ;;  %v4795_v4 = vadd.f32 %v4794_v29, %v8247_v3 }
 0x28b   : > { %v5061_v44 = vpop.f32.mrf.mxu0 }
 0x28c   : > { %vm5407_vm7 = vcmp.ge.f32.partialorder %v5375_v15, 0.0  ;;  %v5439_v36 = vmul.f32 0.2, %v5375_v15  ;;  %v5060_v39 = vadd.f32 %v5059_v13, %v4971_v62 }
 0x28e   : > { %v5471_v31 = vsel %vm5407_vm7, %v5375_v15, %v5439_v36  ;;  %v5116_v19 = vmul.f32 %v8688_v32, %v5060_v39 }
 0x28f   : > { %5503 = vst [vmem:[%s8504_s8 + $0x88] sm:$0xff] %v5471_v31  ;;  %v4883_v63 = vpop.f32.mrf.mxu2 }
 0x290   : > { %v5340_v59 = vadd.f32 %v5255_v28, %v5116_v19  ;;  %v4884_v51 = vadd.f32 %v4883_v63, %v4795_v4  ;;  %v4972_v11 = vpop.f32.mrf.mxu3  ;;  %v5275_v4 = vpop.permute.xlu1 %5274 }
 0x291   : > { %v4797_v60 = vpop.f32.mrf.mxu1 }
 0x292   : > { %v5376_v34 = vadd.f32 %v8695_v26, %v5340_v59  ;;  %v4973_v57 = vadd.f32 %v4972_v11, %v4884_v51  ;;  %v4798_v3 = vadd.f32 %v4797_v60, %v8266_v41 }
 0x293   : > { %v5064_v9 = vpop.f32.mrf.mxu0 }
 0x294   : > { %vm5408_vm8 = vcmp.ge.f32.partialorder %v5376_v34, 0.0  ;;  %v5440_v10 = vmul.f32 0.2, %v5376_v34  ;;  %v5062_v20 = vadd.f32 %v5061_v44, %v4973_v57 }
 0x296   : > { %v5472_v25 = vsel %vm5408_vm8, %v5376_v34, %v5440_v10  ;;  %v5117_v37 = vmul.f32 %v8688_v32, %v5062_v20 }
 0x297   : > { %5504 = vst [vmem:[%s8504_s8 + $0x90] sm:$0xff] %v5472_v25  ;;  %v4886_v16 = vpop.f32.mrf.mxu2 }
 0x298   : > { %v5341_v27 = vadd.f32 %v5260_v12, %v5117_v37  ;;  %v4887_v47 = vadd.f32 %v4886_v16, %v4798_v3  ;;  %v4975_v53 = vpop.f32.mrf.mxu3  ;;  %v5280_v37 = vpop.permute.xlu2 %5279 }
 0x299   : > { %v4799_v17 = vpop.f32.mrf.mxu1 }
 0x29a   : > { %v5377_v58 = vadd.f32 %v8695_v26, %v5341_v27  ;;  %v4976_v45 = vadd.f32 %v4975_v53, %v4887_v47  ;;  %v4800_v41 = vadd.f32 %v4799_v17, %v8277_v55 }
 0x29b   : > { %v5066_v46 = vpop.f32.mrf.mxu0 }
 0x29c   : > { %vm5409_vm9 = vcmp.ge.f32.partialorder %v5377_v58, 0.0  ;;  %v5441_v30 = vmul.f32 0.2, %v5377_v58  ;;  %v5065_v49 = vadd.f32 %v5064_v9, %v4976_v45 }
 0x29e   : > { %v5473_v42 = vsel %vm5409_vm9, %v5377_v58, %v5441_v30  ;;  %v5118_v7 = vmul.f32 %v8688_v32, %v5065_v49 }
 0x29f   : > { %5505 = vst [vmem:[%s8504_s8 + $0x98] sm:$0xff] %v5473_v42  ;;  %v4888_v14 = vpop.f32.mrf.mxu2  ;;  %v5285_v42 = vpop.permute.xlu0 %5284 }
 0x2a0   : > { %v5342_v21 = vadd.f32 %v5265_v52, %v5118_v7  ;;  %v4889_v2 = vadd.f32 %v4888_v14, %v4800_v41  ;;  %v4977_v35 = vpop.f32.mrf.mxu3 }
 0x2a1   : > { %v4802_v38 = vpop.f32.mrf.mxu1 }
 0x2a2   : > { %v5378_v54 = vadd.f32 %v8695_v26, %v5342_v21  ;;  %v4978_v13 = vadd.f32 %v4977_v35, %v4889_v2  ;;  %v4803_v55 = vadd.f32 %v4802_v38, %v8296_v0 }
 0x2a3   : > { %v5069_v50 = vpop.f32.mrf.mxu0 }
 0x2a4   : > { %vm5410_vm10 = vcmp.ge.f32.partialorder %v5378_v54, 0.0  ;;  %v5442_v56 = vmul.f32 0.2, %v5378_v54  ;;  %v5067_v1 = vadd.f32 %v5066_v46, %v4978_v13 }
 0x2a6   : > { %v5474_v61 = vsel %vm5410_vm10, %v5378_v54, %v5442_v56  ;;  %v5119_v23 = vmul.f32 %v8688_v32, %v5067_v1  ;;  %v5290_v1 = vpop.permute.xlu1 %5289 }
 0x2a7   : > { %5506 = vst [vmem:[%s8504_s8 + $0xa0] sm:$0xff] %v5474_v61  ;;  %v4891_v40 = vpop.f32.mrf.mxu2 }
 0x2a8   : > { %v5343_v22 = vadd.f32 %v5270_v5, %v5119_v23  ;;  %v4892_v6 = vadd.f32 %v4891_v40, %v4803_v55  ;;  %v4980_v33 = vpop.f32.mrf.mxu3 }
 0x2a9   : > { %v4804_v29 = vpop.f32.mrf.mxu1 }
 0x2aa   : > { %v5379_v15 = vadd.f32 %v8695_v26, %v5343_v22  ;;  %v4981_v62 = vadd.f32 %v4980_v33, %v4892_v6  ;;  %v4805_v0 = vadd.f32 %v4804_v29, %v8309_v18 }
 0x2ab   : > { %v5071_v44 = vpop.f32.mrf.mxu0 }
 0x2ac   : > { %vm5411_vm11 = vcmp.ge.f32.partialorder %v5379_v15, 0.0  ;;  %v5443_v36 = vmul.f32 0.2, %v5379_v15  ;;  %v5070_v39 = vadd.f32 %v5069_v50, %v4981_v62 }
 0x2ae   : > { %v5475_v31 = vsel %vm5411_vm11, %v5379_v15, %v5443_v36  ;;  %v5120_v19 = vmul.f32 %v8688_v32, %v5070_v39  ;;  %v5295_v36 = vpop.permute.xlu2 %5294 }
 0x2af   : > { %5507 = vst [vmem:[%s8504_s8 + $0xa8] sm:$0xff] %v5475_v31  ;;  %v4893_v28 = vpop.f32.mrf.mxu2 }
 0x2b0   : > { %v5344_v63 = vadd.f32 %v5275_v4, %v5120_v19  ;;  %v4894_v59 = vadd.f32 %v4893_v28, %v4805_v0  ;;  %v4982_v51 = vpop.f32.mrf.mxu3 }
 0x2b1   : > { %v4807_v11 = vpop.f32.mrf.mxu1 }
 0x2b2   : > { %v5380_v60 = vadd.f32 %v8695_v26, %v5344_v63  ;;  %v4983_v34 = vadd.f32 %v4982_v51, %v4894_v59  ;;  %v4808_v18 = vadd.f32 %v4807_v11, %v8329_v8 }
 0x2b3   : > { %v5074_v57 = vpop.f32.mrf.mxu0 }
 0x2b4   : > { %vm5412_vm12 = vcmp.ge.f32.partialorder %v5380_v60, 0.0  ;;  %v5444_v9 = vmul.f32 0.2, %v5380_v60  ;;  %v5072_v10 = vadd.f32 %v5071_v44, %v4983_v34 }
 0x2b6   : > { %v5476_v20 = vsel %vm5412_vm12, %v5380_v60, %v5444_v9  ;;  %v5121_v25 = vmul.f32 %v8688_v32, %v5072_v10  ;;  %v5300_v9 = vpop.permute.xlu0 %5299 }
 0x2b7   : > { %5508 = vst [vmem:[%s8504_s8 + $0xb0] sm:$0xff] %v5476_v20  ;;  %v4896_v3 = vpop.f32.mrf.mxu2 }
 0x2b8   : > { %v5345_v12 = vadd.f32 %v5280_v37, %v5121_v25  ;;  %v4897_v16 = vadd.f32 %v4896_v3, %v4808_v18  ;;  %v4985_v27 = vpop.f32.mrf.mxu3 }
 0x2b9   : > { %v4809_v47 = vpop.f32.mrf.mxu1 }
 0x2ba   : > { %v5381_v53 = vadd.f32 %v8695_v26, %v5345_v12  ;;  %v4986_v17 = vadd.f32 %v4985_v27, %v4897_v16  ;;  %v4810_v8 = vadd.f32 %v4809_v47, %v8340_v43  ;;  %v5305_v47 = vpop.permute.xlu1 %5304 }
 0x2bb   : > { %v5076_v58 = vpop.f32.mrf.mxu0 }
 0x2bc   : > { %vm5413_vm13 = vcmp.ge.f32.partialorder %v5381_v53, 0.0  ;;  %v5445_v45 = vmul.f32 0.2, %v5381_v53  ;;  %v5075_v46 = vadd.f32 %v5074_v57, %v4986_v17  ;;  %v8841_v57 = vld [vmem:[#allocation10_spill] sm:$0xff] }
 0x2be   : > { %v5477_v30 = vsel %vm5413_vm13, %v5381_v53, %v5445_v45  ;;  %v5122_v49 = vmul.f32 %v8688_v32, %v5075_v46 }
 0x2bf   : > { %5509 = vst [vmem:[%s8504_s8 + $0xb8] sm:$0xff] %v5477_v30  ;;  %v4898_v7 = vpop.f32.mrf.mxu2 }
 0x2c0   : > { %v5346_v41 = vadd.f32 %v5285_v42, %v5122_v49  ;;  %v4899_v52 = vadd.f32 %v4898_v7, %v4810_v8  ;;  %v4987_v14 = vpop.f32.mrf.mxu3 }
 0x2c1   : > { %v4812_v21 = vpop.f32.mrf.mxu1 }
 0x2c2   : > { %v5382_v2 = vadd.f32 %v8695_v26, %v5346_v41  ;;  %v4988_v35 = vadd.f32 %v4987_v14, %v4899_v52  ;;  %v4813_v43 = vadd.f32 %v4812_v21, %v8360_v48 }
 0x2c3   : > { %v5079_v38 = vpop.f32.mrf.mxu0 }
 0x2c4   : > { %vm5414_vm14 = vcmp.ge.f32.partialorder %v5382_v2, 0.0  ;;  %v5446_v54 = vmul.f32 0.2, %v5382_v2  ;;  %v5077_v13 = vadd.f32 %v5076_v58, %v4988_v35  ;;  %v8842_v58 = vld [vmem:[#allocation11_spill] sm:$0xff] }
 0x2c6   : > { %v5478_v50 = vsel %vm5414_vm14, %v5382_v2, %v5446_v54  ;;  %v5123_v56 = vmul.f32 %v8688_v32, %v5077_v13  ;;  %v5310_v13 = vpop.permute.xlu2 %5309 }
 0x2c7   : > { %5510 = vst [vmem:[%s8504_s8 + $0xc0] sm:$0xff] %v5478_v50  ;;  %v4901_v61 = vpop.f32.mrf.mxu2 }
 0x2c8   : > { %v5347_v23 = vadd.f32 %v5290_v1, %v5123_v56  ;;  %v4902_v55 = vadd.f32 %v4901_v61, %v4813_v43  ;;  %v4990_v5 = vpop.f32.mrf.mxu3 }
 0x2c9   : > { %v4814_v40 = vpop.f32.mrf.mxu1 }
 0x2ca   : > { %v5383_v22 = vadd.f32 %v8695_v26, %v5347_v23  ;;  %v4991_v6 = vadd.f32 %v4990_v5, %v4902_v55  ;;  %v4815_v48 = vadd.f32 %v4814_v40, %v8371_v24 }
 0x2cb   : > { %v5081_v33 = vpop.f32.mrf.mxu0 }
 0x2cc   : > { %vm5415_vm15 = vcmp.ge.f32.partialorder %v5383_v22, 0.0  ;;  %v5447_v29 = vmul.f32 0.2, %v5383_v22  ;;  %v5080_v15 = vadd.f32 %v5079_v38, %v4991_v6  ;;  %v8843_v38 = vld [vmem:[#allocation6_spill] sm:$0xff] }
 0x2ce   : > { %v5479_v62 = vsel %vm5415_vm15, %v5383_v22, %v5447_v29  ;;  %v5124_v44 = vmul.f32 %v8688_v32, %v5080_v15  ;;  %v8844_v29 = vld [vmem:[#allocation7_spill] sm:$0xff] }
 0x2cf   : > { %5511 = vst [vmem:[%s8504_s8 + $0xc8] sm:$0xff] %v5479_v62  ;;  %v4903_v39 = vpop.f32.mrf.mxu2  ;;  %v5315_v62 = vpop.permute.xlu0 %5314 }
 0x2d0   : > { %v5348_v31 = vadd.f32 %v5295_v36, %v5124_v44  ;;  %v4904_v19 = vadd.f32 %v4903_v39, %v4815_v48  ;;  %v4992_v0 = vpop.f32.mrf.mxu3 }
 0x2d1   : > { %v4817_v4 = vpop.f32.mrf.mxu1 }
 0x2d2   : > { %v5384_v28 = vadd.f32 %v8695_v26, %v5348_v31  ;;  %v4993_v63 = vadd.f32 %v4992_v0, %v4904_v19  ;;  %v4818_v24 = vadd.f32 %v4817_v4, %v8841_v57 }
 0x2d3   : > { %v5084_v11 = vpop.f32.mrf.mxu0 }
 0x2d4   : > { %vm5416_vm0 = vcmp.ge.f32.partialorder %v5384_v28, 0.0  ;;  %v5448_v59 = vmul.f32 0.2, %v5384_v28  ;;  %v5082_v51 = vadd.f32 %v5081_v33, %v4993_v63 }
 0x2d6   : > { %v5480_v60 = vsel %vm5416_vm0, %v5384_v28, %v5448_v59  ;;  %v5125_v34 = vmul.f32 %v8688_v32, %v5082_v51  ;;  %v5320_v51 = vpop.permute.xlu1 %5319 }
 0x2d7   : > { %5512 = vst [vmem:[%s8504_s8 + $0xd0] sm:$0xff] %v5480_v60  ;;  %v4906_v10 = vpop.f32.mrf.mxu2 }
 0x2d8   : > { %v5349_v20 = vadd.f32 %v5300_v9, %v5125_v34  ;;  %v4907_v25 = vadd.f32 %v4906_v10, %v4818_v24  ;;  %v4995_v18 = vpop.f32.mrf.mxu3 }
 0x2d9   : > { %v4819_v37 = vpop.f32.mrf.mxu1 }
 0x2da   : > { %v5385_v3 = vadd.f32 %v8695_v26, %v5349_v20  ;;  %v4996_v12 = vadd.f32 %v4995_v18, %v4907_v25  ;;  %v4820_v45 = vadd.f32 %v4819_v37, %v8842_v58 }
 0x2db   : > { %v5086_v46 = vpop.f32.mrf.mxu0 }
 0x2dc   : > { %vm5417_vm1 = vcmp.ge.f32.partialorder %v5385_v3, 0.0  ;;  %v5449_v16 = vmul.f32 0.2, %v5385_v3  ;;  %v5085_v27 = vadd.f32 %v5084_v11, %v4996_v12 }
 0x2de   : > { %v5481_v53 = vsel %vm5417_vm1, %v5385_v3, %v5449_v16  ;;  %v5126_v17 = vmul.f32 %v8688_v32, %v5085_v27 }
 0x2df   : > { %5513 = vst [vmem:[%s8504_s8 + $0xd8] sm:$0xff] %v5481_v53  ;;  %v4908_v30 = vpop.f32.mrf.mxu2 }
 0x2e0   : > { %v5350_v49 = vadd.f32 %v5305_v47, %v5126_v17  ;;  %v4909_v8 = vadd.f32 %v4908_v30, %v4820_v45  ;;  %v4997_v42 = vpop.f32.mrf.mxu3 }
 0x2e1   : > { %v4822_v7 = vpop.f32.mrf.mxu1 }
 0x2e2   : > { %v5386_v41 = vadd.f32 %v8695_v26, %v5350_v49  ;;  %v4998_v52 = vadd.f32 %v4997_v42, %v4909_v8  ;;  %v4823_v54 = vadd.f32 %v4822_v7, %v8843_v38 }
 0x2e3   : > { %v5089_v61 = vpop.f32.mrf.mxu0 }
 0x2e4   : > { %vm5418_vm2 = vcmp.ge.f32.partialorder %v5386_v41, 0.0  ;;  %v5450_v14 = vmul.f32 0.2, %v5386_v41  ;;  %v5087_v21 = vadd.f32 %v5086_v46, %v4998_v52 }
 0x2e6   : > { %v5482_v2 = vsel %vm5418_vm2, %v5386_v41, %v5450_v14  ;;  %v5127_v35 = vmul.f32 %v8688_v32, %v5087_v21 }
 0x2e7   : > { %5514 = vst [vmem:[%s8504_s8 + $0xe0] sm:$0xff] %v5482_v2  ;;  %v4911_v50 = vpop.f32.mrf.mxu2 }
 0x2e8   : > { %v5351_v56 = vadd.f32 %v5310_v13, %v5127_v35  ;;  %v4912_v43 = vadd.f32 %v4911_v50, %v4823_v54  ;;  %v5000_v1 = vpop.f32.mrf.mxu3 }
 0x2e9   : > { %v4824_v5 = vpop.f32.mrf.mxu1 }
 0x2ea   : > { %v5387_v23 = vadd.f32 %v8695_v26, %v5351_v56  ;;  %v5001_v55 = vadd.f32 %v5000_v1, %v4912_v43  ;;  %v4825_v15 = vadd.f32 %v4824_v5, %v8844_v29 }
 0x2eb   : > { %v5091_v0 = vpop.f32.mrf.mxu0 }
 0x2ec   : > { %vm5419_vm3 = vcmp.ge.f32.partialorder %v5387_v23, 0.0  ;;  %v5451_v40 = vmul.f32 0.2, %v5387_v23  ;;  %v5090_v22 = vadd.f32 %v5089_v61, %v5001_v55 }
 0x2ee   : > { %v5483_v6 = vsel %vm5419_vm3, %v5387_v23, %v5451_v40  ;;  %v5128_v33 = vmul.f32 %v8688_v32, %v5090_v22 }
 0x2ef   : > { %5515 = vst [vmem:[%s8504_s8 + $0xe8] sm:$0xff] %v5483_v6  ;;  %v4913_v44 = vpop.f32.mrf.mxu2 }
 0x2f0   : > { %v5352_v48 = vadd.f32 %v5315_v62, %v5128_v33  ;;  %v4914_v36 = vadd.f32 %v4913_v44, %v4825_v15  ;;  %v5002_v39 = vpop.f32.mrf.mxu3 }
 0x2f2   : > { %v5388_v31 = vadd.f32 %v8695_v26, %v5352_v48  ;;  %v5003_v19 = vadd.f32 %v5002_v39, %v4914_v36 }
 0x2f4   : > { %vm5420_vm4 = vcmp.ge.f32.partialorder %v5388_v31, 0.0  ;;  %v5452_v4 = vmul.f32 0.2, %v5388_v31  ;;  %v5092_v28 = vadd.f32 %v5091_v0, %v5003_v19 }
 0x2f6   : > { %v5484_v63 = vsel %vm5420_vm4, %v5388_v31, %v5452_v4  ;;  %v5129_v59 = vmul.f32 %v8688_v32, %v5092_v28 }
 0x2f7   : > { %5516 = vst [vmem:[%s8504_s8 + $0xf0] sm:$0xff] %v5484_v63 }
 0x2f8   : > { %v5353_v11 = vadd.f32 %v5320_v51, %v5129_v59 }
 0x2fa   : > { %v5389_v60 = vadd.f32 %v8695_v26, %v5353_v11 }
 0x2fc   : > { %vm5421_vm5 = vcmp.ge.f32.partialorder %v5389_v60, 0.0  ;;  %v5453_v34 = vmul.f32 0.2, %v5389_v60 }
 0x2fe   : > { %v5485_v57 = vsel %vm5421_vm5, %v5389_v60, %v5453_v34 }
 0x2ff   : > { %5517 = vst [vmem:[%s8504_s8 + $0xf8] sm:$0xff] %v5485_v57 }
 0x300   : > { %7177 = shalt.err (!%p7174_p5)
}
 0x301   : > { %s7231_s11 = smov 128   ;;  %s7232_s8 = smov 8  }
 0x302   : > { %7085 = dma.vmem_to_hbm [thread:$0]  (%p7303_p4), %s5533_s15, 4096, %s5535_s16, %s5519_s21, %s7231_s11, %s7231_s11, %s7232_s8  }
 0x303 PF: > { %p7091_p6 = scmp.ge.s32.totalorder %s7228_s23, 2  ;;  %s5549_s10 = sand.u32 1, %s7208_s18  }
 0x304   : > { %s5550_s12 = scalar_lea.sflag [#allocation4], %s5549_s10 }
 0x305   : > { %p7088_p7 = pnand %p7091_p6, %p7310_p8 }
 0x307   : > { %p7089_p9 = pneg %p7088_p7 }
 0x309   : > { %7203 = dma.done.wait (%p7089_p9), %s5550_s12, 4096  }
 0x30a   : > { %7205 = vsyncadd (%p7089_p9), %s5550_s12, 4294963200  ;;  %s18_s23 = sadd.s32 1, %s7228_s23   ;;  %s8845_s18 = smov %s7212_s19 }
 0x30b   : > { %p15_p10 = scmp.ge.s32.totalorder %s18_s23, 4   ;;  %s8846_s19 = smov %s7216_s20 }
 0x30c   : > { %s8847_s20 = smov %s7316_s6  ;;  %s8848_s21 = smov %s7224_s22 }
 0x30d   : > { %s8849_s22 = smov %s8851_s26  ;;  %17 = sbr.rel (!%p15_p10) target bundleno = 4 (0x4), region = 93 }
 0x312   :  { %5556 = vsyncpa [#allocation4], 1 }
 0x313   :  { %5558 = vsyncpa [#allocation4 + $0x1], 1 }

</bundles_post_ra>
